<compile_context>
chip_gen: v7x
topology: tpu7x:2x2x1
jax: 0.10.0
libtpu: 0.0.40
codegen_flags: <defaults>
</compile_context>

<pallas_src>
import jax
import jax.numpy as jnp
from jax import lax
from jax.experimental import pallas as pl
from jax.experimental.pallas import tpu as pltpu

BN_EPS = 1e-5  # nn.BatchNorm2d default


def _full_spec(shape):
    # Whole-array block (arrays here are tiny; exempt from the (8,128) tiling rule).
    n = len(shape)
    return pl.BlockSpec(shape, lambda i, _n=n: (0,) * _n)


# ------------------------------ fused DownSample kernel ------------------------------
def _downsample_kernel(x_ref, w1_ref, g1_ref, be1_ref, w2_ref, g2_ref, be2_ref, o_ref):
    # x_ref:      (N, H, W, Cin)   NHWC input (full array)
    # w*_ref:     (9, Cin, Cout)   conv weights, tap-major (kh*3+kw); conv bias omitted
    # g*/be*_ref: (1, Cout)        BN affine params
    # o_ref:      (N*H2*W2, Cout)  flat channels-last output slab
    N, H, W, Cin = x_ref.shape
    Ho, Wo = H // 2, W // 2

    # ---------------- MaxPool2d(kernel=2, stride=2), in-kernel ----------------
    x = x_ref[...]
    x = x.reshape(N, Ho, 2, W, Cin)                    # split H (leading dims only)
    x = jnp.maximum(x[:, :, 0], x[:, :, 1])            # (N, Ho, W, Cin)
    x = x.reshape(N, Ho, Wo, 2, Cin)                   # split W (lane dim untouched)
    x = jnp.maximum(x[:, :, :, 0], x[:, :, :, 1])      # (N, Ho, Wo, Cin)

    # ------------- Conv2d(3x3, VALID) + BN(train) + ReLU, as a helper -------------
    def conv3x3_bn_relu(inp, w_ref, g_ref, b_ref):
        n, hi, wi, ci = inp.shape
        co = w_ref.shape[-1]
        ho, wo = hi - 2, wi - 2
        m = n * ho * wo

        # 9 shifted-tap matmuls accumulated in f32 on the MXU.
        # (conv bias dropped: BN mean subtraction cancels any per-channel constant.)
        acc = None
        for kh in range(3):
            for kw in range(3):
                tap = inp[:, kh:kh + ho, kw:kw + wo, :].reshape(m, ci)
                d = jnp.dot(tap, w_ref[kh * 3 + kw],
                            preferred_element_type=jnp.float32)
                acc = d if acc is None else acc + d

        # BatchNorm2d (training mode, biased variance) folded into one scale/shift:
        # single stats pass (sum and sum-of-squares), single normalize+ReLU sweep.
        inv_m = 1.0 / m
        mean = jnp.sum(acc, axis=0, keepdims=True) * inv_m            # (1, Co)
        var = jnp.sum(acc * acc, axis=0, keepdims=True) * inv_m - mean * mean
        scale = g_ref[...] * lax.rsqrt(var + BN_EPS)                  # (1, Co)
        shift = be_ = b_ref[...] - mean * scale
        y = jnp.maximum(acc * scale + shift, 0.0)                     # (m, Co)
        return y, (n, ho, wo, co)

    y, (n1, h1, w1, c1) = conv3x3_bn_relu(x, w1_ref, g1_ref, be1_ref)
    y = y.reshape(n1, h1, w1, c1)                      # restore spatial dims for conv2 taps
    z, _ = conv3x3_bn_relu(y, w2_ref, g2_ref, be2_ref)

    o_ref[...] = z.astype(o_ref.dtype)                 # (N*H2*W2, Cout) flat slab


# ------------------------------------ public wrapper ------------------------------------
def _oihw_to_taps(w_oihw):
    # PyTorch (Cout, Cin, KH, KW) -> (KH*KW, Cin, Cout), tap index = kh*3 + kw
    cout, cin = w_oihw.shape[0], w_oihw.shape[1]
    return jnp.transpose(w_oihw, (2, 3, 1, 0)).reshape(9, cin, cout)


@jax.jit
def downsample_forward(x_nchw, p):
    N, Cin, H, W = x_nchw.shape
    w1, g1, be1 = p["w1"], p["g1"], p["be1"]
    w2, g2, be2 = p["w2"], p["g2"], p["be2"]
    Cout = w1.shape[-1]
    Ho, Wo = H // 2, W // 2
    H1, W1 = Ho - 2, Wo - 2
    H2, W2 = H1 - 2, W1 - 2

    x_nhwc = jnp.transpose(x_nchw, (0, 2, 3, 1))        # NCHW -> NHWC (fused by XLA under jit)
    g1r, be1r = g1.reshape(1, Cout), be1.reshape(1, Cout)
    g2r, be2r = g2.reshape(1, Cout), be2.reshape(1, Cout)

    out_flat = (N * H2 * W2, Cout)
    out = pl.pallas_call(
        _downsample_kernel,
        grid=(1,),
        in_specs=[_full_spec(x_nhwc.shape), _full_spec(w1.shape),
                  _full_spec(g1r.shape), _full_spec(be1r.shape),
                  _full_spec(w2.shape), _full_spec(g2r.shape), _full_spec(be2r.shape)],
        out_specs=_full_spec(out_flat),
        out_shape=jax.ShapeDtypeStruct(out_flat, jnp.float32),
        compiler_params=pltpu.CompilerParams(dimension_semantics=("arbitrary",)),
    )(x_nhwc, w1, g1r, be1r, w2, g2r, be2r)

    return jnp.transpose(out.reshape(N, H2, W2, Cout), (0, 3, 1, 2))   # -> NCHW


# ------------------------------------ pure-jnp reference ------------------------------------
def _ref_forward(x_nchw, raw):
    # Includes the conv bias (as PyTorch does); kernel omits it because train-mode BN
    # cancels it exactly — results must still match.
    def cbr(x, w_oihw, b, g, be):
        y = lax.conv_general_dilated(x, w_oihw, (1, 1), "VALID",
                                     dimension_numbers=("NCHW", "OIHW", "NCHW"))
        y = y + b.reshape(1, -1, 1, 1)
        mean = jnp.mean(y, axis=(0, 2, 3), keepdims=True)
        var = jnp.mean((y - mean) ** 2, axis=(0, 2, 3), keepdims=True)
        y = (y - mean) * lax.rsqrt(var + BN_EPS) * g.reshape(1, -1, 1, 1) + be.reshape(1, -1, 1, 1)
        return jnp.maximum(y, 0.0)

    N, C, H, W = x_nchw.shape
    xp = x_nchw.reshape(N, C, H // 2, 2, W // 2, 2).max(axis=(3, 5))
    y = cbr(xp, raw["w1"], raw["b1"], raw["g1"], raw["be1"])
    y = cbr(y, raw["w2"], raw["b2"], raw["g2"], raw["be2"])
    return y


if __name__ == "__main__":
    in_channels, out_channels = 4, 8
    key = jax.random.PRNGKey(0)
    kx, kp = jax.random.split(key)
    x = jax.random.normal(kx, (2, in_channels, 16, 16), jnp.float32)

    ks = jax.random.split(kp, 8)
    # deterministic synthetic parameters (Conv2d weight/bias + BatchNorm2d gamma/beta)
    w1 = 0.1 * jax.random.normal(ks[0], (out_channels, in_channels, 3, 3), jnp.float32)
    b1 = 0.1 * jax.random.normal(ks[1], (out_channels,), jnp.float32)
    g1 = 1.0 + 0.1 * jax.random.normal(ks[2], (out_channels,), jnp.float32)
    be1 = 0.1 * jax.random.normal(ks[3], (out_channels,), jnp.float32)
    w2 = 0.1 * jax.random.normal(ks[4], (out_channels, out_channels, 3, 3), jnp.float32)
    b2 = 0.1 * jax.random.normal(ks[5], (out_channels,), jnp.float32)
    g2 = 1.0 + 0.1 * jax.random.normal(ks[6], (out_channels,), jnp.float32)
    be2 = 0.1 * jax.random.normal(ks[7], (out_channels,), jnp.float32)

    # kernel params: tap-major conv weights + BN affine (conv bias intentionally unused)
    params = dict(w1=_oihw_to_taps(w1), g1=g1, be1=be1,
                  w2=_oihw_to_taps(w2), g2=g2, be2=be2)
    raw = dict(w1=w1, b1=b1, g1=g1, be1=be1, w2=w2, b2=b2, g2=g2, be2=be2)

    out = jax.block_until_ready(downsample_forward(x, params))
    ref = _ref_forward(x, raw)

    assert out.shape == (2, out_channels, 4, 4), out.shape
    assert jnp.allclose(out, ref, atol=1e-3, rtol=1e-3), float(jnp.max(jnp.abs(out - ref)))
    print("KERNEL_OK")
</pallas_src>

<mosaic_0001>
module attributes {stable_mosaic.version = 11 : i64} {
  func.func @_downsample_kernel(%arg0: i32, %arg1: memref<2x16x16x4xf32, #tpu.memory_space<vmem>>, %arg2: memref<9x4x8xf32, #tpu.memory_space<vmem>>, %arg3: memref<1x8xf32, #tpu.memory_space<vmem>>, %arg4: memref<1x8xf32, #tpu.memory_space<vmem>>, %arg5: memref<9x8x8xf32, #tpu.memory_space<vmem>>, %arg6: memref<1x8xf32, #tpu.memory_space<vmem>>, %arg7: memref<1x8xf32, #tpu.memory_space<vmem>>, %arg8: memref<32x8xf32, #tpu.memory_space<vmem>>) attributes {dimension_semantics = [#tpu.dimension_semantics<arbitrary>], iteration_bounds = array<i64: 1>, scalar_prefetch = 0 : i64, scratch_operands = 0 : i64, tpu.core_type = #tpu.core_type<tc>, window_params = [{pipeline_mode = #tpu.pipeline_mode<synchronous>, transform_indices = @transform_0, window_bounds = array<i64: 2, 16, 16, 4>}, {pipeline_mode = #tpu.pipeline_mode<synchronous>, transform_indices = @transform_1, window_bounds = array<i64: 9, 4, 8>}, {pipeline_mode = #tpu.pipeline_mode<synchronous>, transform_indices = @transform_2, window_bounds = array<i64: 1, 8>}, {pipeline_mode = #tpu.pipeline_mode<synchronous>, transform_indices = @transform_3, window_bounds = array<i64: 1, 8>}, {pipeline_mode = #tpu.pipeline_mode<synchronous>, transform_indices = @transform_4, window_bounds = array<i64: 9, 8, 8>}, {pipeline_mode = #tpu.pipeline_mode<synchronous>, transform_indices = @transform_5, window_bounds = array<i64: 1, 8>}, {pipeline_mode = #tpu.pipeline_mode<synchronous>, transform_indices = @transform_6, window_bounds = array<i64: 1, 8>}, {pipeline_mode = #tpu.pipeline_mode<synchronous>, transform_indices = @transform_7, window_bounds = array<i64: 32, 8>}]} {
    %c0 = arith.constant 0 : index
    %c0_0 = arith.constant 0 : index
    %c0_1 = arith.constant 0 : index
    %c0_2 = arith.constant 0 : index
    %0 = vector.load %arg1[%c0, %c0_0, %c0_1, %c0_2] : memref<2x16x16x4xf32, #tpu.memory_space<vmem>>, vector<2x16x16x4xf32>
    %1 = vector.shape_cast %0 : vector<2x16x16x4xf32> to vector<2x8x2x16x4xf32>
    %2 = vector.extract_strided_slice %1 {offsets = [0, 0, 0, 0, 0], sizes = [2, 8, 1, 16, 4], strides = [1, 1, 1, 1, 1]} : vector<2x8x2x16x4xf32> to vector<2x8x1x16x4xf32>
    %3 = vector.shape_cast %2 : vector<2x8x1x16x4xf32> to vector<2x8x16x4xf32>
    %4 = vector.extract_strided_slice %1 {offsets = [0, 0, 1, 0, 0], sizes = [2, 8, 1, 16, 4], strides = [1, 1, 1, 1, 1]} : vector<2x8x2x16x4xf32> to vector<2x8x1x16x4xf32>
    %5 = vector.shape_cast %4 : vector<2x8x1x16x4xf32> to vector<2x8x16x4xf32>
    %6 = arith.maximumf %3, %5 : vector<2x8x16x4xf32>
    %7 = vector.shape_cast %6 : vector<2x8x16x4xf32> to vector<2x8x8x2x4xf32>
    %8 = vector.extract_strided_slice %7 {offsets = [0, 0, 0, 0, 0], sizes = [2, 8, 8, 1, 4], strides = [1, 1, 1, 1, 1]} : vector<2x8x8x2x4xf32> to vector<2x8x8x1x4xf32>
    %9 = vector.shape_cast %8 : vector<2x8x8x1x4xf32> to vector<2x8x8x4xf32>
    %10 = vector.extract_strided_slice %7 {offsets = [0, 0, 0, 1, 0], sizes = [2, 8, 8, 1, 4], strides = [1, 1, 1, 1, 1]} : vector<2x8x8x2x4xf32> to vector<2x8x8x1x4xf32>
    %11 = vector.shape_cast %10 : vector<2x8x8x1x4xf32> to vector<2x8x8x4xf32>
    %12 = arith.maximumf %9, %11 : vector<2x8x8x4xf32>
    %13 = vector.extract_strided_slice %12 {offsets = [0, 0, 0, 0], sizes = [2, 6, 6, 4], strides = [1, 1, 1, 1]} : vector<2x8x8x4xf32> to vector<2x6x6x4xf32>
    %14 = vector.shape_cast %13 : vector<2x6x6x4xf32> to vector<72x4xf32>
    %c0_3 = arith.constant 0 : index
    %c0_4 = arith.constant 0 : index
    %c0_5 = arith.constant 0 : index
    %15 = vector.load %arg2[%c0_3, %c0_4, %c0_5] : memref<9x4x8xf32, #tpu.memory_space<vmem>>, vector<1x4x8xf32>
    %16 = vector.shape_cast %15 : vector<1x4x8xf32> to vector<4x8xf32>
    %cst = arith.constant dense<0.000000e+00> : vector<72x8xf32>
    %17 = tpu.matmul %14, %16, %cst {dimension_numbers = #tpu.dot_dimension_numbers<[1], [0], [0], [1], [0, 0, 1, 1], [], []>} : vector<72x4xf32>, vector<4x8xf32>, vector<72x8xf32> -> vector<72x8xf32>
    %18 = vector.extract_strided_slice %12 {offsets = [0, 0, 1, 0], sizes = [2, 6, 6, 4], strides = [1, 1, 1, 1]} : vector<2x8x8x4xf32> to vector<2x6x6x4xf32>
    %19 = vector.shape_cast %18 : vector<2x6x6x4xf32> to vector<72x4xf32>
    %c1 = arith.constant 1 : index
    %c0_6 = arith.constant 0 : index
    %c0_7 = arith.constant 0 : index
    %20 = vector.load %arg2[%c1, %c0_6, %c0_7] : memref<9x4x8xf32, #tpu.memory_space<vmem>>, vector<1x4x8xf32>
    %21 = vector.shape_cast %20 : vector<1x4x8xf32> to vector<4x8xf32>
    %cst_8 = arith.constant dense<0.000000e+00> : vector<72x8xf32>
    %22 = tpu.matmul %19, %21, %cst_8 {dimension_numbers = #tpu.dot_dimension_numbers<[1], [0], [0], [1], [0, 0, 1, 1], [], []>} : vector<72x4xf32>, vector<4x8xf32>, vector<72x8xf32> -> vector<72x8xf32>
    %23 = arith.addf %17, %22 : vector<72x8xf32>
    %24 = vector.extract_strided_slice %12 {offsets = [0, 0, 2, 0], sizes = [2, 6, 6, 4], strides = [1, 1, 1, 1]} : vector<2x8x8x4xf32> to vector<2x6x6x4xf32>
    %25 = vector.shape_cast %24 : vector<2x6x6x4xf32> to vector<72x4xf32>
    %c2 = arith.constant 2 : index
    %c0_9 = arith.constant 0 : index
    %c0_10 = arith.constant 0 : index
    %26 = vector.load %arg2[%c2, %c0_9, %c0_10] : memref<9x4x8xf32, #tpu.memory_space<vmem>>, vector<1x4x8xf32>
    %27 = vector.shape_cast %26 : vector<1x4x8xf32> to vector<4x8xf32>
    %cst_11 = arith.constant dense<0.000000e+00> : vector<72x8xf32>
    %28 = tpu.matmul %25, %27, %cst_11 {dimension_numbers = #tpu.dot_dimension_numbers<[1], [0], [0], [1], [0, 0, 1, 1], [], []>} : vector<72x4xf32>, vector<4x8xf32>, vector<72x8xf32> -> vector<72x8xf32>
    %29 = arith.addf %23, %28 : vector<72x8xf32>
    %30 = vector.extract_strided_slice %12 {offsets = [0, 1, 0, 0], sizes = [2, 6, 6, 4], strides = [1, 1, 1, 1]} : vector<2x8x8x4xf32> to vector<2x6x6x4xf32>
    %31 = vector.shape_cast %30 : vector<2x6x6x4xf32> to vector<72x4xf32>
    %c3 = arith.constant 3 : index
    %c0_12 = arith.constant 0 : index
    %c0_13 = arith.constant 0 : index
    %32 = vector.load %arg2[%c3, %c0_12, %c0_13] : memref<9x4x8xf32, #tpu.memory_space<vmem>>, vector<1x4x8xf32>
    %33 = vector.shape_cast %32 : vector<1x4x8xf32> to vector<4x8xf32>
    %cst_14 = arith.constant dense<0.000000e+00> : vector<72x8xf32>
    %34 = tpu.matmul %31, %33, %cst_14 {dimension_numbers = #tpu.dot_dimension_numbers<[1], [0], [0], [1], [0, 0, 1, 1], [], []>} : vector<72x4xf32>, vector<4x8xf32>, vector<72x8xf32> -> vector<72x8xf32>
    %35 = arith.addf %29, %34 : vector<72x8xf32>
    %36 = vector.extract_strided_slice %12 {offsets = [0, 1, 1, 0], sizes = [2, 6, 6, 4], strides = [1, 1, 1, 1]} : vector<2x8x8x4xf32> to vector<2x6x6x4xf32>
    %37 = vector.shape_cast %36 : vector<2x6x6x4xf32> to vector<72x4xf32>
    %c4 = arith.constant 4 : index
    %c0_15 = arith.constant 0 : index
    %c0_16 = arith.constant 0 : index
    %38 = vector.load %arg2[%c4, %c0_15, %c0_16] : memref<9x4x8xf32, #tpu.memory_space<vmem>>, vector<1x4x8xf32>
    %39 = vector.shape_cast %38 : vector<1x4x8xf32> to vector<4x8xf32>
    %cst_17 = arith.constant dense<0.000000e+00> : vector<72x8xf32>
    %40 = tpu.matmul %37, %39, %cst_17 {dimension_numbers = #tpu.dot_dimension_numbers<[1], [0], [0], [1], [0, 0, 1, 1], [], []>} : vector<72x4xf32>, vector<4x8xf32>, vector<72x8xf32> -> vector<72x8xf32>
    %41 = arith.addf %35, %40 : vector<72x8xf32>
    %42 = vector.extract_strided_slice %12 {offsets = [0, 1, 2, 0], sizes = [2, 6, 6, 4], strides = [1, 1, 1, 1]} : vector<2x8x8x4xf32> to vector<2x6x6x4xf32>
    %43 = vector.shape_cast %42 : vector<2x6x6x4xf32> to vector<72x4xf32>
    %c5 = arith.constant 5 : index
    %c0_18 = arith.constant 0 : index
    %c0_19 = arith.constant 0 : index
    %44 = vector.load %arg2[%c5, %c0_18, %c0_19] : memref<9x4x8xf32, #tpu.memory_space<vmem>>, vector<1x4x8xf32>
    %45 = vector.shape_cast %44 : vector<1x4x8xf32> to vector<4x8xf32>
    %cst_20 = arith.constant dense<0.000000e+00> : vector<72x8xf32>
    %46 = tpu.matmul %43, %45, %cst_20 {dimension_numbers = #tpu.dot_dimension_numbers<[1], [0], [0], [1], [0, 0, 1, 1], [], []>} : vector<72x4xf32>, vector<4x8xf32>, vector<72x8xf32> -> vector<72x8xf32>
    %47 = arith.addf %41, %46 : vector<72x8xf32>
    %48 = vector.extract_strided_slice %12 {offsets = [0, 2, 0, 0], sizes = [2, 6, 6, 4], strides = [1, 1, 1, 1]} : vector<2x8x8x4xf32> to vector<2x6x6x4xf32>
    %49 = vector.shape_cast %48 : vector<2x6x6x4xf32> to vector<72x4xf32>
    %c6 = arith.constant 6 : index
    %c0_21 = arith.constant 0 : index
    %c0_22 = arith.constant 0 : index
    %50 = vector.load %arg2[%c6, %c0_21, %c0_22] : memref<9x4x8xf32, #tpu.memory_space<vmem>>, vector<1x4x8xf32>
    %51 = vector.shape_cast %50 : vector<1x4x8xf32> to vector<4x8xf32>
    %cst_23 = arith.constant dense<0.000000e+00> : vector<72x8xf32>
    %52 = tpu.matmul %49, %51, %cst_23 {dimension_numbers = #tpu.dot_dimension_numbers<[1], [0], [0], [1], [0, 0, 1, 1], [], []>} : vector<72x4xf32>, vector<4x8xf32>, vector<72x8xf32> -> vector<72x8xf32>
    %53 = arith.addf %47, %52 : vector<72x8xf32>
    %54 = vector.extract_strided_slice %12 {offsets = [0, 2, 1, 0], sizes = [2, 6, 6, 4], strides = [1, 1, 1, 1]} : vector<2x8x8x4xf32> to vector<2x6x6x4xf32>
    %55 = vector.shape_cast %54 : vector<2x6x6x4xf32> to vector<72x4xf32>
    %c7 = arith.constant 7 : index
    %c0_24 = arith.constant 0 : index
    %c0_25 = arith.constant 0 : index
    %56 = vector.load %arg2[%c7, %c0_24, %c0_25] : memref<9x4x8xf32, #tpu.memory_space<vmem>>, vector<1x4x8xf32>
    %57 = vector.shape_cast %56 : vector<1x4x8xf32> to vector<4x8xf32>
    %cst_26 = arith.constant dense<0.000000e+00> : vector<72x8xf32>
    %58 = tpu.matmul %55, %57, %cst_26 {dimension_numbers = #tpu.dot_dimension_numbers<[1], [0], [0], [1], [0, 0, 1, 1], [], []>} : vector<72x4xf32>, vector<4x8xf32>, vector<72x8xf32> -> vector<72x8xf32>
    %59 = arith.addf %53, %58 : vector<72x8xf32>
    %60 = vector.extract_strided_slice %12 {offsets = [0, 2, 2, 0], sizes = [2, 6, 6, 4], strides = [1, 1, 1, 1]} : vector<2x8x8x4xf32> to vector<2x6x6x4xf32>
    %61 = vector.shape_cast %60 : vector<2x6x6x4xf32> to vector<72x4xf32>
    %c8 = arith.constant 8 : index
    %c0_27 = arith.constant 0 : index
    %c0_28 = arith.constant 0 : index
    %62 = vector.load %arg2[%c8, %c0_27, %c0_28] : memref<9x4x8xf32, #tpu.memory_space<vmem>>, vector<1x4x8xf32>
    %63 = vector.shape_cast %62 : vector<1x4x8xf32> to vector<4x8xf32>
    %cst_29 = arith.constant dense<0.000000e+00> : vector<72x8xf32>
    %64 = tpu.matmul %61, %63, %cst_29 {dimension_numbers = #tpu.dot_dimension_numbers<[1], [0], [0], [1], [0, 0, 1, 1], [], []>} : vector<72x4xf32>, vector<4x8xf32>, vector<72x8xf32> -> vector<72x8xf32>
    %65 = arith.addf %59, %64 : vector<72x8xf32>
    %cst_30 = arith.constant dense<0.000000e+00> : vector<8xf32>
    %66 = vector.multi_reduction <add>, %65, %cst_30 [0] : vector<72x8xf32> to vector<8xf32>
    %67 = vector.shape_cast %66 : vector<8xf32> to vector<1x8xf32>
    %cst_31 = arith.constant 0.013888889 : f32
    %68 = vector.broadcast %cst_31 : f32 to vector<1x8xf32>
    %69 = arith.mulf %67, %68 : vector<1x8xf32>
    %70 = arith.mulf %65, %65 : vector<72x8xf32>
    %cst_32 = arith.constant dense<0.000000e+00> : vector<8xf32>
    %71 = vector.multi_reduction <add>, %70, %cst_32 [0] : vector<72x8xf32> to vector<8xf32>
    %72 = vector.shape_cast %71 : vector<8xf32> to vector<1x8xf32>
    %cst_33 = arith.constant 0.013888889 : f32
    %73 = vector.broadcast %cst_33 : f32 to vector<1x8xf32>
    %74 = arith.mulf %72, %73 : vector<1x8xf32>
    %75 = arith.mulf %69, %69 : vector<1x8xf32>
    %76 = arith.subf %74, %75 : vector<1x8xf32>
    %c0_34 = arith.constant 0 : index
    %c0_35 = arith.constant 0 : index
    %77 = vector.load %arg3[%c0_34, %c0_35] : memref<1x8xf32, #tpu.memory_space<vmem>>, vector<1x8xf32>
    %cst_36 = arith.constant 9.99999974E-6 : f32
    %78 = vector.broadcast %cst_36 : f32 to vector<1x8xf32>
    %79 = arith.addf %76, %78 : vector<1x8xf32>
    %80 = math.rsqrt %79 : vector<1x8xf32>
    %81 = arith.mulf %77, %80 : vector<1x8xf32>
    %c0_37 = arith.constant 0 : index
    %c0_38 = arith.constant 0 : index
    %82 = vector.load %arg4[%c0_37, %c0_38] : memref<1x8xf32, #tpu.memory_space<vmem>>, vector<1x8xf32>
    %83 = arith.mulf %69, %81 : vector<1x8xf32>
    %84 = arith.subf %82, %83 : vector<1x8xf32>
    %85 = vector.broadcast %81 : vector<1x8xf32> to vector<72x8xf32>
    %86 = arith.mulf %65, %85 : vector<72x8xf32>
    %87 = vector.broadcast %84 : vector<1x8xf32> to vector<72x8xf32>
    %88 = arith.addf %86, %87 : vector<72x8xf32>
    %cst_39 = arith.constant 0.000000e+00 : f32
    %89 = vector.broadcast %cst_39 : f32 to vector<72x8xf32>
    %90 = arith.maximumf %88, %89 : vector<72x8xf32>
    %91 = vector.shape_cast %90 : vector<72x8xf32> to vector<2x6x6x8xf32>
    %92 = vector.extract_strided_slice %91 {offsets = [0, 0, 0, 0], sizes = [2, 4, 4, 8], strides = [1, 1, 1, 1]} : vector<2x6x6x8xf32> to vector<2x4x4x8xf32>
    %93 = vector.shape_cast %92 : vector<2x4x4x8xf32> to vector<32x8xf32>
    %c0_40 = arith.constant 0 : index
    %c0_41 = arith.constant 0 : index
    %c0_42 = arith.constant 0 : index
    %94 = vector.load %arg5[%c0_40, %c0_41, %c0_42] : memref<9x8x8xf32, #tpu.memory_space<vmem>>, vector<1x8x8xf32>
    %95 = vector.shape_cast %94 : vector<1x8x8xf32> to vector<8x8xf32>
    %cst_43 = arith.constant dense<0.000000e+00> : vector<32x8xf32>
    %96 = tpu.matmul %93, %95, %cst_43 {dimension_numbers = #tpu.dot_dimension_numbers<[1], [0], [0], [1], [0, 0, 1, 1], [], []>} : vector<32x8xf32>, vector<8x8xf32>, vector<32x8xf32> -> vector<32x8xf32>
    %97 = vector.extract_strided_slice %91 {offsets = [0, 0, 1, 0], sizes = [2, 4, 4, 8], strides = [1, 1, 1, 1]} : vector<2x6x6x8xf32> to vector<2x4x4x8xf32>
    %98 = vector.shape_cast %97 : vector<2x4x4x8xf32> to vector<32x8xf32>
    %c1_44 = arith.constant 1 : index
    %c0_45 = arith.constant 0 : index
    %c0_46 = arith.constant 0 : index
    %99 = vector.load %arg5[%c1_44, %c0_45, %c0_46] : memref<9x8x8xf32, #tpu.memory_space<vmem>>, vector<1x8x8xf32>
    %100 = vector.shape_cast %99 : vector<1x8x8xf32> to vector<8x8xf32>
    %cst_47 = arith.constant dense<0.000000e+00> : vector<32x8xf32>
    %101 = tpu.matmul %98, %100, %cst_47 {dimension_numbers = #tpu.dot_dimension_numbers<[1], [0], [0], [1], [0, 0, 1, 1], [], []>} : vector<32x8xf32>, vector<8x8xf32>, vector<32x8xf32> -> vector<32x8xf32>
    %102 = arith.addf %96, %101 : vector<32x8xf32>
    %103 = vector.extract_strided_slice %91 {offsets = [0, 0, 2, 0], sizes = [2, 4, 4, 8], strides = [1, 1, 1, 1]} : vector<2x6x6x8xf32> to vector<2x4x4x8xf32>
    %104 = vector.shape_cast %103 : vector<2x4x4x8xf32> to vector<32x8xf32>
    %c2_48 = arith.constant 2 : index
    %c0_49 = arith.constant 0 : index
    %c0_50 = arith.constant 0 : index
    %105 = vector.load %arg5[%c2_48, %c0_49, %c0_50] : memref<9x8x8xf32, #tpu.memory_space<vmem>>, vector<1x8x8xf32>
    %106 = vector.shape_cast %105 : vector<1x8x8xf32> to vector<8x8xf32>
    %cst_51 = arith.constant dense<0.000000e+00> : vector<32x8xf32>
    %107 = tpu.matmul %104, %106, %cst_51 {dimension_numbers = #tpu.dot_dimension_numbers<[1], [0], [0], [1], [0, 0, 1, 1], [], []>} : vector<32x8xf32>, vector<8x8xf32>, vector<32x8xf32> -> vector<32x8xf32>
    %108 = arith.addf %102, %107 : vector<32x8xf32>
    %109 = vector.extract_strided_slice %91 {offsets = [0, 1, 0, 0], sizes = [2, 4, 4, 8], strides = [1, 1, 1, 1]} : vector<2x6x6x8xf32> to vector<2x4x4x8xf32>
    %110 = vector.shape_cast %109 : vector<2x4x4x8xf32> to vector<32x8xf32>
    %c3_52 = arith.constant 3 : index
    %c0_53 = arith.constant 0 : index
    %c0_54 = arith.constant 0 : index
    %111 = vector.load %arg5[%c3_52, %c0_53, %c0_54] : memref<9x8x8xf32, #tpu.memory_space<vmem>>, vector<1x8x8xf32>
    %112 = vector.shape_cast %111 : vector<1x8x8xf32> to vector<8x8xf32>
    %cst_55 = arith.constant dense<0.000000e+00> : vector<32x8xf32>
    %113 = tpu.matmul %110, %112, %cst_55 {dimension_numbers = #tpu.dot_dimension_numbers<[1], [0], [0], [1], [0, 0, 1, 1], [], []>} : vector<32x8xf32>, vector<8x8xf32>, vector<32x8xf32> -> vector<32x8xf32>
    %114 = arith.addf %108, %113 : vector<32x8xf32>
    %115 = vector.extract_strided_slice %91 {offsets = [0, 1, 1, 0], sizes = [2, 4, 4, 8], strides = [1, 1, 1, 1]} : vector<2x6x6x8xf32> to vector<2x4x4x8xf32>
    %116 = vector.shape_cast %115 : vector<2x4x4x8xf32> to vector<32x8xf32>
    %c4_56 = arith.constant 4 : index
    %c0_57 = arith.constant 0 : index
    %c0_58 = arith.constant 0 : index
    %117 = vector.load %arg5[%c4_56, %c0_57, %c0_58] : memref<9x8x8xf32, #tpu.memory_space<vmem>>, vector<1x8x8xf32>
    %118 = vector.shape_cast %117 : vector<1x8x8xf32> to vector<8x8xf32>
    %cst_59 = arith.constant dense<0.000000e+00> : vector<32x8xf32>
    %119 = tpu.matmul %116, %118, %cst_59 {dimension_numbers = #tpu.dot_dimension_numbers<[1], [0], [0], [1], [0, 0, 1, 1], [], []>} : vector<32x8xf32>, vector<8x8xf32>, vector<32x8xf32> -> vector<32x8xf32>
    %120 = arith.addf %114, %119 : vector<32x8xf32>
    %121 = vector.extract_strided_slice %91 {offsets = [0, 1, 2, 0], sizes = [2, 4, 4, 8], strides = [1, 1, 1, 1]} : vector<2x6x6x8xf32> to vector<2x4x4x8xf32>
    %122 = vector.shape_cast %121 : vector<2x4x4x8xf32> to vector<32x8xf32>
    %c5_60 = arith.constant 5 : index
    %c0_61 = arith.constant 0 : index
    %c0_62 = arith.constant 0 : index
    %123 = vector.load %arg5[%c5_60, %c0_61, %c0_62] : memref<9x8x8xf32, #tpu.memory_space<vmem>>, vector<1x8x8xf32>
    %124 = vector.shape_cast %123 : vector<1x8x8xf32> to vector<8x8xf32>
    %cst_63 = arith.constant dense<0.000000e+00> : vector<32x8xf32>
    %125 = tpu.matmul %122, %124, %cst_63 {dimension_numbers = #tpu.dot_dimension_numbers<[1], [0], [0], [1], [0, 0, 1, 1], [], []>} : vector<32x8xf32>, vector<8x8xf32>, vector<32x8xf32> -> vector<32x8xf32>
    %126 = arith.addf %120, %125 : vector<32x8xf32>
    %127 = vector.extract_strided_slice %91 {offsets = [0, 2, 0, 0], sizes = [2, 4, 4, 8], strides = [1, 1, 1, 1]} : vector<2x6x6x8xf32> to vector<2x4x4x8xf32>
    %128 = vector.shape_cast %127 : vector<2x4x4x8xf32> to vector<32x8xf32>
    %c6_64 = arith.constant 6 : index
    %c0_65 = arith.constant 0 : index
    %c0_66 = arith.constant 0 : index
    %129 = vector.load %arg5[%c6_64, %c0_65, %c0_66] : memref<9x8x8xf32, #tpu.memory_space<vmem>>, vector<1x8x8xf32>
    %130 = vector.shape_cast %129 : vector<1x8x8xf32> to vector<8x8xf32>
    %cst_67 = arith.constant dense<0.000000e+00> : vector<32x8xf32>
    %131 = tpu.matmul %128, %130, %cst_67 {dimension_numbers = #tpu.dot_dimension_numbers<[1], [0], [0], [1], [0, 0, 1, 1], [], []>} : vector<32x8xf32>, vector<8x8xf32>, vector<32x8xf32> -> vector<32x8xf32>
    %132 = arith.addf %126, %131 : vector<32x8xf32>
    %133 = vector.extract_strided_slice %91 {offsets = [0, 2, 1, 0], sizes = [2, 4, 4, 8], strides = [1, 1, 1, 1]} : vector<2x6x6x8xf32> to vector<2x4x4x8xf32>
    %134 = vector.shape_cast %133 : vector<2x4x4x8xf32> to vector<32x8xf32>
    %c7_68 = arith.constant 7 : index
    %c0_69 = arith.constant 0 : index
    %c0_70 = arith.constant 0 : index
    %135 = vector.load %arg5[%c7_68, %c0_69, %c0_70] : memref<9x8x8xf32, #tpu.memory_space<vmem>>, vector<1x8x8xf32>
    %136 = vector.shape_cast %135 : vector<1x8x8xf32> to vector<8x8xf32>
    %cst_71 = arith.constant dense<0.000000e+00> : vector<32x8xf32>
    %137 = tpu.matmul %134, %136, %cst_71 {dimension_numbers = #tpu.dot_dimension_numbers<[1], [0], [0], [1], [0, 0, 1, 1], [], []>} : vector<32x8xf32>, vector<8x8xf32>, vector<32x8xf32> -> vector<32x8xf32>
    %138 = arith.addf %132, %137 : vector<32x8xf32>
    %139 = vector.extract_strided_slice %91 {offsets = [0, 2, 2, 0], sizes = [2, 4, 4, 8], strides = [1, 1, 1, 1]} : vector<2x6x6x8xf32> to vector<2x4x4x8xf32>
    %140 = vector.shape_cast %139 : vector<2x4x4x8xf32> to vector<32x8xf32>
    %c8_72 = arith.constant 8 : index
    %c0_73 = arith.constant 0 : index
    %c0_74 = arith.constant 0 : index
    %141 = vector.load %arg5[%c8_72, %c0_73, %c0_74] : memref<9x8x8xf32, #tpu.memory_space<vmem>>, vector<1x8x8xf32>
    %142 = vector.shape_cast %141 : vector<1x8x8xf32> to vector<8x8xf32>
    %cst_75 = arith.constant dense<0.000000e+00> : vector<32x8xf32>
    %143 = tpu.matmul %140, %142, %cst_75 {dimension_numbers = #tpu.dot_dimension_numbers<[1], [0], [0], [1], [0, 0, 1, 1], [], []>} : vector<32x8xf32>, vector<8x8xf32>, vector<32x8xf32> -> vector<32x8xf32>
    %144 = arith.addf %138, %143 : vector<32x8xf32>
    %cst_76 = arith.constant dense<0.000000e+00> : vector<8xf32>
    %145 = vector.multi_reduction <add>, %144, %cst_76 [0] : vector<32x8xf32> to vector<8xf32>
    %146 = vector.shape_cast %145 : vector<8xf32> to vector<1x8xf32>
    %cst_77 = arith.constant 3.125000e-02 : f32
    %147 = vector.broadcast %cst_77 : f32 to vector<1x8xf32>
    %148 = arith.mulf %146, %147 : vector<1x8xf32>
    %149 = arith.mulf %144, %144 : vector<32x8xf32>
    %cst_78 = arith.constant dense<0.000000e+00> : vector<8xf32>
    %150 = vector.multi_reduction <add>, %149, %cst_78 [0] : vector<32x8xf32> to vector<8xf32>
    %151 = vector.shape_cast %150 : vector<8xf32> to vector<1x8xf32>
    %cst_79 = arith.constant 3.125000e-02 : f32
    %152 = vector.broadcast %cst_79 : f32 to vector<1x8xf32>
    %153 = arith.mulf %151, %152 : vector<1x8xf32>
    %154 = arith.mulf %148, %148 : vector<1x8xf32>
    %155 = arith.subf %153, %154 : vector<1x8xf32>
    %c0_80 = arith.constant 0 : index
    %c0_81 = arith.constant 0 : index
    %156 = vector.load %arg6[%c0_80, %c0_81] : memref<1x8xf32, #tpu.memory_space<vmem>>, vector<1x8xf32>
    %cst_82 = arith.constant 9.99999974E-6 : f32
    %157 = vector.broadcast %cst_82 : f32 to vector<1x8xf32>
    %158 = arith.addf %155, %157 : vector<1x8xf32>
    %159 = math.rsqrt %158 : vector<1x8xf32>
    %160 = arith.mulf %156, %159 : vector<1x8xf32>
    %c0_83 = arith.constant 0 : index
    %c0_84 = arith.constant 0 : index
    %161 = vector.load %arg7[%c0_83, %c0_84] : memref<1x8xf32, #tpu.memory_space<vmem>>, vector<1x8xf32>
    %162 = arith.mulf %148, %160 : vector<1x8xf32>
    %163 = arith.subf %161, %162 : vector<1x8xf32>
    %164 = vector.broadcast %160 : vector<1x8xf32> to vector<32x8xf32>
    %165 = arith.mulf %144, %164 : vector<32x8xf32>
    %166 = vector.broadcast %163 : vector<1x8xf32> to vector<32x8xf32>
    %167 = arith.addf %165, %166 : vector<32x8xf32>
    %cst_85 = arith.constant 0.000000e+00 : f32
    %168 = vector.broadcast %cst_85 : f32 to vector<32x8xf32>
    %169 = arith.maximumf %167, %168 : vector<32x8xf32>
    %c0_86 = arith.constant 0 : index
    %c0_87 = arith.constant 0 : index
    %170 = vector.load %arg8[%c0_86, %c0_87] : memref<32x8xf32, #tpu.memory_space<vmem>>, vector<32x8xf32>
    tpu.vector_store %arg8[%c0_86, %c0_87], %169 {strides = array<i32>} : memref<32x8xf32, #tpu.memory_space<vmem>>, vector<32x8xf32>,
    return
  }
  func.func @transform_0(%arg0: i32) -> (i32, i32, i32, i32) {
    %c0_i32 = arith.constant 0 : i32
    %c0_i32_0 = arith.constant 0 : i32
    %c0_i32_1 = arith.constant 0 : i32
    %c0_i32_2 = arith.constant 0 : i32
    %c0_i32_3 = arith.constant 0 : i32
    return %c0_i32, %c0_i32_0, %c0_i32_1, %c0_i32_2 : i32, i32, i32, i32
  }
  func.func @transform_1(%arg0: i32) -> (i32, i32, i32) {
    %c0_i32 = arith.constant 0 : i32
    %c0_i32_0 = arith.constant 0 : i32
    %c0_i32_1 = arith.constant 0 : i32
    %c0_i32_2 = arith.constant 0 : i32
    return %c0_i32, %c0_i32_0, %c0_i32_1 : i32, i32, i32
  }
  func.func @transform_2(%arg0: i32) -> (i32, i32) {
    %c0_i32 = arith.constant 0 : i32
    %c0_i32_0 = arith.constant 0 : i32
    %c0_i32_1 = arith.constant 0 : i32
    return %c0_i32, %c0_i32_0 : i32, i32
  }
  func.func @transform_3(%arg0: i32) -> (i32, i32) {
    %c0_i32 = arith.constant 0 : i32
    %c0_i32_0 = arith.constant 0 : i32
    %c0_i32_1 = arith.constant 0 : i32
    return %c0_i32, %c0_i32_0 : i32, i32
  }
  func.func @transform_4(%arg0: i32) -> (i32, i32, i32) {
    %c0_i32 = arith.constant 0 : i32
    %c0_i32_0 = arith.constant 0 : i32
    %c0_i32_1 = arith.constant 0 : i32
    %c0_i32_2 = arith.constant 0 : i32
    return %c0_i32, %c0_i32_0, %c0_i32_1 : i32, i32, i32
  }
  func.func @transform_5(%arg0: i32) -> (i32, i32) {
    %c0_i32 = arith.constant 0 : i32
    %c0_i32_0 = arith.constant 0 : i32
    %c0_i32_1 = arith.constant 0 : i32
    return %c0_i32, %c0_i32_0 : i32, i32
  }
  func.func @transform_6(%arg0: i32) -> (i32, i32) {
    %c0_i32 = arith.constant 0 : i32
    %c0_i32_0 = arith.constant 0 : i32
    %c0_i32_1 = arith.constant 0 : i32
    return %c0_i32, %c0_i32_0 : i32, i32
  }
  func.func @transform_7(%arg0: i32) -> (i32, i32) {
    %c0_i32 = arith.constant 0 : i32
    %c0_i32_0 = arith.constant 0 : i32
    %c0_i32_1 = arith.constant 0 : i32
    return %c0_i32, %c0_i32_0 : i32, i32
  }
}

</mosaic_0001>

<bundles_post_ra>
// kernel: downsample_forward.1
= control target key start
LH: loop header
LB: loop body
LE: loop exit
PB: predicated region body
PF: predicated region fallthrough
CT: control target
= control target key end

     0   :  { %vm1791_vm0 = vcmask 1043456   ;;  %v159_v2 = vlaneseq  ;;  %v9330_v3 = vmov 0.0   ;;  %v6376_v11 = vmov 1983009808   ;;  %s9322_s0 = inlined_call_operand.vmem [shape: f32[2,16,16,4], index: 0, kind: input, shape index: {}]   ;;  %s9323_s1 = inlined_call_operand.vmem [shape: f32[9,4,8], index: 1, kind: input, shape index: {}]   ;;  %s9324_s2 = inlined_call_operand.vmem [shape: f32[1,8], index: 2, kind: input, shape index: {}]   ;;  %s9325_s3 = inlined_call_operand.vmem [shape: f32[1,8], index: 3, kind: input, shape index: {}]   ;;  %s9326_s4 = inlined_call_operand.vmem [shape: f32[9,8,8], index: 4, kind: input, shape index: {}]   ;;  %s9327_s5 = inlined_call_operand.vmem [shape: f32[1,8], index: 5, kind: input, shape index: {}]   ;;  %s9328_s6 = inlined_call_operand.vmem [shape: f32[1,8], index: 6, kind: input, shape index: {}]   ;;  %s9329_s7 = inlined_call_operand.hbm [shape: f32[32,8], index: 7, kind: output, shape index: {}]  }
   0x1   :  { %v5581_v0 = vld [vmem:[%s9323_s1 + $0xc] sm:$0xf]  ;;  %v5549_v1 = vld [vmem:[%s9323_s1 + $0x4] sm:$0xf]  ;;  %5925 = vmatprep.subr.mxu0 %v9330_v3  ;;  %5838 = vmatprep.subr.mxu1 %v9330_v3  ;;  %v29_v6 = vld [vmem:[%s9322_s0 + $0x10] sm:$0xff]  ;;  %v157_v12 = vunpack.c.l.s4 %v6376_v11  ;;  %vm6377_vm1 = vmmov 0  }
   0x2   :  { %v27_v4 = vld [vmem:[%s9322_s0] sm:$0xff]  ;;  %v28_v5 = vld [vmem:[%s9322_s0 + $0x8] sm:$0xff]  ;;  %5926 = vmatpush3.msk.msra.mxu0 %vm1791_vm0, %v5581_v0  ;;  %5839 = vmatpush3.msk.msra.mxu1 %vm1791_vm0, %v5549_v1  ;;  %v30_v7 = vld [vmem:[%s9322_s0 + $0x18] sm:$0xff]  ;;  %v160_v13 = vshrl.u32 %v159_v2, 7  ;;  %vm1702_vm2 = vcmask 1041409   ;;  %vm1704_vm3 = vcmask 1042434  }
   0x3   :  { %v31_v8 = vld [vmem:[%s9322_s0 + $0x20] sm:$0xff]  ;;  %v33_v9 = vld [vmem:[%s9322_s0 + $0x30] sm:$0xff]  ;;  %v91_v10 = vmax.f32 %v27_v4, %v29_v6  ;;  %5840 = vmatprep.mubr.msk.f32.mxu1 %vm6377_vm1, %v9330_v3  ;;  %5927 = vmatprep.mubr.msk.f32.mxu0 %vm6377_vm1, %v9330_v3  ;;  %v92_v14 = vmax.f32 %v28_v5, %v30_v7  ;;  %v32_v16 = vld [vmem:[%s9322_s0 + $0x28] sm:$0xff]  ;;  %v158_v19 = vunpack.c.0.s8 %v157_v12  ;;  %vm1706_vm4 = vcmask 1043459  }
   0x4   :  { %v93_v15 = vmax.f32 %v31_v8, %v33_v9  ;;  %v34_v17 = vld [vmem:[%s9322_s0 + $0x38] sm:$0xff]  ;;  %5954 = vmatprep.subr.mxu0 %v9330_v3  ;;  %v35_v20 = vld [vmem:[%s9322_s0 + $0x40] sm:$0xff]  ;;  %v37_v21 = vld [vmem:[%s9322_s0 + $0x50] sm:$0xff]  ;;  %5867 = vmatprep.subr.mxu1 %v9330_v3  ;;  %v6471_v26 = vsub.s32 0, %v160_v13  ;;  %vm1708_vm5 = vcmask 1044484   ;;  %vm1710_vm6 = vcmask 1045509  }
   0x5   :  { %v155_v18 = vcombine.high %v91_v10, %v91_v10  ;;  %v172_v22 = vcombine.high %v92_v14, %v92_v14  ;;  %v6467_v24 = vsub.s32 %v158_v19, %v160_v13  ;;  %v6469_v25 = vmax.f32 %v32_v16, %v34_v17  ;;  %v36_v48 = vld [vmem:[%s9322_s0 + $0x48] sm:$0xff]  ;;  %v38_v49 = vld [vmem:[%s9322_s0 + $0x58] sm:$0xff] }
   0x6   :  { %v189_v23 = vcombine.high %v93_v15, %v93_v15  ;;  %v95_v27 = vmax.f32 %v35_v20, %v37_v21  ;;  %vm1712_vm7 = vcmask 1046534   ;;  %vm1714_vm8 = vcmask 1047559   ;;  %v41_v20 = vld [vmem:[%s9322_s0 + $0x70] sm:$0xff] }
   0x7   :  { %9546 = vst [vmem:[#allocation5_spill] sm:$0xff] %v6467_v24  ;;  %v6474_v28 = vrot.slane %v91_v10, %v6467_v24  ;;  %v169_v29 = vrot.slane %v155_v18, %v6467_v24  ;;  %v179_v30 = vrot.slane %v92_v14, %v6467_v24  ;;  %v6479_v31 = vrot.slane %v172_v22, %v6467_v24 }
   0x8   :  { %v196_v32 = vrot.slane %v93_v15, %v6467_v24  ;;  %v203_v33 = vrot.slane %v189_v23, %v6467_v24  ;;  %v213_v34 = vrot.slane %v6469_v25, %v6467_v24  ;;  %v223_v35 = vcombine.high %v95_v27, %v95_v27  ;;  %v39_v15 = vld [vmem:[%s9322_s0 + $0x60] sm:$0xff] }
   0x9   :  { %9547 = vst [vmem:[#allocation6_spill] sm:$0xff] %v6479_v31  ;;  %v170_v36 = vcombine.high %v6474_v28, %v6474_v28  ;;  %v171_v37 = vcombine.high %v169_v29, %v169_v29  ;;  %v187_v38 = vcombine.high %v179_v30, %v179_v30  ;;  %v5423_v39 = vrot.slane %v169_v29, 9 }
   0xa   :  { %v204_v40 = vcombine.high %v196_v32, %v196_v32  ;;  %v205_v41 = vcombine.high %v203_v33, %v203_v33  ;;  %v5425_v42 = vrot.slane %v179_v30, 9  ;;  %v5427_v43 = vrot.slane %v6479_v31, 9 }
   0xb   :  { %v5422_v44 = vrot.slane %v170_v36, 9  ;;  %v5424_v45 = vrot.slane %v171_v37, 9  ;;  %v5426_v46 = vrot.slane %v187_v38, 9  ;;  %v5431_v47 = vrot.slane %v203_v33, 9 }
   0xc   :  { %v5430_v50 = vrot.slane %v204_v40, 9  ;;  %v1213_v51 = vmax.f32 %v169_v29, %v5423_v39  ;;  %v1215_v52 = vmax.f32 %v179_v30, %v5425_v42  ;;  %v1217_v53 = vmax.f32 %v6479_v31, %v5427_v43 }
   0xd   :  { %v1212_v54 = vmax.f32 %v170_v36, %v5422_v44  ;;  %v1214_v55 = vmax.f32 %v171_v37, %v5424_v45  ;;  %v1216_v56 = vmax.f32 %v187_v38, %v5426_v46  ;;  %v1221_v57 = vmax.f32 %v203_v33, %v5431_v47 }
   0xe   :  { %vm1772_vm9 = vcmask 31744   ;;  %v1220_v58 = vmax.f32 %v204_v40, %v5430_v50  ;;  %v6496_v59 = vrot.slane %v1213_v51, %v6471_v26  ;;  %v6499_v60 = vrot.slane %v1215_v52, %v6471_v26 }
   0xf   :  { %v6501_v61 = vmax.f32 %v36_v48, %v38_v49  ;;  %v6504_v62 = vrot.slane %v1212_v54, %v6471_v26  ;;  %v6507_v63 = vrot.slane %v1214_v55, %v6471_v26  ;;  %v6510_v0 = vrot.slane %v1216_v56, %v6471_v26 }
  0x10   :  { %9548 = vst [vmem:[#allocation7_spill] sm:$0xff] %v6496_v59  ;;  %9549 = vst [vmem:[#allocation8_spill] sm:$0xff] %v6499_v60  ;;  %v6513_v1 = vrot.slane %v1217_v53, %v6471_v26  ;;  %v6516_v2 = vrot.slane %v1221_v57, %v6471_v26  ;;  %v221_v4 = vcombine.high %v213_v34, %v213_v34  ;;  %v5429_v8 = vrot.slane %v196_v32, 9 }
  0x11   :  { %9550 = vst [vmem:[#allocation9_spill] sm:$0xff] %v6504_v62  ;;  %9551 = vst [vmem:[#allocation10_spill] sm:$0xff] %v6507_v63  ;;  %v230_v5 = vrot.slane %v95_v27, %v6467_v24  ;;  %v237_v6 = vrot.slane %v223_v35, %v6467_v24  ;;  %v1703_v7 = vsel %vm1702_vm2, %v6496_v59, %v6504_v62  ;;  %v5432_v9 = vrot.slane %v205_v41, 9 }
  0x12   :  { %9552 = vst [vmem:[#allocation11_spill] sm:$0xff] %v6510_v0  ;;  %9553 = vst [vmem:[#allocation12_spill] sm:$0xff] %v6513_v1  ;;  %v5433_v10 = vrot.slane %v213_v34, 9  ;;  %v6524_v11 = vrot.slane %v1220_v58, %v6471_v26  ;;  %v1705_v12 = vsel %vm1704_vm3, %v6507_v63, %v1703_v7  ;;  %v5434_v17 = vrot.slane %v221_v4, 9 }
  0x13   :  { %9554 = vst [vmem:[#allocation13_spill] sm:$0xff] %v6516_v2  ;;  %v238_v13 = vcombine.high %v230_v5, %v230_v5  ;;  %v239_v14 = vcombine.high %v237_v6, %v237_v6  ;;  %v1707_v16 = vsel %vm1706_vm4, %v6499_v60, %v1705_v12  ;;  %v5437_v18 = vrot.slane %v230_v5, 9 }
  0x14   :  { %9555 = vst [vmem:[#allocation14_spill] sm:$0xff] %v6524_v11  ;;  %v5439_v19 = vrot.slane %v237_v6, 9 }
  0x15   :  { %12 = vsyncpa [#allocation3], 0  ;;  %v1709_v21 = vsel %vm1708_vm5, %v6510_v0, %v1707_v16  ;;  %v5438_v22 = vrot.slane %v238_v13, 9  ;;  %v5440_v23 = vrot.slane %v239_v14, 9  ;;  %v1219_v27 = vmax.f32 %v196_v32, %v5429_v8  ;;  %v40_v36 = vld [vmem:[%s9322_s0 + $0x68] sm:$0xff]  ;;  %v42_v37 = vld [vmem:[%s9322_s0 + $0x78] sm:$0xff] }
  0x16   :  { %v1711_v29 = vsel %vm1710_vm6, %v6513_v1, %v1709_v21  ;;  %v1222_v30 = vmax.f32 %v205_v41, %v5432_v9  ;;  %v1223_v33 = vmax.f32 %v213_v34, %v5433_v10  ;;  %v1224_v35 = vmax.f32 %v221_v4, %v5434_v17  ;;  %v1339_v44 = vld [vmem:[%s9323_s1] sm:$0xf] }
  0x17   :  { %v1713_v38 = vsel %vm1712_vm7, %v6524_v11, %v1711_v29  ;;  %v1228_v39 = vmax.f32 %v238_v13, %v5438_v22  ;;  %v1229_v40 = vmax.f32 %v237_v6, %v5439_v19  ;;  %v97_v32 = vmax.f32 %v39_v15, %v41_v20 }
  0x18   :  { %v1715_v42 = vsel %vm1714_vm8, %v6516_v2, %v1713_v38  ;;  %v1227_v41 = vmax.f32 %v230_v5, %v5437_v18  ;;  %v1230_v34 = vmax.f32 %v239_v14, %v5440_v23  ;;  %v6551_v43 = vrot.slane %v1223_v33, %v6471_v26  ;;  %v5592_v18 = vld [vmem:[%s9323_s1 + $0x10] sm:$0xf] }
  0x19   :  { %5841 = vmatmul.mubr.msk.f32.vlgmr.msra.gmra.mrb[0].mxu1 %vm1772_vm9, %v1715_v42  ;;  %v6558_v45 = vrot.slane %v1222_v30, %v6471_v26  ;;  %v6561_v46 = vrot.slane %v1224_v35, %v6471_v26  ;;  %v6564_v47 = vrot.slane %v1219_v27, %v6471_v26  ;;  %v6566_v48 = vmax.f32 %v40_v36, %v42_v37 }
  0x1a   :  { %9556 = vst [vmem:[#allocation15_spill] sm:$0xff] %v6551_v43  ;;  %v6569_v49 = vrot.slane %v1228_v39, %v6471_v26  ;;  %v6572_v50 = vrot.slane %v1229_v40, %v6471_v26  ;;  %5843 = vmatprep.mubr.msk.f32.mxu1 %vm6377_vm1, %v9330_v3  ;;  %v206_v51 = vcombine.high %v6469_v25, %v6469_v25  ;;  %vm3792_vm10 = vcmask 64512  }
  0x1b   :  { %9557 = vst [vmem:[#allocation16_spill] sm:$0xff] %v6558_v45  ;;  %9558 = vst [vmem:[#allocation17_spill] sm:$0xff] %v6561_v46  ;;  %v240_v52 = vcombine.high %v6501_v61, %v6501_v61  ;;  %v2486_v53 = vsel %vm1702_vm2, %v6524_v11, %v6564_v47  ;;  %v247_v54 = vrot.slane %v6501_v61, %v6467_v24  ;;  %5868 = vmatpush3.msk.msra.mxu1 %vm1791_vm0, %v1339_v44  ;;  %vm4061_vm11 = vcmask 1040384  }
  0x1c   :  { %9559 = vst [vmem:[#allocation18_spill] sm:$0xff] %v6564_v47  ;;  %9560 = vst [vmem:[#allocation19_spill] sm:$0xff] %v6569_v49  ;;  %v1716_v55 = vsel %vm1702_vm2, %v6551_v43, %v6558_v45  ;;  %v257_v56 = vcombine.high %v97_v32, %v97_v32  ;;  %v6590_v57 = vrot.slane %v1230_v34, %v6471_v26  ;;  %5896 = vmatprep.subr.mxu1 %v9330_v3 }
  0x1d   :  { %9561 = vst [vmem:[#allocation20_spill] sm:$0xff] %v6572_v50  ;;  %v6593_v25 = vrot.slane %v1227_v41, %v6471_v26  ;;  %v2487_v58 = vsel %vm1704_vm3, %v6516_v2, %v2486_v53  ;;  %v6598_v4 = vrot.slane %v206_v51, %v6467_v24  ;;  %v255_v5 = vcombine.high %v247_v54, %v247_v54  ;;  %vm8815_vm12 = vmor %vm4061_vm11, %vm1704_vm3 }
  0x1e   :  { %v2488_v61 = vsel %vm1706_vm4, %v6558_v45, %v2487_v58  ;;  %v5441_v6 = vrot.slane %v247_v54, 9  ;;  %v1717_v7 = vsel %vm1704_vm3, %v6561_v46, %v1716_v55  ;;  %v6609_v10 = vrot.slane %v240_v52, %v6467_v24  ;;  %vm4063_vm13 = vmor %vm8815_vm12, %vm1708_vm5 }
  0x1f   :  { %9562 = vst [vmem:[#allocation21_spill] sm:$0xff] %v6593_v25  ;;  %9563 = vst [vmem:[#allocation22_spill] sm:$0xff] %v6598_v4  ;;  %v2489_v8 = vsel %vm1708_vm5, %v6551_v43, %v2488_v61  ;;  %v5435_v9 = vrot.slane %v6598_v4, 9  ;;  %v264_v12 = vrot.slane %v97_v32, %v6467_v24  ;;  %v271_v15 = vrot.slane %v257_v56, %v6467_v24  ;;  %v43_v61 = vld [vmem:[%s9322_s0 + $0x80] sm:$0xff] }
  0x20   :  { %9564 = vst [vmem:[#allocation23_spill] sm:$0xff] %v6609_v10  ;;  %v2490_v13 = vsel %vm1710_vm6, %v6561_v46, %v2489_v8  ;;  %v1231_v14 = vmax.f32 %v247_v54, %v5441_v6  ;;  %v5442_v16 = vrot.slane %v255_v5, 9  ;;  %v5443_v21 = vrot.slane %v6609_v10, 9  ;;  %vm8863_vm14 = vmor %vm4063_vm13, %vm1712_vm7 }
  0x21   :  { %v2491_v17 = vsel %vm1712_vm7, %v6593_v25, %v2490_v13  ;;  %v1225_v19 = vmax.f32 %v6598_v4, %v5435_v9  ;;  %v272_v20 = vcombine.high %v264_v12, %v264_v12  ;;  %v273_v27 = vcombine.high %v271_v15, %v271_v15 }
  0x22   :  { %v2492_v22 = vsel %vm1714_vm8, %v6569_v49, %v2491_v17  ;;  %v6625_v23 = vrot.slane %v1231_v14, %v6471_v26  ;;  %v5445_v29 = vrot.slane %v264_v12, 9  ;;  %v5447_v35 = vrot.slane %v271_v15, 9 }
  0x23   :  { %5928 = vmatmul.mubr.msk.f32.vlgmr.msra.gmra.mrb[0].mxu0 %vm1772_vm9, %v2492_v22  ;;  %v6629_v30 = vrot.slane %v1225_v19, %v6471_v26  ;;  %v5446_v33 = vrot.slane %v272_v20, 9  ;;  %v1232_v36 = vmax.f32 %v255_v5, %v5442_v16  ;;  %v5448_v37 = vrot.slane %v273_v27, 9  ;;  %v45_v5 = vld [vmem:[%s9322_s0 + $0x90] sm:$0xff]  ;;  %v46_v16 = vld [vmem:[%s9322_s0 + $0x98] sm:$0xff] }
  0x24   :  { %9565 = vst [vmem:[#allocation24_spill] sm:$0xff] %v6625_v23  ;;  %5955 = vmatpush3.msk.msra.mxu0 %vm1791_vm0, %v5592_v18  ;;  %5930 = vmatprep.mubr.msk.f32.mxu0 %vm6377_vm1, %v9330_v3  ;;  %v1233_v38 = vmax.f32 %v6609_v10, %v5443_v21  ;;  %v1235_v39 = vmax.f32 %v264_v12, %v5445_v29  ;;  %v47_v29 = vld [vmem:[%s9322_s0 + $0xa0] sm:$0xff] }
  0x25   :  { %9566 = vst [vmem:[#allocation25_spill] sm:$0xff] %v6629_v30  ;;  %v2493_v40 = vsel %vm1702_vm2, %v6590_v57, %v6572_v50  ;;  %v1718_v32 = vsel %vm1706_vm4, %v6629_v30, %v1717_v7  ;;  %v1236_v42 = vmax.f32 %v272_v20, %v5446_v33  ;;  %v1237_v41 = vmax.f32 %v271_v15, %v5447_v35  ;;  %v44_v15 = vld [vmem:[%s9322_s0 + $0x88] sm:$0xff]  ;;  %v49_v33 = vld [vmem:[%s9322_s0 + $0xb0] sm:$0xff] }
  0x26   :  { %v6641_v34 = vrot.slane %v1232_v36, %v6471_v26  ;;  %5983 = vmatprep.subr.mxu0 %v9330_v3  ;;  %v1719_v44 = vsel %vm1708_vm5, %v6569_v49, %v1718_v32  ;;  %v1238_v51 = vmax.f32 %v273_v27, %v5448_v37  ;;  %v6647_v52 = vrot.slane %v1233_v38, %v6471_v26 }
  0x27   :  { %v6650_v53 = vrot.slane %v1235_v39, %v6471_v26  ;;  %v1720_v54 = vsel %vm1710_vm6, %v6572_v50, %v1719_v44  ;;  %v6655_v55 = vrot.slane %v1236_v42, %v6471_v26  ;;  %v6658_v56 = vrot.slane %v1237_v41, %v6471_v26 }
  0x28   :  { %9567 = vst [vmem:[#allocation26_spill] sm:$0xff] %v6641_v34  ;;  %9568 = vst [vmem:[#allocation27_spill] sm:$0xff] %v6647_v52  ;;  %v2494_v58 = vsel %vm1704_vm3, %v6625_v23, %v2493_v40  ;;  %v1721_v6 = vsel %vm1712_vm7, %v6590_v57, %v1720_v54  ;;  %v6671_v7 = vrot.slane %v1238_v51, %v6471_v26 }
  0x29   :  { %9569 = vst [vmem:[#allocation28_spill] sm:$0xff] %v6650_v53  ;;  %9570 = vst [vmem:[#allocation29_spill] sm:$0xff] %v6655_v55  ;;  %v6675_v8 = vsel %vm1706_vm4, %v6641_v34, %v2494_v58  ;;  %v274_v9 = vcombine.high %v6566_v48, %v6566_v48  ;;  %v1722_v12 = vsel %vm1714_vm8, %v6625_v23, %v1721_v6 }
  0x2a   :  { %9571 = vst [vmem:[#allocation30_spill] sm:$0xff] %v6658_v56  ;;  %9572 = vst [vmem:[#allocation31_spill] sm:$0xff] %v6671_v7  ;;  %v2496_v13 = vsel %vm1708_vm5, %v6650_v53, %v6675_v8  ;;  %v281_v14 = vrot.slane %v6566_v48, %v6467_v24  ;;  %5844 = vmatmul.mubr.msk.f32.gmra.mrb[2].mxu1 %vm1772_vm9, %v1722_v12  ;;  %v1723_v48 = vsel %vm1702_vm2, %v6647_v52, %v6641_v34 }
  0x2b   :  { %9573 = vst [vmem:[#allocation32_spill] sm:$0xff] %v6675_v8  ;;  %v2497_v17 = vsel %vm1710_vm6, %v6655_v55, %v2496_v13  ;;  %v6696_v18 = vrot.slane %v274_v9, %v6467_v24  ;;  %v99_v19 = vmax.f32 %v43_v61, %v45_v5  ;;  %5846 = vmatprep.mubr.msk.f32.mxu1 %vm6377_vm1, %v9330_v3  ;;  %v9586_v8 = vmov 0.0  }
  0x2c   :  { %v2498_v20 = vsel %vm1712_vm7, %v6658_v56, %v2497_v17  ;;  %v289_v21 = vcombine.high %v281_v14, %v281_v14  ;;  %v5449_v22 = vrot.slane %v281_v14, 9  ;;  %v1724_v27 = vsel %vm1704_vm3, %v6655_v55, %v1723_v48 }
  0x2d   :  { %9574 = vst [vmem:[#allocation33_spill] sm:$0xff] %v6696_v18  ;;  %v2499_v35 = vsel %vm1714_vm8, %v6671_v7, %v2498_v20  ;;  %v5451_v36 = vrot.slane %v6696_v18, 9  ;;  %v1725_v37 = vsel %vm1706_vm4, %v6658_v56, %v1724_v27  ;;  %v100_v38 = vmax.f32 %v44_v15, %v46_v16 }
  0x2e   :  { %5931 = vmatmul.mubr.msk.f32.gmra.mrb[2].mxu0 %vm1772_vm9, %v2499_v35  ;;  %v5450_v39 = vrot.slane %v289_v21, 9  ;;  %v1239_v40 = vmax.f32 %v281_v14, %v5449_v22  ;;  %v1726_v32 = vsel %vm1708_vm5, %v6671_v7, %v1725_v37  ;;  %v291_v42 = vcombine.high %v99_v19, %v99_v19 }
  0x2f   :  { %5933 = vmatprep.mubr.msk.f32.mxu0 %vm6377_vm1, %v9330_v3  ;;  %v1241_v41 = vmax.f32 %v6696_v18, %v5451_v36  ;;  %v298_v44 = vrot.slane %v99_v19, %v6467_v24  ;;  %v315_v51 = vrot.slane %v100_v38, %v6467_v24  ;;  %v101_v54 = vmax.f32 %v47_v29, %v49_v33 }
  0x30   :  { %v1240_v58 = vmax.f32 %v289_v21, %v5450_v39  ;;  %v6727_v61 = vrot.slane %v1239_v40, %v6471_v26  ;;  %v305_v5 = vrot.slane %v291_v42, %v6467_v24  ;;  %v308_v6 = vcombine.high %v100_v38, %v100_v38 }
  0x31   :  { %v6731_v9 = vrot.slane %v1241_v41, %v6471_v26  ;;  %v306_v12 = vcombine.high %v298_v44, %v298_v44  ;;  %v323_v13 = vcombine.high %v315_v51, %v315_v51  ;;  %v5453_v14 = vrot.slane %v298_v44, 9 }
  0x32   :  { %9575 = vst [vmem:[#allocation34_spill] sm:$0xff] %v6727_v61  ;;  %v6734_v15 = vrot.slane %v1240_v58, %v6471_v26  ;;  %v1727_v16 = vsel %vm1710_vm6, %v6727_v61, %v1726_v32  ;;  %v307_v17 = vcombine.high %v305_v5, %v305_v5  ;;  %v5455_v48 = vrot.slane %v305_v5, 9 }
  0x33   :  { %9576 = vst [vmem:[#allocation35_spill] sm:$0xff] %v6731_v9  ;;  %v5454_v19 = vrot.slane %v306_v12, 9  ;;  %v5457_v20 = vrot.slane %v315_v51, 9  ;;  %v5458_v21 = vrot.slane %v323_v13, 9  ;;  %v1243_v22 = vmax.f32 %v298_v44, %v5453_v14  ;;  %v48_v44 = vld [vmem:[%s9322_s0 + $0xa8] sm:$0xff] }
  0x34   :  { %v1728_v27 = vsel %vm1712_vm7, %v6734_v15, %v1727_v16  ;;  %v5456_v29 = vrot.slane %v307_v17, 9  ;;  %v1245_v33 = vmax.f32 %v305_v5, %v5455_v48  ;;  %v6743_v35 = vsel %vm1702_vm2, %v6734_v15, %v6727_v61 }
  0x35   :  { %9577 = vst [vmem:[#allocation36_spill] sm:$0xff] %v6743_v35  ;;  %v1729_v36 = vsel %vm1714_vm8, %v6731_v9, %v1728_v27  ;;  %v1244_v37 = vmax.f32 %v306_v12, %v5454_v19  ;;  %v1247_v38 = vmax.f32 %v315_v51, %v5457_v20  ;;  %v1248_v39 = vmax.f32 %v323_v13, %v5458_v21  ;;  %v50_v51 = vld [vmem:[%s9322_s0 + $0xb8] sm:$0xff] }
  0x36   :  { %5847 = vmatmul.mubr.msk.f32.gmra.mrb[4].mxu1 %vm1772_vm9, %v1729_v36  ;;  %v1246_v40 = vmax.f32 %v307_v17, %v5456_v29  ;;  %v6749_v32 = vrot.slane %v1245_v33, %v6471_v26  ;;  %v6752_v42 = vrot.slane %v1243_v22, %v6471_v26  ;;  %v6755_v41 = vrot.slane %v308_v6, %v6467_v24  ;;  %v51_v33 = vld [vmem:[%s9322_s0 + $0xc0] sm:$0xff]  ;;  %v53_v36 = vld [vmem:[%s9322_s0 + $0xd0] sm:$0xff] }
  0x37   :  { %v6764_v58 = vrot.slane %v1244_v37, %v6471_v26  ;;  %v6767_v5 = vrot.slane %v1247_v38, %v6471_v26  ;;  %v6770_v12 = vrot.slane %v1248_v39, %v6471_v26  ;;  %5849 = vmatprep.mubr.msk.f32.mxu1 %vm6377_vm1, %v9330_v3  ;;  %v325_v6 = vcombine.high %v101_v54, %v101_v54 }
  0x38   :  { %9578 = vst [vmem:[#allocation37_spill] sm:$0xff] %v6749_v32  ;;  %9579 = vst [vmem:[#allocation38_spill] sm:$0xff] %v6752_v42  ;;  %v6775_v13 = vrot.slane %v1246_v40, %v6471_v26  ;;  %v2501_v14 = vsel %vm1704_vm3, %v6752_v42, %v6743_v35  ;;  %v332_v16 = vrot.slane %v101_v54, %v6467_v24  ;;  %v5459_v17 = vrot.slane %v6755_v41, 9 }
  0x39   :  { %9580 = vst [vmem:[#allocation39_spill] sm:$0xff] %v6755_v41  ;;  %9581 = vst [vmem:[#allocation40_spill] sm:$0xff] %v6764_v58  ;;  %v2502_v48 = vsel %vm1706_vm4, %v6764_v58, %v2501_v14  ;;  %v339_v19 = vrot.slane %v325_v6, %v6467_v24  ;;  %v1730_v20 = vsel %vm1702_vm2, %v6749_v32, %v6764_v58 }
  0x3a   :  { %9582 = vst [vmem:[#allocation41_spill] sm:$0xff] %v6767_v5  ;;  %9583 = vst [vmem:[#allocation42_spill] sm:$0xff] %v6770_v12  ;;  %v6788_v21 = vmax.f32 %v48_v44, %v50_v51  ;;  %v2503_v22 = vsel %vm1708_vm5, %v6749_v32, %v2502_v48  ;;  %v340_v27 = vcombine.high %v332_v16, %v332_v16 }
  0x3b   :  { %9584 = vst [vmem:[#allocation43_spill] sm:$0xff] %v6775_v13  ;;  %v1249_v29 = vmax.f32 %v6755_v41, %v5459_v17  ;;  %v1731_v54 = vsel %vm1704_vm3, %v6775_v13, %v1730_v20  ;;  %v2504_v37 = vsel %vm1710_vm6, %v6775_v13, %v2503_v22  ;;  %v341_v38 = vcombine.high %v339_v19, %v339_v19 }
  0x3c   :  { %v5463_v39 = vrot.slane %v339_v19, 9  ;;  %v1732_v40 = vsel %vm1706_vm4, %v6767_v5, %v1731_v54  ;;  %v2505_v44 = vsel %vm1712_vm7, %v6767_v5, %v2504_v37  ;;  %v5462_v51 = vrot.slane %v340_v27, 9 }
  0x3d   :  { %v6808_v6 = vrot.slane %v1249_v29, %v6471_v26  ;;  %v1733_v14 = vsel %vm1708_vm5, %v6770_v12, %v1732_v40  ;;  %v2506_v17 = vsel %vm1714_vm8, %v6770_v12, %v2505_v44  ;;  %v5464_v48 = vrot.slane %v341_v38, 9 }
  0x3e   :  { %v1253_v20 = vmax.f32 %v339_v19, %v5463_v39  ;;  %v103_v22 = vmax.f32 %v51_v33, %v53_v36  ;;  %5934 = vmatmul.mubr.msk.f32.gmra.mrb[4].mxu0 %vm1772_vm9, %v2506_v17  ;;  %v1252_v3 = vmax.f32 %v340_v27, %v5462_v51  ;;  %v349_v37 = vrot.slane %v6788_v21, %v6467_v24 }
  0x3f   :  { %9585 = vst [vmem:[#allocation44_spill] sm:$0xff] %v6808_v6  ;;  %v1734_v54 = vsel %vm1710_vm6, %v6808_v6, %v1733_v14  ;;  %v5461_v29 = vrot.slane %v332_v16, 9  ;;  %5936 = vmatprep.mubr.msk.f32.mxu0 %vm6377_vm1, %v9586_v8  ;;  %v1254_v40 = vmax.f32 %v341_v38, %v5464_v48 }
  0x40   :  { %v6822_v35 = vrot.slane %v1253_v20, %v6471_v26  ;;  %v359_v44 = vcombine.high %v103_v22, %v103_v22  ;;  %v366_v19 = vrot.slane %v103_v22, %v6467_v24  ;;  %v6826_v33 = vrot.slane %v1252_v3, %v6471_v26 }
  0x41   :  { %v357_v27 = vcombine.high %v349_v37, %v349_v37  ;;  %v5465_v36 = vrot.slane %v349_v37, 9  ;;  %v1251_v39 = vmax.f32 %v332_v16, %v5461_v29  ;;  %v6830_v1 = vrot.slane %v1254_v40, %v6471_v26  ;;  %v61_v40 = vld [vmem:[%s9322_s0 + $0x110] sm:$0xff] }
  0x42   :  { %9587 = vst [vmem:[#allocation45_spill] sm:$0xff] %v6822_v35  ;;  %9588 = vst [vmem:[#allocation46_spill] sm:$0xff] %v6826_v33  ;;  %v373_v51 = vrot.slane %v359_v44, %v6467_v24  ;;  %v374_v14 = vcombine.high %v366_v19, %v366_v19  ;;  %v5469_v17 = vrot.slane %v366_v19, 9  ;;  %v1735_v38 = vsel %vm1712_vm7, %v6826_v33, %v1734_v54  ;;  %v59_v44 = vld [vmem:[%s9322_s0 + $0x100] sm:$0xff] }
  0x43   :  { %9589 = vst [vmem:[#allocation47_spill] sm:$0xff] %v6830_v1  ;;  %v5466_v48 = vrot.slane %v357_v27, 9  ;;  %v1255_v20 = vmax.f32 %v349_v37, %v5465_v36  ;;  %v6835_v22 = vrot.slane %v1251_v39, %v6471_v26  ;;  %v1736_v3 = vsel %vm1714_vm8, %v6822_v35, %v1735_v38 }
  0x44   :  { %v375_v31 = vcombine.high %v373_v51, %v373_v51  ;;  %v5470_v16 = vrot.slane %v374_v14, 9  ;;  %v5471_v29 = vrot.slane %v373_v51, 9  ;;  %5850 = vmatmul.mubr.msk.f32.gmra.mrb[6].mxu1 %vm1772_vm9, %v1736_v3  ;;  %v1259_v37 = vmax.f32 %v366_v19, %v5469_v17  ;;  %v60_v19 = vld [vmem:[%s9322_s0 + $0x108] sm:$0xff] }
  0x45   :  { %9590 = vst [vmem:[#allocation48_spill] sm:$0xff] %v6835_v22  ;;  %v1256_v54 = vmax.f32 %v357_v27, %v5466_v48  ;;  %v6847_v36 = vrot.slane %v1255_v20, %v6471_v26  ;;  %v2507_v39 = vsel %vm1702_vm2, %v6826_v33, %v6835_v22  ;;  %v3170_v38 = vsel %vm1702_vm2, %v6569_v49, %v6593_v25  ;;  %v62_v27 = vld [vmem:[%s9322_s0 + $0x118] sm:$0xff] }
  0x46   :  { %v5472_v41 = vrot.slane %v375_v31, 9  ;;  %v1260_v18 = vmax.f32 %v374_v14, %v5470_v16  ;;  %v2508_v10 = vsel %vm1704_vm3, %v6822_v35, %v2507_v39  ;;  %5852 = vmatprep.mubr.msk.f32.mxu1 %vm6377_vm1, %v9586_v8  ;;  %v6869_v48 = vrot.slane %v1259_v37, %v6471_v26 }
  0x47   :  { %9591 = vst [vmem:[#allocation49_spill] sm:$0xff] %v6847_v36  ;;  %v6866_v17 = vrot.slane %v1256_v54, %v6471_v26  ;;  %v2509_v14 = vsel %vm1706_vm4, %v6830_v1, %v2508_v10  ;;  %v107_v20 = vmax.f32 %v59_v44, %v61_v40  ;;  %v6876_v3 = vsel %vm1702_vm2, %v6516_v2, %v6524_v11 }
  0x48   :  { %9593 = vst [vmem:[#allocation51_spill] sm:$0xff] %v6869_v48  ;;  %v1261_v16 = vmax.f32 %v373_v51, %v5471_v29  ;;  %v6879_v39 = vrot.slane %v1260_v18, %v6471_v26  ;;  %v2510_v54 = vsel %vm1708_vm5, %v6847_v36, %v2509_v14  ;;  %v108_v4 = vmax.f32 %v60_v19, %v62_v27  ;;  %v52_v29 = vld [vmem:[%s9322_s0 + $0xc8] sm:$0xff]  ;;  %v63_v27 = vld [vmem:[%s9322_s0 + $0x120] sm:$0xff]  ;;  %v65_v14 = vld [vmem:[%s9322_s0 + $0x130] sm:$0xff] }
  0x49   :  { %9592 = vst [vmem:[#allocation50_spill] sm:$0xff] %v6866_v17  ;;  %v2511_v37 = vsel %vm1710_vm6, %v6866_v17, %v2510_v54  ;;  %v342_v10 = vcombine.high %v6788_v21, %v6788_v21  ;;  %v427_v44 = vcombine.high %v107_v20, %v107_v20  ;;  %v6889_v40 = vsel %vm1704_vm3, %v6572_v50, %v3170_v38  ;;  %v54_v21 = vld [vmem:[%s9322_s0 + $0xd8] sm:$0xff] }
  0x4a   :  { %9594 = vst [vmem:[#allocation52_spill] sm:$0xff] %v6879_v39  ;;  %9595 = vst [vmem:[#allocation53_spill] sm:$0xff] %v6889_v40  ;;  %v6891_v22 = vmax.f32 %v375_v31, %v5472_v41  ;;  %v2512_v18 = vsel %vm1712_vm7, %v6869_v48, %v2511_v37  ;;  %v6896_v51 = vrot.slane %v107_v20, %v6467_v24 }
  0x4b   :  { %v2513_v38 = vsel %vm1714_vm8, %v6879_v39, %v2512_v18  ;;  %v6907_v31 = vrot.slane %v342_v10, %v6467_v24  ;;  %v441_v41 = vrot.slane %v427_v44, %v6467_v24  ;;  %v444_v19 = vcombine.high %v108_v4, %v108_v4 }
  0x4c   :  { %9596 = vst [vmem:[#allocation54_spill] sm:$0xff] %v6896_v51  ;;  %v6917_v20 = vrot.slane %v1261_v16, %v6471_v26  ;;  %5937 = vmatmul.mubr.msk.f32.gmra.mrb[6].mxu0 %vm1772_vm9, %v2513_v38  ;;  %v442_v54 = vcombine.high %v6896_v51, %v6896_v51  ;;  %v451_v37 = vrot.slane %v108_v4, %v6467_v24 }
  0x4d   :  { %9597 = vst [vmem:[#allocation55_spill] sm:$0xff] %v6907_v31  ;;  %v1737_v10 = vsel %vm1702_vm2, %v6847_v36, %v6830_v1  ;;  %5939 = vmatprep.mubr.msk.f32.mxu0 %vm6377_vm1, %v9586_v8  ;;  %v443_v44 = vcombine.high %v441_v41, %v441_v41  ;;  %v5467_v18 = vrot.slane %v6907_v31, 9  ;;  %v5487_v40 = vrot.slane %v441_v41, 9 }
  0x4e   :  { %9598 = vst [vmem:[#allocation56_spill] sm:$0xff] %v6917_v20  ;;  %v6929_v16 = vmax.f32 %v52_v29, %v54_v21  ;;  %v459_v48 = vcombine.high %v451_v37, %v451_v37  ;;  %v5486_v38 = vrot.slane %v442_v54, 9  ;;  %v5489_v42 = vrot.slane %v451_v37, 9 }
  0x4f   :  { %v109_v53 = vmax.f32 %v63_v27, %v65_v14  ;;  %v6932_v11 = vrot.slane %v444_v19, %v6467_v24  ;;  %v5488_v4 = vrot.slane %v443_v44, 9  ;;  %v1257_v47 = vmax.f32 %v6907_v31, %v5467_v18 }
  0x50   :  { %v1738_v0 = vsel %vm1704_vm3, %v6866_v17, %v1737_v10  ;;  %v5490_v51 = vrot.slane %v459_v48, 9  ;;  %v1276_v25 = vmax.f32 %v442_v54, %v5486_v38  ;;  %v1277_v60 = vmax.f32 %v441_v41, %v5487_v40 }
  0x51   :  { %9599 = vst [vmem:[#allocation57_spill] sm:$0xff] %v6932_v11  ;;  %v1279_v63 = vmax.f32 %v451_v37, %v5489_v42  ;;  %v1278_v59 = vmax.f32 %v443_v44, %v5488_v4  ;;  %v6938_v29 = vrot.slane %v1257_v47, %v6471_v26  ;;  %v383_v21 = vrot.slane %v6929_v16, %v6467_v24  ;;  %v64_v4 = vld [vmem:[%s9322_s0 + $0x128] sm:$0xff] }
  0x52   :  { %v461_v27 = vcombine.high %v109_v53, %v109_v53  ;;  %v1280_v19 = vmax.f32 %v459_v48, %v5490_v51  ;;  %v6943_v14 = vrot.slane %v1276_v25, %v6471_v26  ;;  %v6946_v18 = vrot.slane %v1277_v60, %v6471_v26 }
  0x53   :  { %9600 = vst [vmem:[#allocation58_spill] sm:$0xff] %v6938_v29  ;;  %v6949_v10 = vrot.slane %v1279_v63, %v6471_v26  ;;  %v6952_v42 = vrot.slane %v1278_v59, %v6471_v26  ;;  %v1739_v47 = vsel %vm1706_vm4, %v6938_v29, %v1738_v0  ;;  %v391_v40 = vcombine.high %v383_v21, %v383_v21 }
  0x54   :  { %9601 = vst [vmem:[#allocation59_spill] sm:$0xff] %v6943_v14  ;;  %9602 = vst [vmem:[#allocation60_spill] sm:$0xff] %v6946_v18  ;;  %v468_v41 = vrot.slane %v109_v53, %v6467_v24  ;;  %v5491_v48 = vrot.slane %v6932_v11, 9  ;;  %v1740_v25 = vsel %vm1708_vm5, %v6943_v14, %v1739_v47  ;;  %v475_v60 = vrot.slane %v461_v27, %v6467_v24  ;;  %v66_v27 = vld [vmem:[%s9322_s0 + $0x138] sm:$0xff] }
  0x55   :  { %9603 = vst [vmem:[#allocation61_spill] sm:$0xff] %v6949_v10  ;;  %9604 = vst [vmem:[#allocation62_spill] sm:$0xff] %v6952_v42  ;;  %v5473_v51 = vrot.slane %v383_v21, 9  ;;  %v1741_v63 = vsel %vm1710_vm6, %v6946_v18, %v1740_v25  ;;  %v5474_v59 = vrot.slane %v391_v40, 9  ;;  %v6964_v44 = vrot.slane %v1280_v19, %v6471_v26 }
  0x56   :  { %v476_v54 = vcombine.high %v468_v41, %v468_v41  ;;  %v5493_v37 = vrot.slane %v468_v41, 9  ;;  %v1742_v0 = vsel %vm1712_vm7, %v6952_v42, %v1741_v63  ;;  %v477_v53 = vcombine.high %v475_v60, %v475_v60 }
  0x57   :  { %9605 = vst [vmem:[#allocation63_spill] sm:$0xff] %v6964_v44  ;;  %v5495_v38 = vrot.slane %v475_v60, 9  ;;  %v1743_v47 = vsel %vm1714_vm8, %v6949_v10, %v1742_v0  ;;  %v1263_v31 = vmax.f32 %v383_v21, %v5473_v51  ;;  %v1264_v19 = vmax.f32 %v391_v40, %v5474_v59  ;;  %v67_v0 = vld [vmem:[%s9322_s0 + $0x140] sm:$0xff] }
  0x58   :  { %v5494_v25 = vrot.slane %v476_v54, 9  ;;  %5853 = vmatmul.mubr.msk.f32.gmra.mrb[8].mxu1 %vm1772_vm9, %v1743_v47  ;;  %v5496_v18 = vrot.slane %v477_v53, 9  ;;  %v1283_v63 = vmax.f32 %v468_v41, %v5493_v37  ;;  %v6979_v14 = vrot.slane %v6891_v22, %v6471_v26 }
  0x59   :  { %v1285_v42 = vmax.f32 %v475_v60, %v5495_v38  ;;  %v6982_v39 = vrot.slane %v1263_v31, %v6471_v26  ;;  %v6985_v2 = vrot.slane %v1264_v19, %v6471_v26  ;;  %5855 = vmatprep.mubr.msk.f32.mxu1 %vm6377_vm1, %v9586_v8  ;;  %v110_v21 = vmax.f32 %v64_v4, %v66_v27 }
  0x5a   :  { %9606 = vst [vmem:[#allocation64_spill] sm:$0xff] %v6979_v14  ;;  %v1284_v62 = vmax.f32 %v476_v54, %v5494_v25  ;;  %v1286_v40 = vmax.f32 %v477_v53, %v5496_v18  ;;  %v6993_v41 = vrot.slane %v1283_v63, %v6471_v26  ;;  %v2514_v22 = vsel %vm1702_vm2, %v6979_v14, %v6917_v20  ;;  %v69_v53 = vld [vmem:[%s9322_s0 + $0x150] sm:$0xff] }
  0x5b   :  { %9607 = vst [vmem:[#allocation65_spill] sm:$0xff] %v6982_v39  ;;  %9608 = vst [vmem:[#allocation66_spill] sm:$0xff] %v6985_v2  ;;  %v6990_v51 = vrot.slane %v1285_v42, %v6471_v26  ;;  %v2515_v60 = vsel %vm1704_vm3, %v6982_v39, %v2514_v22  ;;  %v478_v54 = vcombine.high %v110_v21, %v110_v21  ;;  %v68_v22 = vld [vmem:[%s9322_s0 + $0x148] sm:$0xff] }
  0x5c   :  { %9610 = vst [vmem:[#allocation68_spill] sm:$0xff] %v6993_v41  ;;  %v6999_v31 = vrot.slane %v1284_v62, %v6471_v26  ;;  %v485_v59 = vrot.slane %v110_v21, %v6467_v24  ;;  %v7005_v18 = vrot.slane %v1286_v40, %v6471_v26  ;;  %v7009_v42 = vsel %vm1706_vm4, %v6985_v2, %v2515_v60  ;;  %v70_v60 = vld [vmem:[%s9322_s0 + $0x158] sm:$0xff] }
  0x5d   :  { %9609 = vst [vmem:[#allocation67_spill] sm:$0xff] %v6990_v51  ;;  %9613 = vst [vmem:[#allocation71_spill] sm:$0xff] %v7009_v42  ;;  %v1281_v37 = vmax.f32 %v6932_v11, %v5491_v48  ;;  %v2702_v62 = vsel %vm1704_vm3, %v6558_v45, %v6876_v3  ;;  %v2517_v38 = vsel %vm1708_vm5, %v6993_v41, %v7009_v42 }
  0x5e   :  { %9611 = vst [vmem:[#allocation69_spill] sm:$0xff] %v6999_v31  ;;  %9612 = vst [vmem:[#allocation70_spill] sm:$0xff] %v7005_v18  ;;  %v492_v4 = vrot.slane %v478_v54, %v6467_v24  ;;  %v493_v27 = vcombine.high %v485_v59, %v485_v59  ;;  %v5497_v48 = vrot.slane %v485_v59, 9  ;;  %v7028_v3 = vsel %vm1702_vm2, %v6964_v44, %v6949_v10 }
  0x5f   :  { %9614 = vst [vmem:[#allocation72_spill] sm:$0xff] %v7028_v3  ;;  %v2518_v47 = vsel %vm1710_vm6, %v6999_v31, %v2517_v38  ;;  %v7033_v25 = vrot.slane %v1281_v37, %v6471_v26  ;;  %v2703_v19 = vsel %vm1706_vm4, %v6551_v43, %v2702_v62  ;;  %v111_v54 = vmax.f32 %v67_v0, %v69_v53  ;;  %v73_v53 = vld [vmem:[%s9322_s0 + $0x170] sm:$0xff] }
  0x60   :  { %v2519_v63 = vsel %vm1712_vm7, %v6990_v51, %v2518_v47  ;;  %v5498_v21 = vrot.slane %v493_v27, 9  ;;  %v5499_v40 = vrot.slane %v492_v4, 9  ;;  %v1287_v38 = vmax.f32 %v485_v59, %v5497_v48  ;;  %v71_v59 = vld [vmem:[%s9322_s0 + $0x160] sm:$0xff] }
  0x61   :  { %9615 = vst [vmem:[#allocation73_spill] sm:$0xff] %v7033_v25  ;;  %v2520_v37 = vsel %vm1714_vm8, %v7005_v18, %v2519_v63  ;;  %v1744_v62 = vsel %vm1702_vm2, %v7033_v25, %v6964_v44  ;;  %v2704_v47 = vsel %vm1708_vm5, %v6561_v46, %v2703_v19  ;;  %v7053_v42 = vcombine.high %v492_v4, %v492_v4 }
  0x62   :  { %5940 = vmatmul.mubr.msk.f32.gmra.mrb[8].mxu0 %vm1772_vm9, %v2520_v37  ;;  %v1288_v10 = vmax.f32 %v493_v27, %v5498_v21  ;;  %v1289_v11 = vmax.f32 %v492_v4, %v5499_v40  ;;  %v1745_v0 = vsel %vm1704_vm3, %v6999_v31, %v1744_v62  ;;  %v7066_v48 = vrot.slane %v1287_v38, %v6471_v26  ;;  %v5603_v38 = vld [vmem:[%s9323_s1 + $0x14] sm:$0xf] }
  0x63   :  { %9616 = vst [vmem:[#allocation74_spill] sm:$0xff] %v7053_v42  ;;  %5956 = vmatprep.mubr.msk.f32.mxu0 %vm6377_vm1, %v9586_v8  ;;  %v1746_v4 = vsel %vm1706_vm4, %v6990_v51, %v1745_v0  ;;  %v2705_v27 = vsel %vm1710_vm6, %v6629_v30, %v2704_v47  ;;  %v112_v19 = vmax.f32 %v68_v22, %v70_v60 }
  0x64   :  { %9617 = vst [vmem:[#allocation75_spill] sm:$0xff] %v7066_v48  ;;  %v7073_v63 = vrot.slane %v1288_v10, %v6471_v26  ;;  %v7076_v21 = vrot.slane %v1289_v11, %v6471_v26  ;;  %v1747_v40 = vsel %vm1708_vm5, %v7005_v18, %v1746_v4  ;;  %v2706_v37 = vsel %vm1712_vm7, %v6569_v49, %v2705_v27 }
  0x65   :  { %v1748_v62 = vsel %vm1710_vm6, %v7066_v48, %v1747_v40  ;;  %v2707_v10 = vsel %vm1714_vm8, %v6572_v50, %v2706_v37  ;;  %v113_v22 = vmax.f32 %v71_v59, %v73_v53  ;;  %v495_v60 = vcombine.high %v111_v54, %v111_v54 }
  0x66   :  { %9618 = vst [vmem:[#allocation76_spill] sm:$0xff] %v7076_v21  ;;  %v1749_v11 = vsel %vm1712_vm7, %v7073_v63, %v1748_v62  ;;  %5957 = vmatmul.mubr.msk.f32.vlgmr.msra.gmra.mrb[0].mxu0 %vm1772_vm9, %v2707_v10  ;;  %v7093_v47 = vrot.slane %v111_v54, %v6467_v24  ;;  %v512_v0 = vcombine.high %v112_v19, %v112_v19 }
  0x67   :  { %v519_v4 = vrot.slane %v112_v19, %v6467_v24  ;;  %v1750_v27 = vsel %vm1714_vm8, %v7076_v21, %v1749_v11  ;;  %5984 = vmatpush3.msk.msra.mxu0 %vm1791_vm0, %v5603_v38  ;;  %5959 = vmatprep.mubr.msk.f32.mxu0 %vm6377_vm1, %v9586_v8  ;;  %v509_v59 = vrot.slane %v495_v60, %v6467_v24 }
  0x68   :  { %9619 = vst [vmem:[#allocation77_spill] sm:$0xff] %v7093_v47  ;;  %v529_v53 = vcombine.high %v113_v22, %v113_v22  ;;  %5856 = vmatmul.mubr.msk.f32.gmra.mrb[10].mxu1 %vm1772_vm9, %v1750_v27  ;;  %v510_v54 = vcombine.high %v7093_v47, %v7093_v47  ;;  %v7107_v19 = vrot.slane %v512_v0, %v6467_v24 }
  0x69   :  { %v527_v37 = vcombine.high %v519_v4, %v519_v4  ;;  %v7110_v62 = vrot.slane %v113_v22, %v6467_v24  ;;  %5858 = vmatprep.mubr.msk.f32.mxu1 %vm6377_vm1, %v9586_v8  ;;  %v511_v38 = vcombine.high %v509_v59, %v509_v59  ;;  %v5503_v60 = vrot.slane %v509_v59, 9  ;;  %6012 = vmatprep.subr.mxu0 %v9586_v8 }
  0x6a   :  { %9620 = vst [vmem:[#allocation78_spill] sm:$0xff] %v7107_v19  ;;  %v543_v10 = vrot.slane %v529_v53, %v6467_v24  ;;  %v5505_v11 = vrot.slane %v519_v4, 9  ;;  %v5502_v40 = vrot.slane %v510_v54, 9  ;;  %v5507_v25 = vrot.slane %v7107_v19, 9 }
  0x6b   :  { %9621 = vst [vmem:[#allocation79_spill] sm:$0xff] %v7110_v62  ;;  %v544_v27 = vcombine.high %v7110_v62, %v7110_v62  ;;  %v5506_v0 = vrot.slane %v527_v37, 9  ;;  %v5504_v22 = vrot.slane %v511_v38, 9  ;;  %v1293_v41 = vmax.f32 %v509_v59, %v5503_v60  ;;  %v74_v59 = vld [vmem:[%s9322_s0 + $0x178] sm:$0xff] }
  0x6c   :  { %v545_v44 = vcombine.high %v543_v10, %v543_v10  ;;  %v5511_v42 = vrot.slane %v543_v10, 9  ;;  %v1292_v47 = vmax.f32 %v510_v54, %v5502_v40  ;;  %v1295_v48 = vmax.f32 %v519_v4, %v5505_v11  ;;  %v72_v4 = vld [vmem:[%s9322_s0 + $0x168] sm:$0xff]  ;;  %v77_v40 = vld [vmem:[%s9322_s0 + $0x190] sm:$0xff] }
  0x6d   :  { %v5510_v3 = vrot.slane %v544_v27, 9  ;;  %v1296_v18 = vmax.f32 %v527_v37, %v5506_v0  ;;  %v1294_v51 = vmax.f32 %v511_v38, %v5504_v22  ;;  %v1297_v31 = vmax.f32 %v7107_v19, %v5507_v25 }
  0x6e   :  { %v5512_v53 = vrot.slane %v545_v44, 9  ;;  %v1301_v50 = vmax.f32 %v543_v10, %v5511_v42  ;;  %v7121_v62 = vrot.slane %v1292_v47, %v6471_v26  ;;  %v7124_v49 = vrot.slane %v1293_v41, %v6471_v26  ;;  %v75_v42 = vld [vmem:[%s9322_s0 + $0x180] sm:$0xff]  ;;  %v76_v47 = vld [vmem:[%s9322_s0 + $0x188] sm:$0xff] }
  0x6f   :  { %v1300_v30 = vmax.f32 %v544_v27, %v5510_v3  ;;  %v7127_v21 = vrot.slane %v1295_v48, %v6471_v26  ;;  %v7139_v25 = vrot.slane %v1294_v51, %v6471_v26  ;;  %v7142_v41 = vrot.slane %v1296_v18, %v6471_v26 }
  0x70   :  { %9622 = vst [vmem:[#allocation80_spill] sm:$0xff] %v7121_v62  ;;  %v1302_v3 = vmax.f32 %v545_v44, %v5512_v53  ;;  %v7145_v48 = vrot.slane %v1297_v31, %v6471_v26  ;;  %v78_v44 = vld [vmem:[%s9322_s0 + $0x198] sm:$0xff]  ;;  %v7160_v18 = vrot.slane %v1301_v50, %v6471_v26  ;;  %v1751_v31 = vsel %vm1702_vm2, %v7124_v49, %v7121_v62 }
  0x71   :  { %9623 = vst [vmem:[#allocation81_spill] sm:$0xff] %v7127_v21  ;;  %v7157_v51 = vrot.slane %v1300_v30, %v6471_v26  ;;  %v2708_v54 = vsel %vm1702_vm2, %v6625_v23, %v6590_v57  ;;  %v1752_v38 = vsel %vm1704_vm3, %v7139_v25, %v1751_v31  ;;  %v114_v10 = vmax.f32 %v72_v4, %v74_v59 }
  0x72   :  { %9624 = vst [vmem:[#allocation82_spill] sm:$0xff] %v7145_v48  ;;  %9625 = vst [vmem:[#allocation83_spill] sm:$0xff] %v7160_v18  ;;  %v7169_v37 = vrot.slane %v1302_v3, %v6471_v26  ;;  %v2709_v30 = vsel %vm1704_vm3, %v6641_v34, %v2708_v54  ;;  %v1753_v50 = vsel %vm1706_vm4, %v7127_v21, %v1752_v38 }
  0x73   :  { %v2710_v60 = vsel %vm1706_vm4, %v6647_v52, %v2709_v30  ;;  %v115_v11 = vmax.f32 %v75_v42, %v77_v40  ;;  %v116_v27 = vmax.f32 %v76_v47, %v78_v44  ;;  %v1754_v0 = vsel %vm1708_vm5, %v7142_v41, %v1753_v50 }
  0x74   :  { %9626 = vst [vmem:[#allocation84_spill] sm:$0xff] %v7169_v37  ;;  %v2711_v22 = vsel %vm1708_vm5, %v6655_v55, %v2710_v60  ;;  %v546_v53 = vcombine.high %v114_v10, %v114_v10  ;;  %v553_v3 = vrot.slane %v114_v10, %v6467_v24  ;;  %v1755_v4 = vsel %vm1710_vm6, %v7145_v48, %v1754_v0  ;;  %v79_v55 = vld [vmem:[%s9322_s0 + $0x1a0] sm:$0xff] }
  0x75   :  { %v2712_v59 = vsel %vm1710_vm6, %v6658_v56, %v2711_v22  ;;  %v563_v31 = vcombine.high %v115_v11, %v115_v11  ;;  %v7189_v54 = vrot.slane %v115_v11, %v6467_v24  ;;  %v1756_v42 = vsel %vm1712_vm7, %v7157_v51, %v1755_v4 }
  0x76   :  { %v2713_v47 = vsel %vm1712_vm7, %v6671_v7, %v2712_v59  ;;  %v7196_v40 = vrot.slane %v546_v53, %v6467_v24  ;;  %v561_v44 = vcombine.high %v553_v3, %v553_v3  ;;  %v1757_v38 = vsel %vm1714_vm8, %v7160_v18, %v1756_v42 }
  0x77   :  { %9627 = vst [vmem:[#allocation85_spill] sm:$0xff] %v7189_v54  ;;  %v2714_v30 = vsel %vm1714_vm8, %v6727_v61, %v2713_v47  ;;  %v577_v10 = vrot.slane %v563_v31, %v6467_v24  ;;  %v578_v50 = vcombine.high %v7189_v54, %v7189_v54  ;;  %5859 = vmatmul.mubr.msk.f32.gmra.mrb[12].mxu1 %vm1772_vm9, %v1757_v38  ;;  %v5513_v0 = vrot.slane %v553_v3, 9 }
  0x78   :  { %9628 = vst [vmem:[#allocation86_spill] sm:$0xff] %v7196_v40  ;;  %5960 = vmatmul.mubr.msk.f32.gmra.mrb[2].mxu0 %vm1772_vm9, %v2714_v30  ;;  %v580_v60 = vcombine.high %v116_v27, %v116_v27  ;;  %v587_v11 = vrot.slane %v116_v27, %v6467_v24  ;;  %v5514_v22 = vrot.slane %v561_v44, 9  ;;  %5861 = vmatprep.mubr.msk.f32.mxu1 %vm6377_vm1, %v9586_v8  ;;  %v5515_v4 = vrot.slane %v7196_v40, 9 }
  0x79   :  { %5962 = vmatprep.mubr.msk.f32.mxu0 %vm6377_vm1, %v9586_v8  ;;  %v579_v53 = vcombine.high %v577_v10, %v577_v10  ;;  %v5518_v59 = vrot.slane %v578_v50, 9  ;;  %v5519_v31 = vrot.slane %v577_v10, 9  ;;  %v1303_v30 = vmax.f32 %v553_v3, %v5513_v0  ;;  %v82_v0 = vld [vmem:[%s9322_s0 + $0x1b8] sm:$0xff] }
  0x7a   :  { %v7214_v42 = vrot.slane %v580_v60, %v6467_v24  ;;  %v595_v47 = vcombine.high %v587_v11, %v587_v11  ;;  %v5521_v38 = vrot.slane %v587_v11, 9  ;;  %v1304_v19 = vmax.f32 %v561_v44, %v5514_v22  ;;  %v81_v60 = vld [vmem:[%s9322_s0 + $0x1b0] sm:$0xff] }
  0x7b   :  { %v5520_v27 = vrot.slane %v579_v53, 9  ;;  %v1305_v52 = vmax.f32 %v7196_v40, %v5515_v4  ;;  %v1308_v54 = vmax.f32 %v578_v50, %v5518_v59  ;;  %v1309_v7 = vmax.f32 %v577_v10, %v5519_v31 }
  0x7c   :  { %9629 = vst [vmem:[#allocation87_spill] sm:$0xff] %v7214_v42  ;;  %v5522_v61 = vrot.slane %v595_v47, 9  ;;  %v1311_v56 = vmax.f32 %v587_v11, %v5521_v38  ;;  %v7218_v48 = vrot.slane %v1303_v30, %v6471_v26  ;;  %v7227_v44 = vrot.slane %v1304_v19, %v6471_v26  ;;  %v80_v11 = vld [vmem:[%s9322_s0 + $0x1a8] sm:$0xff] }
  0x7d   :  { %v1310_v3 = vmax.f32 %v579_v53, %v5520_v27  ;;  %v7230_v50 = vrot.slane %v1305_v52, %v6471_v26  ;;  %v7233_v10 = vrot.slane %v1308_v54, %v6471_v26  ;;  %v7242_v53 = vrot.slane %v1309_v7, %v6471_v26 }
  0x7e   :  { %9630 = vst [vmem:[#allocation88_spill] sm:$0xff] %v7218_v48  ;;  %9631 = vst [vmem:[#allocation89_spill] sm:$0xff] %v7227_v44  ;;  %v1312_v22 = vmax.f32 %v595_v47, %v5522_v61  ;;  %v7245_v19 = vrot.slane %v1311_v56, %v6471_v26  ;;  %v1758_v52 = vsel %vm1702_vm2, %v7218_v48, %v7169_v37  ;;  %v5523_v47 = vrot.slane %v7214_v42, 9 }
  0x7f   :  { %9632 = vst [vmem:[#allocation90_spill] sm:$0xff] %v7230_v50  ;;  %9633 = vst [vmem:[#allocation91_spill] sm:$0xff] %v7233_v10  ;;  %v7251_v54 = vrot.slane %v1310_v3, %v6471_v26  ;;  %v1759_v4 = vsel %vm1704_vm3, %v7227_v44, %v1758_v52  ;;  %v2715_v61 = vsel %vm1702_vm2, %v6731_v9, %v6734_v15 }
  0x80   :  { %9634 = vst [vmem:[#allocation92_spill] sm:$0xff] %v7245_v19  ;;  %v117_v59 = vmax.f32 %v79_v55, %v81_v60  ;;  %v1760_v7 = vsel %vm1706_vm4, %v7230_v50, %v1759_v4  ;;  %v2716_v56 = vsel %vm1704_vm3, %v6764_v58, %v2715_v61  ;;  %v118_v31 = vmax.f32 %v80_v11, %v82_v0 }
  0x81   :  { %9635 = vst [vmem:[#allocation93_spill] sm:$0xff] %v7251_v54  ;;  %v1761_v38 = vsel %vm1708_vm5, %v7233_v10, %v1760_v7  ;;  %v2717_v30 = vsel %vm1706_vm4, %v6749_v32, %v2716_v56 }
  0x82   :  { %v597_v27 = vcombine.high %v117_v59, %v117_v59  ;;  %v7268_v3 = vrot.slane %v117_v59, %v6467_v24  ;;  %v1762_v55 = vsel %vm1710_vm6, %v7242_v53, %v1761_v38  ;;  %v2718_v60 = vsel %vm1708_vm5, %v6775_v13, %v2717_v30 }
  0x83   :  { %v614_v52 = vcombine.high %v118_v31, %v118_v31  ;;  %v621_v11 = vrot.slane %v118_v31, %v6467_v24  ;;  %v1763_v0 = vsel %vm1712_vm7, %v7251_v54, %v1762_v55  ;;  %v2719_v4 = vsel %vm1710_vm6, %v6767_v5, %v2718_v60 }
  0x84   :  { %9636 = vst [vmem:[#allocation94_spill] sm:$0xff] %v7268_v3  ;;  %v611_v61 = vrot.slane %v597_v27, %v6467_v24  ;;  %v612_v59 = vcombine.high %v7268_v3, %v7268_v3  ;;  %v1764_v7 = vsel %vm1714_vm8, %v7245_v19, %v1763_v0  ;;  %v2720_v56 = vsel %vm1712_vm7, %v6770_v12, %v2719_v4 }
  0x85   :  { %v7287_v38 = vrot.slane %v614_v52, %v6467_v24  ;;  %v629_v31 = vcombine.high %v621_v11, %v621_v11  ;;  %5862 = vmatmul.mubr.msk.f32.gmra.mrb[14].mxu1 %vm1772_vm9, %v1764_v7  ;;  %v2721_v30 = vsel %vm1714_vm8, %v6808_v6, %v2720_v56  ;;  %v5529_v0 = vrot.slane %v621_v11, 9 }
  0x86   :  { %v613_v55 = vcombine.high %v611_v61, %v611_v61  ;;  %v5526_v27 = vrot.slane %v612_v59, 9  ;;  %v5527_v60 = vrot.slane %v611_v61, 9  ;;  %5963 = vmatmul.mubr.msk.f32.gmra.mrb[4].mxu0 %vm1772_vm9, %v2721_v30  ;;  %5864 = vmatprep.mubr.msk.f32.mxu1 %vm6377_vm1, %v9586_v8  ;;  %v1313_v52 = vmax.f32 %v7214_v42, %v5523_v47  ;;  %v9656_v42 = vld [vmem:[#allocation11_spill] sm:$0xff] }
  0x87   :  { %9637 = vst [vmem:[#allocation95_spill] sm:$0xff] %v7287_v38  ;;  %v5530_v40 = vrot.slane %v629_v31, 9  ;;  %v5531_v4 = vrot.slane %v7287_v38, 9  ;;  %5965 = vmatprep.mubr.msk.f32.mxu0 %vm6377_vm1, %v9586_v8  ;;  %v7300_v6 = vrot.slane %v1312_v22, %v6471_v26  ;;  %v1319_v3 = vmax.f32 %v621_v11, %v5529_v0 }
  0x88   :  { %v5528_v7 = vrot.slane %v613_v55, 9  ;;  %v1316_v9 = vmax.f32 %v612_v59, %v5526_v27  ;;  %v1317_v56 = vmax.f32 %v611_v61, %v5527_v60  ;;  %v7304_v19 = vrot.slane %v1313_v52, %v6471_v26 }
  0x89   :  { %9638 = vst [vmem:[#allocation96_spill] sm:$0xff] %v7300_v6  ;;  %v1320_v30 = vmax.f32 %v629_v31, %v5530_v40  ;;  %v1321_v12 = vmax.f32 %v7287_v38, %v5531_v4  ;;  %v2722_v61 = vsel %vm1702_vm2, %v6822_v35, %v6826_v33  ;;  %v7316_v22 = vrot.slane %v1319_v3, %v6471_v26  ;;  %v9655_v38 = vld [vmem:[#allocation54_spill] sm:$0xff] }
  0x8a   :  { %9639 = vst [vmem:[#allocation97_spill] sm:$0xff] %v7304_v19  ;;  %v1318_v54 = vmax.f32 %v613_v55, %v5528_v7  ;;  %v7307_v5 = vrot.slane %v1316_v9, %v6471_v26  ;;  %v7310_v47 = vrot.slane %v1317_v56, %v6471_v26  ;;  %v1765_v9 = vsel %vm1702_vm2, %v7304_v19, %v7300_v6 }
  0x8b   :  { %9642 = vst [vmem:[#allocation100_spill] sm:$0xff] %v7316_v22  ;;  %v7319_v40 = vrot.slane %v1320_v30, %v6471_v26  ;;  %v7322_v11 = vrot.slane %v1321_v12, %v6471_v26  ;;  %v2723_v3 = vsel %vm1704_vm3, %v6830_v1, %v2722_v61  ;;  %v9645_v55 = vrot.slane %v6474_v28, 9  ;;  %v9647_v61 = vld [vmem:[#allocation13_spill] sm:$0xff] }
  0x8c   :  { %9640 = vst [vmem:[#allocation98_spill] sm:$0xff] %v7307_v5  ;;  %9641 = vst [vmem:[#allocation99_spill] sm:$0xff] %v7310_v47  ;;  %v7328_v59 = vrot.slane %v1318_v54, %v6471_v26  ;;  %v1766_v31 = vsel %vm1704_vm3, %v7307_v5, %v1765_v9  ;;  %v2724_v60 = vsel %vm1706_vm4, %v6847_v36, %v2723_v3  ;;  %v9648_v3 = vld [vmem:[#allocation52_spill] sm:$0xff] }
  0x8d   :  { %9643 = vst [vmem:[#allocation101_spill] sm:$0xff] %v7319_v40  ;;  %9644 = vst [vmem:[#allocation102_spill] sm:$0xff] %v7322_v11  ;;  %v1211_v27 = vmax.f32 %v6474_v28, %v9645_v55  ;;  %v1767_v12 = vsel %vm1706_vm4, %v7310_v47, %v1766_v31  ;;  %v376_v54 = vcombine.high %v6929_v16, %v6929_v16 }
  0x8e   :  { %v2729_v0 = vsel %vm1702_vm2, %v6982_v39, %v6979_v14  ;;  %v1768_v4 = vsel %vm1708_vm5, %v7328_v59, %v1767_v12  ;;  %v2725_v52 = vsel %vm1708_vm5, %v6866_v17, %v2724_v60  ;;  %v1972_v9 = vsel %vm1702_vm2, %v6558_v45, %v9647_v61  ;;  %v9659_v14 = vld [vmem:[#allocation18_spill] sm:$0xff]  ;;  %v9661_v61 = vld [vmem:[#allocation20_spill] sm:$0xff] }
  0x8f   :  { %v1920_v28 = vrot.slane %v1211_v27, %v6471_v26  ;;  %v2730_v7 = vsel %vm1704_vm3, %v6985_v2, %v2729_v0  ;;  %v1769_v56 = vsel %vm1710_vm6, %v7316_v22, %v1768_v4  ;;  %v2726_v16 = vsel %vm1710_vm6, %v6938_v29, %v2725_v52  ;;  %v9649_v27 = vld [vmem:[#allocation9_spill] sm:$0xff]  ;;  %v9650_v4 = vld [vmem:[#allocation7_spill] sm:$0xff]  ;;  %v9668_v2 = vld [vmem:[#allocation30_spill] sm:$0xff] }
  0x90   :  { %v7358_v30 = vrot.slane %v376_v54, %v6467_v24  ;;  %v1770_v31 = vsel %vm1712_vm7, %v7319_v40, %v1769_v56  ;;  %v2727_v55 = vsel %vm1712_vm7, %v9648_v3, %v2726_v16  ;;  %v1973_v60 = vsel %vm1704_vm3, %v6551_v43, %v1972_v9  ;;  %v9651_v16 = vld [vmem:[#allocation10_spill] sm:$0xff]  ;;  %v9658_v43 = vld [vmem:[#allocation25_spill] sm:$0xff] }
  0x91   :  { %v1965_v12 = vsel %vm1702_vm2, %v9649_v27, %v1920_v28  ;;  %v1771_v54 = vsel %vm1714_vm8, %v7322_v11, %v1770_v31  ;;  %v2728_v0 = vsel %vm1714_vm8, %v6917_v20, %v2727_v55  ;;  %v1974_v9 = vsel %vm1706_vm4, %v6561_v46, %v1973_v60  ;;  %v9652_v31 = vld [vmem:[#allocation76_spill] sm:$0xff] }
  0x92   :  { %9646 = vst [vmem:[#allocation103_spill] sm:$0xff] %v7358_v30  ;;  %v1966_v52 = vsel %vm1704_vm3, %v9650_v4, %v1965_v12  ;;  %v5475_v56 = vrot.slane %v7358_v30, 9  ;;  %5865 = vmatmul.mubr.msk.f32.gmra.mrb[16].mxu1 %vm1772_vm9, %v1771_v54  ;;  %5966 = vmatmul.mubr.msk.f32.gmra.mrb[6].mxu0 %vm1772_vm9, %v2728_v0  ;;  %v2736_v27 = vsel %vm1702_vm2, %v9652_v31, %v7073_v63  ;;  %v9653_v55 = vld [vmem:[#allocation8_spill] sm:$0xff]  ;;  %v9654_v0 = vld [vmem:[#allocation21_spill] sm:$0xff]  ;;  %v5485_v60 = vrot.slane %v9655_v38, 9  ;;  %v9657_v31 = vld [vmem:[#allocation19_spill] sm:$0xff] }
  0x93   :  { %v1967_v28 = vsel %vm1706_vm4, %v9651_v16, %v1966_v52  ;;  %5869 = vmatprep.mubr.msk.f32.mxu1 %vm6377_vm1, %v9586_v8  ;;  %5968 = vmatprep.mubr.msk.f32.mxu0 %vm6377_vm1, %v9586_v8  ;;  %v1975_v52 = vsel %vm1708_vm5, %v9654_v0, %v1974_v9  ;;  %v7403_v45 = vsel %vm1708_vm5, %v9658_v43, %v1974_v9  ;;  %v9667_v43 = vld [vmem:[#allocation82_spill] sm:$0xff] }
  0x94   :  { %v1968_v12 = vsel %vm1708_vm5, %v9653_v55, %v1967_v28  ;;  %v1265_v54 = vmax.f32 %v7358_v30, %v5475_v56  ;;  %v1976_v46 = vsel %vm1710_vm6, %v9657_v31, %v1975_v52  ;;  %v2737_v28 = vsel %vm1704_vm3, %v7121_v62, %v2736_v27  ;;  %v9662_v52 = vld [vmem:[#allocation14_spill] sm:$0xff] }
  0x95   :  { %v1969_v3 = vsel %vm1710_vm6, %v9656_v42, %v1968_v12  ;;  %v1977_v20 = vsel %vm1712_vm7, %v9661_v61, %v1976_v46  ;;  %v2738_v12 = vsel %vm1706_vm4, %v7124_v49, %v2737_v28  ;;  %v5570_v46 = vld [vmem:[%s9323_s1 + $0x8] sm:$0xf]  ;;  %v9677_v42 = vld [vmem:[#allocation92_spill] sm:$0xff] }
  0x96   :  { %v1970_v56 = vsel %vm1712_vm7, %v9659_v14, %v1969_v3  ;;  %v7410_v0 = vrot.slane %v1265_v54, %v6471_v26  ;;  %v1978_v9 = vsel %vm1714_vm8, %v6590_v57, %v1977_v20  ;;  %v2739_v27 = vsel %vm1708_vm5, %v7139_v25, %v2738_v12  ;;  %v9663_v54 = vld [vmem:[#allocation28_spill] sm:$0xff]  ;;  %v9664_v12 = vld [vmem:[#allocation69_spill] sm:$0xff]  ;;  %v9671_v30 = vld [vmem:[#allocation38_spill] sm:$0xff] }
  0x97   :  { %v1971_v31 = vsel %vm1714_vm8, %v9662_v52, %v1970_v56  ;;  %v7425_v14 = vsel %vm1702_vm2, %v6641_v34, %v6625_v23  ;;  %v2740_v20 = vsel %vm1710_vm6, %v7127_v21, %v2739_v27  ;;  %v2743_v56 = vsel %vm1702_vm2, %v7160_v18, %v7157_v51  ;;  %v9678_v55 = vld [vmem:[#allocation42_spill] sm:$0xff] }
  0x98   :  { %9660 = vst [vmem:[#allocation9_spill] sm:$0xff] %v7410_v0  ;;  %5870 = vmatmul.mubr.msk.f32.vlgmr.msra.gmra.mrb[0].mxu1 %vm1772_vm9, %v1971_v31  ;;  %v2731_v3 = vsel %vm1706_vm4, %v7410_v0, %v2730_v7  ;;  %v1980_v28 = vsel %vm1704_vm3, %v9663_v54, %v7425_v14  ;;  %v2741_v7 = vsel %vm1712_vm7, %v7142_v41, %v2740_v20  ;;  %v9665_v31 = vld [vmem:[#allocation29_spill] sm:$0xff]  ;;  %v9666_v54 = vld [vmem:[#allocation67_spill] sm:$0xff]  ;;  %v9669_v20 = vld [vmem:[#allocation70_spill] sm:$0xff] }
  0x99   :  { %v2732_v52 = vsel %vm1708_vm5, %v9664_v12, %v2731_v3  ;;  %5872 = vmatprep.mubr.msk.f32.mxu1 %vm6377_vm1, %v9586_v8  ;;  %v1981_v27 = vsel %vm1706_vm4, %v9665_v31, %v1980_v28  ;;  %v2744_v34 = vsel %vm1704_vm3, %v7169_v37, %v2743_v56  ;;  %v2742_v0 = vsel %vm1714_vm8, %v9667_v43, %v2741_v7  ;;  %v9670_v31 = vld [vmem:[#allocation31_spill] sm:$0xff]  ;;  %v9675_v43 = vld [vmem:[#allocation41_spill] sm:$0xff] }
  0x9a   :  { %v2733_v23 = vsel %vm1710_vm6, %v9666_v54, %v2732_v52  ;;  %v1982_v3 = vsel %vm1708_vm5, %v9668_v2, %v1981_v27  ;;  %v2745_v39 = vsel %vm1706_vm4, %v7218_v48, %v2744_v34  ;;  %5897 = vmatpush3.msk.msra.mxu1 %vm1791_vm0, %v5570_v46  ;;  %v1986_v7 = vsel %vm1702_vm2, %v6764_v58, %v9671_v30  ;;  %v9672_v27 = vld [vmem:[#allocation75_spill] sm:$0xff]  ;;  %v9673_v46 = vld [vmem:[#allocation34_spill] sm:$0xff]  ;;  %v83_v58 = vld [vmem:[%s9322_s0 + $0x1c0] sm:$0xff] }
  0x9b   :  { %v2734_v28 = vsel %vm1712_vm7, %v9669_v20, %v2733_v23  ;;  %v1983_v56 = vsel %vm1710_vm6, %v9670_v31, %v1982_v3  ;;  %v2746_v52 = vsel %vm1708_vm5, %v7227_v44, %v2745_v39  ;;  %6171 = vmatprep.subr.mxu1 %v9586_v8  ;;  %v1987_v39 = vsel %vm1704_vm3, %v6749_v32, %v1986_v7  ;;  %v85_v30 = vld [vmem:[%s9322_s0 + $0x1d0] sm:$0xff]  ;;  %v9676_v32 = vld [vmem:[#allocation93_spill] sm:$0xff] }
  0x9c   :  { %v2735_v34 = vsel %vm1714_vm8, %v9672_v27, %v2734_v28  ;;  %5873 = vmatmul.mubr.msk.f32.gmra.mrb[2].mxu1 %vm1772_vm9, %v1978_v9  ;;  %v1984_v23 = vsel %vm1712_vm7, %v9673_v46, %v1983_v56  ;;  %v2747_v3 = vsel %vm1710_vm6, %v7230_v50, %v2746_v52  ;;  %v1988_v56 = vsel %vm1706_vm4, %v6775_v13, %v1987_v39  ;;  %v9674_v52 = vld [vmem:[#allocation77_spill] sm:$0xff] }
  0x9d   :  { %5969 = vmatmul.mubr.msk.f32.gmra.mrb[8].mxu0 %vm1772_vm9, %v2735_v34  ;;  %5875 = vmatprep.mubr.msk.f32.mxu1 %vm6377_vm1, %v9586_v8  ;;  %v1985_v9 = vsel %vm1714_vm8, %v6734_v15, %v1984_v23  ;;  %v2748_v28 = vsel %vm1712_vm7, %v7233_v10, %v2747_v3  ;;  %v1989_v50 = vsel %vm1708_vm5, %v9675_v43, %v1988_v56  ;;  %v86_v56 = vld [vmem:[%s9322_s0 + $0x1d8] sm:$0xff] }
  0x9e   :  { %5971 = vmatprep.mubr.msk.f32.mxu0 %vm6377_vm1, %v9586_v8  ;;  %v2749_v34 = vsel %vm1714_vm8, %v7242_v53, %v2748_v28  ;;  %v2750_v23 = vsel %vm1702_vm2, %v9677_v42, %v9676_v32  ;;  %v1275_v3 = vmax.f32 %v9655_v38, %v5485_v60  ;;  %v1990_v39 = vsel %vm1710_vm6, %v9678_v55, %v1989_v50  ;;  %v84_v28 = vld [vmem:[%s9322_s0 + $0x1c8] sm:$0xff]  ;;  %v9679_v38 = vld [vmem:[#allocation48_spill] sm:$0xff] }
  0x9f   :  { %v2751_v7 = vsel %vm1704_vm3, %v7300_v6, %v2750_v23  ;;  %v1993_v13 = vsel %vm1702_vm2, %v6830_v1, %v6822_v35  ;;  %v119_v43 = vmax.f32 %v83_v58, %v85_v30  ;;  %v1991_v50 = vsel %vm1712_vm7, %v9679_v38, %v1990_v39 }
  0xa0   :  { %5876 = vmatmul.mubr.msk.f32.gmra.mrb[4].mxu1 %vm1772_vm9, %v1985_v9  ;;  %v2752_v60 = vsel %vm1706_vm4, %v7304_v19, %v2751_v7  ;;  %v1944_v23 = vrot.slane %v1275_v3, %v6471_v26  ;;  %v1994_v1 = vsel %vm1704_vm3, %v6847_v36, %v1993_v13  ;;  %v1992_v58 = vsel %vm1714_vm8, %v6826_v33, %v1991_v50  ;;  %v9680_v7 = vld [vmem:[#allocation79_spill] sm:$0xff] }
  0xa1   :  { %5972 = vmatmul.mubr.msk.f32.gmra.mrb[10].mxu0 %vm1772_vm9, %v2742_v0  ;;  %5878 = vmatprep.mubr.msk.f32.mxu1 %vm6377_vm1, %v9586_v8  ;;  %v2753_v30 = vsel %vm1708_vm5, %v7307_v5, %v2752_v60  ;;  %v7535_v9 = vsel %vm1706_vm4, %v6866_v17, %v1994_v1  ;;  %v5509_v3 = vrot.slane %v9680_v7, 9  ;;  %v120_v39 = vmax.f32 %v84_v28, %v86_v56  ;;  %v9681_v33 = vld [vmem:[#allocation59_spill] sm:$0xff]  ;;  %v9683_v28 = vld [vmem:[#allocation60_spill] sm:$0xff] }
  0xa2   :  { %5974 = vmatprep.mubr.msk.f32.mxu0 %vm6377_vm1, %v9586_v8  ;;  %v2754_v13 = vsel %vm1710_vm6, %v7310_v47, %v2753_v30  ;;  %v1996_v0 = vsel %vm1708_vm5, %v1944_v23, %v7535_v9  ;;  %v631_v50 = vcombine.high %v119_v43, %v119_v43  ;;  %v7549_v38 = vrot.slane %v119_v43, %v6467_v24  ;;  %v9684_v43 = vld [vmem:[#allocation62_spill] sm:$0xff]  ;;  %v9687_v17 = vld [vmem:[#allocation68_spill] sm:$0xff] }
  0xa3   :  { %v2755_v60 = vsel %vm1712_vm7, %v7328_v59, %v2754_v13  ;;  %v1997_v1 = vsel %vm1710_vm6, %v9681_v33, %v1996_v0  ;;  %v2757_v35 = vsel %vm1702_vm2, %v7322_v11, %v7319_v40  ;;  %v648_v13 = vcombine.high %v120_v39, %v120_v39 }
  0xa4   :  { %9682 = vst [vmem:[#allocation7_spill] sm:$0xff] %v7549_v38  ;;  %5879 = vmatmul.mubr.msk.f32.gmra.mrb[6].mxu1 %vm1772_vm9, %v1992_v58  ;;  %v2756_v23 = vsel %vm1714_vm8, %v7316_v22, %v2755_v60  ;;  %v1998_v56 = vsel %vm1712_vm7, %v9683_v28, %v1997_v1  ;;  %v645_v30 = vrot.slane %v631_v50, %v6467_v24  ;;  %v9685_v60 = vld [vmem:[#allocation85_spill] sm:$0xff]  ;;  %v9686_v28 = vld [vmem:[#allocation72_spill] sm:$0xff] }
  0xa5   :  { %5975 = vmatmul.mubr.msk.f32.gmra.mrb[12].mxu0 %vm1772_vm9, %v2749_v34  ;;  %5881 = vmatprep.mubr.msk.f32.mxu1 %vm6377_vm1, %v9586_v8  ;;  %v1999_v33 = vsel %vm1714_vm8, %v9684_v43, %v1998_v56  ;;  %v646_v58 = vcombine.high %v7549_v38, %v7549_v38  ;;  %v655_v0 = vrot.slane %v120_v39, %v6467_v24  ;;  %v5517_v11 = vrot.slane %v9685_v60, 9 }
  0xa6   :  { %5977 = vmatprep.mubr.msk.f32.mxu0 %vm6377_vm1, %v9586_v8  ;;  %v647_v50 = vcombine.high %v645_v30, %v645_v30  ;;  %v7572_v1 = vrot.slane %v648_v13, %v6467_v24  ;;  %v5535_v34 = vrot.slane %v645_v30, 9  ;;  %v2001_v36 = vsel %vm1704_vm3, %v9687_v17, %v9686_v28 }
  0xa7   :  { %v663_v56 = vcombine.high %v655_v0, %v655_v0  ;;  %v5534_v43 = vrot.slane %v646_v58, 9  ;;  %v5537_v19 = vrot.slane %v655_v0, 9  ;;  %v2002_v39 = vsel %vm1706_vm4, %v9664_v12, %v2001_v36 }
  0xa8   :  { %5882 = vmatmul.mubr.msk.f32.gmra.mrb[8].mxu1 %vm1772_vm9, %v1999_v33  ;;  %v5536_v38 = vrot.slane %v647_v50, 9  ;;  %v5539_v40 = vrot.slane %v7572_v1, 9  ;;  %v1325_v55 = vmax.f32 %v645_v30, %v5535_v34  ;;  %v2003_v13 = vsel %vm1708_vm5, %v9666_v54, %v2002_v39 }
  0xa9   :  { %5978 = vmatmul.mubr.msk.f32.gmra.mrb[14].mxu0 %vm1772_vm9, %v2756_v23  ;;  %v5538_v24 = vrot.slane %v663_v56, 9  ;;  %v1324_v22 = vmax.f32 %v646_v58, %v5534_v43  ;;  %v1327_v17 = vmax.f32 %v655_v0, %v5537_v19  ;;  %5884 = vmatprep.mubr.msk.f32.mxu1 %vm6377_vm1, %v9586_v8  ;;  %v2004_v36 = vsel %vm1710_vm6, %v9669_v20, %v2003_v13  ;;  %v9690_v58 = vld [vmem:[#allocation94_spill] sm:$0xff]  ;;  %v9695_v13 = vld [vmem:[#allocation23_spill] sm:$0xff] }
  0xaa   :  { %5980 = vmatprep.mubr.msk.f32.mxu0 %vm6377_vm1, %v9586_v8  ;;  %v1326_v12 = vmax.f32 %v647_v50, %v5536_v38  ;;  %v1329_v28 = vmax.f32 %v7572_v1, %v5539_v40  ;;  %v7592_v30 = vrot.slane %v1325_v55, %v6471_v26  ;;  %v2005_v23 = vsel %vm1712_vm7, %v9672_v27, %v2004_v36  ;;  %v9692_v55 = vld [vmem:[#allocation22_spill] sm:$0xff] }
  0xab   :  { %v1328_v43 = vmax.f32 %v663_v56, %v5538_v24  ;;  %v7597_v19 = vrot.slane %v1324_v22, %v6471_v26  ;;  %v2006_v33 = vsel %vm1714_vm8, %v7073_v63, %v2005_v23  ;;  %v5525_v0 = vrot.slane %v9690_v58, 9 }
  0xac   :  { %9688 = vst [vmem:[#allocation10_spill] sm:$0xff] %v7592_v30  ;;  %v7603_v34 = vrot.slane %v1326_v12, %v6471_v26  ;;  %v7606_v40 = vrot.slane %v1327_v17, %v6471_v26  ;;  %5885 = vmatmul.mubr.msk.f32.gmra.mrb[10].mxu1 %vm1772_vm9, %v2006_v33  ;;  %v222_v38 = vcombine.high %v9692_v55, %v9692_v55  ;;  %v9693_v24 = vrot.slane %v9674_v52, 9  ;;  %v9698_v33 = vld [vmem:[#allocation27_spill] sm:$0xff] }
  0xad   :  { %9689 = vst [vmem:[#allocation21_spill] sm:$0xff] %v7597_v19  ;;  %v7615_v50 = vrot.slane %v1328_v43, %v6471_v26  ;;  %v2758_v56 = vsel %vm1704_vm3, %v7597_v19, %v2757_v35  ;;  %5887 = vmatprep.mubr.msk.f32.mxu1 %vm6377_vm1, %v9586_v8  ;;  %v1299_v39 = vmax.f32 %v9680_v7, %v5509_v3 }
  0xae   :  { %9691 = vst [vmem:[#allocation54_spill] sm:$0xff] %v7606_v40  ;;  %v1291_v22 = vmax.f32 %v9674_v52, %v9693_v24  ;;  %v256_v17 = vcombine.high %v9695_v13, %v9695_v13  ;;  %v7625_v36 = vrot.slane %v1329_v28, %v6471_v26  ;;  %v2759_v52 = vsel %vm1706_vm4, %v7592_v30, %v2758_v56 }
  0xaf   :  { %9694 = vst [vmem:[#allocation18_spill] sm:$0xff] %v7615_v50  ;;  %v5436_v12 = vrot.slane %v222_v38, 9  ;;  %v2760_v35 = vsel %vm1708_vm5, %v7603_v34, %v2759_v52  ;;  %v2920_v7 = vsel %vm1704_vm3, %v9698_v33, %v7425_v14  ;;  %v1307_v3 = vmax.f32 %v9685_v60, %v5517_v11 }
  0xb0   :  { %9696 = vst [vmem:[#allocation14_spill] sm:$0xff] %v7625_v36  ;;  %v7630_v23 = vrot.slane %v1291_v22, %v6471_v26  ;;  %v5444_v43 = vrot.slane %v256_v17, 9  ;;  %v2761_v28 = vsel %vm1710_vm6, %v7606_v40, %v2760_v35  ;;  %v2014_v22 = vsel %vm1702_vm2, %v7169_v37, %v7160_v18  ;;  %v9715_v37 = vld [vmem:[#allocation12_spill] sm:$0xff] }
  0xb1   :  { %v1226_v55 = vmax.f32 %v222_v38, %v5436_v12  ;;  %v2762_v56 = vsel %vm1712_vm7, %v7615_v50, %v2761_v28  ;;  %v7649_v13 = vrot.slane %v1299_v39, %v6471_v26  ;;  %v7661_v12 = vrot.slane %v1307_v3, %v6471_v26 }
  0xb2   :  { %9697 = vst [vmem:[#allocation69_spill] sm:$0xff] %v7630_v23  ;;  %v2007_v24 = vsel %vm1702_vm2, %v7121_v62, %v7630_v23  ;;  %v1234_v14 = vmax.f32 %v256_v17, %v5444_v43  ;;  %v2763_v60 = vsel %vm1714_vm8, %v7625_v36, %v2762_v56  ;;  %v2015_v17 = vsel %vm1704_vm3, %v7218_v48, %v2014_v22  ;;  %v9701_v43 = vld [vmem:[#allocation33_spill] sm:$0xff]  ;;  %v9702_v56 = vld [vmem:[#allocation39_spill] sm:$0xff]  ;;  %v9726_v36 = vld [vmem:[#allocation56_spill] sm:$0xff] }
  0xb3   :  { %v2008_v11 = vsel %vm1704_vm3, %v7124_v49, %v2007_v24  ;;  %v7656_v38 = vrot.slane %v1226_v55, %v6471_v26  ;;  %9699 = vst [vmem:[#allocation67_spill] sm:$0xff] %v7661_v12  ;;  %5981 = vmatmul.mubr.msk.f32.gmra.mrb[16].mxu0 %vm1772_vm9, %v2763_v60  ;;  %v290_v28 = vcombine.high %v9701_v43, %v9701_v43  ;;  %v9713_v62 = vld [vmem:[#allocation37_spill] sm:$0xff] }
  0xb4   :  { %v2009_v52 = vsel %vm1706_vm4, %v7139_v25, %v2008_v11  ;;  %v7667_v35 = vrot.slane %v1234_v14, %v6471_v26  ;;  %5985 = vmatprep.mubr.msk.f32.mxu0 %vm6377_vm1, %v9586_v8  ;;  %v7682_v24 = vsel %vm1706_vm4, %v7227_v44, %v2015_v17  ;;  %v324_v22 = vcombine.high %v9702_v56, %v9702_v56  ;;  %v5614_v14 = vld [vmem:[%s9323_s1 + $0x18] sm:$0xf] }
  0xb5   :  { %v2010_v39 = vsel %vm1708_vm5, %v7127_v21, %v2009_v52  ;;  %v2917_v3 = vsel %vm1710_vm6, %v7656_v38, %v7403_v45  ;;  %v2017_v52 = vsel %vm1708_vm5, %v7661_v12, %v7682_v24  ;;  %v5452_v56 = vrot.slane %v290_v28, 9  ;;  %v9718_v44 = vld [vmem:[#allocation100_spill] sm:$0xff] }
  0xb6   :  { %9700 = vst [vmem:[#allocation70_spill] sm:$0xff] %v7667_v35  ;;  %v2011_v55 = vsel %vm1710_vm6, %v7142_v41, %v2010_v39  ;;  %v2918_v11 = vsel %vm1712_vm7, %v9661_v61, %v2917_v3  ;;  %v2921_v60 = vsel %vm1706_vm4, %v7667_v35, %v2920_v7  ;;  %v2018_v3 = vsel %vm1710_vm6, %v7233_v10, %v2017_v52  ;;  %v9712_v10 = vld [vmem:[#allocation11_spill] sm:$0xff] }
  0xb7   :  { %v2012_v45 = vsel %vm1712_vm7, %v7649_v13, %v2011_v55  ;;  %v2919_v39 = vsel %vm1714_vm8, %v6590_v57, %v2918_v11  ;;  %v2922_v43 = vsel %vm1708_vm5, %v9668_v2, %v2921_v60  ;;  %v2019_v55 = vsel %vm1712_vm7, %v7242_v53, %v2018_v3  ;;  %v9703_v3 = vld [vmem:[#allocation57_spill] sm:$0xff] }
  0xb8   :  { %v2013_v17 = vsel %vm1714_vm8, %v7157_v51, %v2012_v45  ;;  %5986 = vmatmul.mubr.msk.f32.vlgmr.msra.gmra.mrb[0].mxu0 %vm1772_vm9, %v2919_v39  ;;  %v2923_v7 = vsel %vm1710_vm6, %v9670_v31, %v2922_v43  ;;  %v5460_v11 = vrot.slane %v324_v22, 9  ;;  %v2020_v60 = vsel %vm1714_vm8, %v9676_v32, %v2019_v55 }
  0xb9   :  { %5888 = vmatmul.mubr.msk.f32.gmra.mrb[12].mxu1 %vm1772_vm9, %v2013_v17  ;;  %6013 = vmatpush3.msk.msra.mxu0 %vm1791_vm0, %v5614_v14  ;;  %v2924_v45 = vsel %vm1712_vm7, %v9673_v46, %v2923_v7  ;;  %v1315_v52 = vmax.f32 %v9690_v58, %v5525_v0  ;;  %v1242_v17 = vmax.f32 %v290_v28, %v5452_v56  ;;  %v9705_v58 = vld [vmem:[#allocation55_spill] sm:$0xff]  ;;  %v9707_v28 = vld [vmem:[#allocation74_spill] sm:$0xff] }
  0xba   :  { %5988 = vmatprep.mubr.msk.f32.mxu0 %vm6377_vm1, %v9586_v8  ;;  %v2925_v39 = vsel %vm1714_vm8, %v6734_v15, %v2924_v45  ;;  %5890 = vmatprep.mubr.msk.f32.mxu1 %vm6377_vm1, %v9586_v8  ;;  %v1250_v43 = vmax.f32 %v324_v22, %v5460_v11  ;;  %v7727_v14 = vsel %vm1702_vm2, %v7300_v6, %v9677_v42  ;;  %v9706_v45 = vld [vmem:[#allocation6_spill] sm:$0xff]  ;;  %v5500_v22 = vrot.slane %v9707_v28, 9 }
  0xbb   :  { %v7731_v7 = vcombine.high %v9703_v3, %v9703_v3  ;;  %v7734_v55 = vrot.slane %v1315_v52, %v6471_v26  ;;  %v358_v0 = vcombine.high %v9705_v58, %v9705_v58  ;;  %v188_v19 = vcombine.high %v9706_v45, %v9706_v45  ;;  %6041 = vmatprep.subr.mxu0 %v9586_v8  ;;  %v9709_v3 = vld [vmem:[#allocation8_spill] sm:$0xff]  ;;  %v9711_v45 = vld [vmem:[#allocation35_spill] sm:$0xff] }
  0xbc   :  { %5989 = vmatmul.mubr.msk.f32.gmra.mrb[2].mxu0 %vm1772_vm9, %v2925_v39  ;;  %v7745_v56 = vrot.slane %v1242_v17, %v6471_v26  ;;  %v2933_v11 = vsel %vm1708_vm5, %v6938_v29, %v7535_v9  ;;  %v2221_v52 = vsel %vm1702_vm2, %v9651_v16, %v9650_v4  ;;  %v7763_v9 = vrot.slane %v1250_v43, %v6471_v26  ;;  %v9714_v43 = vld [vmem:[#allocation43_spill] sm:$0xff] }
  0xbd   :  { %9704 = vst [vmem:[#allocation75_spill] sm:$0xff] %v7734_v55  ;;  %5891 = vmatmul.mubr.msk.f32.gmra.mrb[14].mxu1 %vm1772_vm9, %v2020_v60  ;;  %5991 = vmatprep.mubr.msk.f32.mxu0 %vm6377_vm1, %v9586_v8  ;;  %v2022_v60 = vsel %vm1704_vm3, %v7734_v55, %v7727_v14  ;;  %v5468_v39 = vrot.slane %v358_v0, 9  ;;  %v5428_v17 = vrot.slane %v188_v19, 9  ;;  %v2222_v58 = vsel %vm1704_vm3, %v9709_v3, %v2221_v52 }
  0xbe   :  { %9708 = vst [vmem:[#allocation34_spill] sm:$0xff] %v7745_v56  ;;  %5893 = vmatprep.mubr.msk.f32.mxu1 %vm6377_vm1, %v9586_v8  ;;  %9710 = vst [vmem:[#allocation77_spill] sm:$0xff] %v7763_v9  ;;  %v2926_v4 = vsel %vm1702_vm2, %v7745_v56, %v9711_v45  ;;  %v2023_v16 = vsel %vm1706_vm4, %v7307_v5, %v2022_v60  ;;  %v2223_v12 = vsel %vm1706_vm4, %v9712_v10, %v2222_v58  ;;  %v9716_v5 = vld [vmem:[#allocation103_spill] sm:$0xff]  ;;  %v9717_v58 = vld [vmem:[#allocation41_spill] sm:$0xff] }
  0xbf   :  { %v2927_v55 = vsel %vm1704_vm3, %v9713_v62, %v2926_v4  ;;  %v2024_v23 = vsel %vm1708_vm5, %v7310_v47, %v2023_v16  ;;  %v1258_v52 = vmax.f32 %v358_v0, %v5468_v39  ;;  %v1218_v3 = vmax.f32 %v188_v19, %v5428_v17  ;;  %v9720_v0 = vld [vmem:[#allocation42_spill] sm:$0xff]  ;;  %v9721_v39 = vld [vmem:[#allocation101_spill] sm:$0xff] }
  0xc0   :  { %v2928_v6 = vsel %vm1706_vm4, %v9714_v43, %v2927_v55  ;;  %v2025_v42 = vsel %vm1710_vm6, %v7328_v59, %v2024_v23  ;;  %v2224_v60 = vsel %vm1708_vm5, %v9715_v37, %v2223_v12  ;;  %v392_v10 = vcombine.high %v9716_v5, %v9716_v5  ;;  %v9722_v17 = vld [vmem:[#allocation65_spill] sm:$0xff]  ;;  %v9723_v5 = vld [vmem:[#allocation66_spill] sm:$0xff] }
  0xc1   :  { %v2929_v4 = vsel %vm1708_vm5, %v9717_v58, %v2928_v6  ;;  %v2026_v16 = vsel %vm1712_vm7, %v9718_v44, %v2025_v42  ;;  %v7789_v19 = vrot.slane %v1258_v52, %v6471_v26  ;;  %v2176_v55 = vrot.slane %v1218_v3, %v6471_v26  ;;  %v9724_v6 = vld [vmem:[#allocation44_spill] sm:$0xff]  ;;  %v9725_v3 = vld [vmem:[#allocation9_spill] sm:$0xff] }
  0xc2   :  { %v2930_v23 = vsel %vm1710_vm6, %v9720_v0, %v2929_v4  ;;  %v2027_v37 = vsel %vm1714_vm8, %v9721_v39, %v2026_v16  ;;  %v5476_v12 = vrot.slane %v392_v10, 9  ;;  %v2937_v48 = vsel %vm1702_vm2, %v9723_v5, %v9722_v17 }
  0xc3   :  { %9719 = vst [vmem:[#allocation93_spill] sm:$0xff] %v7789_v19  ;;  %v2931_v18 = vsel %vm1712_vm7, %v9724_v6, %v2930_v23  ;;  %5894 = vmatmul.mubr.msk.f32.gmra.mrb[16].mxu1 %vm1772_vm9, %v2027_v37  ;;  %v2934_v42 = vsel %vm1710_vm6, %v7789_v19, %v2933_v11  ;;  %v2225_v52 = vsel %vm1710_vm6, %v2176_v55, %v2224_v60  ;;  %v9727_v23 = vld [vmem:[#allocation13_spill] sm:$0xff]  ;;  %v9728_v11 = vld [vmem:[#allocation64_spill] sm:$0xff] }
  0xc4   :  { %v2938_v4 = vsel %vm1704_vm3, %v9725_v3, %v2937_v48  ;;  %v2932_v16 = vsel %vm1714_vm8, %v7763_v9, %v2931_v18  ;;  %v2935_v50 = vsel %vm1712_vm7, %v9726_v36, %v2934_v42  ;;  %5898 = vmatprep.mubr.msk.f32.mxu1 %vm6377_vm1, %v9586_v8  ;;  %v2226_v37 = vsel %vm1712_vm7, %v9727_v23, %v2225_v52  ;;  %v9729_v55 = vld [vmem:[#allocation16_spill] sm:$0xff]  ;;  %v9730_v3 = vld [vmem:[#allocation15_spill] sm:$0xff]  ;;  %v9731_v18 = vld [vmem:[#allocation17_spill] sm:$0xff] }
  0xc5   :  { %v1266_v5 = vmax.f32 %v392_v10, %v5476_v12  ;;  %5992 = vmatmul.mubr.msk.f32.gmra.mrb[4].mxu0 %vm1772_vm9, %v2932_v16  ;;  %v2936_v60 = vsel %vm1714_vm8, %v9728_v11, %v2935_v50  ;;  %v2227_v48 = vsel %vm1714_vm8, %v9729_v55, %v2226_v37  ;;  %v2228_v17 = vsel %vm1702_vm2, %v9731_v18, %v9730_v3  ;;  %v9732_v42 = vld [vmem:[#allocation78_spill] sm:$0xff]  ;;  %v9734_v12 = vld [vmem:[#allocation25_spill] sm:$0xff] }
  0xc6   :  { %v528_v36 = vcombine.high %v9732_v42, %v9732_v42  ;;  %5994 = vmatprep.mubr.msk.f32.mxu0 %vm6377_vm1, %v9586_v8  ;;  %v2229_v52 = vsel %vm1704_vm3, %v9734_v12, %v2228_v17  ;;  %v1290_v50 = vmax.f32 %v9707_v28, %v5500_v22  ;;  %v2235_v16 = vsel %vm1702_vm2, %v7667_v35, %v9698_v33 }
  0xc7   :  { %v7828_v10 = vrot.slane %v1266_v5, %v6471_v26  ;;  %5899 = vmatmul.mubr.msk.f32.vlgmr.msra.gmra.mrb[0].mxu1 %vm1772_vm9, %v2227_v48  ;;  %v2230_v3 = vsel %vm1706_vm4, %v7656_v38, %v2229_v52  ;;  %v2236_v37 = vsel %vm1704_vm3, %v9668_v2, %v2235_v16  ;;  %v9735_v5 = vld [vmem:[#allocation86_spill] sm:$0xff]  ;;  %v9736_v52 = vld [vmem:[#allocation24_spill] sm:$0xff] }
  0xc8   :  { %v5508_v23 = vrot.slane %v528_v36, 9  ;;  %v562_v55 = vcombine.high %v9735_v5, %v9735_v5  ;;  %5901 = vmatprep.mubr.msk.f32.mxu1 %vm6377_vm1, %v9586_v8  ;;  %v2231_v28 = vsel %vm1708_vm5, %v9661_v61, %v2230_v3  ;;  %v7850_v22 = vrot.slane %v1290_v50, %v6471_v26  ;;  %v9751_v61 = vld [vmem:[#allocation60_spill] sm:$0xff] }
  0xc9   :  { %9733 = vst [vmem:[#allocation79_spill] sm:$0xff] %v7828_v10  ;;  %v2939_v17 = vsel %vm1706_vm4, %v7828_v10, %v2938_v4  ;;  %v2237_v38 = vsel %vm1706_vm4, %v9670_v31, %v2236_v37  ;;  %5995 = vmatmul.mubr.msk.f32.gmra.mrb[6].mxu0 %vm1772_vm9, %v2936_v60  ;;  %v2232_v4 = vsel %vm1710_vm6, %v6590_v57, %v2231_v28  ;;  %v9737_v60 = vld [vmem:[#allocation76_spill] sm:$0xff]  ;;  %v6350_v28 = vld [vmem:[%s9323_s1 + $0xc] sm:$0xf] }
  0xca   :  { %v2940_v48 = vsel %vm1708_vm5, %v9666_v54, %v2939_v17  ;;  %v1298_v18 = vmax.f32 %v528_v36, %v5508_v23  ;;  %v2238_v42 = vsel %vm1708_vm5, %v9673_v46, %v2237_v38  ;;  %5997 = vmatprep.mubr.msk.f32.mxu0 %vm6377_vm1, %v9586_v8  ;;  %v2233_v50 = vsel %vm1712_vm7, %v9736_v52, %v2232_v4  ;;  %v9738_v23 = vld [vmem:[#allocation26_spill] sm:$0xff] }
  0xcb   :  { %v2941_v12 = vsel %vm1710_vm6, %v9669_v20, %v2940_v48  ;;  %v2944_v16 = vsel %vm1702_vm2, %v7850_v22, %v9737_v60  ;;  %v2239_v3 = vsel %vm1710_vm6, %v6734_v15, %v2238_v42  ;;  %v2234_v37 = vsel %vm1714_vm8, %v9738_v23, %v2233_v50  ;;  %6172 = vmatpush3.msk.msra.mxu1 %vm1791_vm0, %v6350_v28  ;;  %v9740_v42 = vld [vmem:[#allocation51_spill] sm:$0xff]  ;;  %v9742_v28 = vld [vmem:[#allocation90_spill] sm:$0xff] }
  0xcc   :  { %v2942_v36 = vsel %vm1712_vm7, %v9672_v27, %v2941_v12  ;;  %v7877_v5 = vrot.slane %v1298_v18, %v6471_v26  ;;  %v2945_v17 = vsel %vm1704_vm3, %v7124_v49, %v2944_v16  ;;  %5902 = vmatmul.mubr.msk.f32.gmra.mrb[2].mxu1 %vm1772_vm9, %v2234_v37  ;;  %v2240_v4 = vsel %vm1712_vm7, %v9711_v45, %v2239_v3  ;;  %v9741_v12 = vld [vmem:[#allocation52_spill] sm:$0xff] }
  0xcd   :  { %v2943_v38 = vsel %vm1714_vm8, %v7073_v63, %v2942_v36  ;;  %v2946_v48 = vsel %vm1706_vm4, %v7139_v25, %v2945_v17  ;;  %v5516_v18 = vrot.slane %v562_v55, 9  ;;  %v7895_v50 = vsel %vm1702_vm2, %v9741_v12, %v9740_v42  ;;  %5904 = vmatprep.mubr.msk.f32.mxu1 %vm6377_vm1, %v9586_v8  ;;  %v9743_v42 = vld [vmem:[#allocation82_spill] sm:$0xff]  ;;  %v9747_v12 = vld [vmem:[#allocation49_spill] sm:$0xff] }
  0xce   :  { %9739 = vst [vmem:[#allocation59_spill] sm:$0xff] %v7877_v5  ;;  %5998 = vmatmul.mubr.msk.f32.gmra.mrb[8].mxu0 %vm1772_vm9, %v2943_v38  ;;  %v2947_v16 = vsel %vm1708_vm5, %v7127_v21, %v2946_v48  ;;  %v2241_v36 = vsel %vm1714_vm8, %v7745_v56, %v2240_v4  ;;  %v5492_v37 = vrot.slane %v7731_v7, 9  ;;  %v2951_v38 = vsel %vm1708_vm5, %v9742_v28, %v7682_v24  ;;  %v9744_v56 = vld [vmem:[#allocation87_spill] sm:$0xff] }
  0xcf   :  { %6000 = vmatprep.mubr.msk.f32.mxu0 %vm6377_vm1, %v9586_v8  ;;  %v2948_v3 = vsel %vm1710_vm6, %v7142_v41, %v2947_v16  ;;  %v1306_v17 = vmax.f32 %v562_v55, %v5516_v18  ;;  %v2242_v48 = vsel %vm1702_vm2, %v9714_v43, %v9713_v62  ;;  %v596_v10 = vcombine.high %v9744_v56, %v9744_v56  ;;  %v9745_v16 = vld [vmem:[#allocation97_spill] sm:$0xff] }
  0xd0   :  { %v2949_v4 = vsel %vm1712_vm7, %v9743_v42, %v2948_v3  ;;  %v2243_v35 = vsel %vm1704_vm3, %v9717_v58, %v2242_v48  ;;  %v2955_v55 = vsel %vm1704_vm3, %v9745_v16, %v7727_v14  ;;  %5905 = vmatmul.mubr.msk.f32.gmra.mrb[4].mxu1 %vm1772_vm9, %v2241_v36  ;;  %v9748_v48 = vld [vmem:[#allocation50_spill] sm:$0xff] }
  0xd1   :  { %v2950_v24 = vsel %vm1714_vm8, %v7877_v5, %v2949_v4  ;;  %v7928_v18 = vrot.slane %v1306_v17, %v6471_v26  ;;  %v2244_v3 = vsel %vm1706_vm4, %v9720_v0, %v2243_v35  ;;  %v2249_v33 = vsel %vm1702_vm2, %v9748_v48, %v9747_v12  ;;  %5907 = vmatprep.mubr.msk.f32.mxu1 %vm6377_vm1, %v9586_v8  ;;  %v9749_v17 = vld [vmem:[#allocation95_spill] sm:$0xff] }
  0xd2   :  { %6001 = vmatmul.mubr.msk.f32.gmra.mrb[10].mxu0 %vm1772_vm9, %v2950_v24  ;;  %v2245_v14 = vsel %vm1708_vm5, %v9724_v6, %v2244_v3  ;;  %v5524_v56 = vrot.slane %v596_v10, 9  ;;  %v2250_v36 = vsel %vm1704_vm3, %v6938_v29, %v2249_v33  ;;  %v630_v4 = vcombine.high %v9749_v17, %v9749_v17  ;;  %v9750_v29 = vld [vmem:[#allocation45_spill] sm:$0xff] }
  0xd3   :  { %9746 = vst [vmem:[#allocation85_spill] sm:$0xff] %v7928_v18  ;;  %6003 = vmatprep.mubr.msk.f32.mxu0 %vm6377_vm1, %v9586_v8  ;;  %v2952_v35 = vsel %vm1710_vm6, %v7928_v18, %v2951_v38  ;;  %v2246_v24 = vsel %vm1710_vm6, %v7763_v9, %v2245_v14  ;;  %v2251_v45 = vsel %vm1706_vm4, %v7789_v19, %v2250_v36  ;;  %v9752_v14 = vld [vmem:[#allocation47_spill] sm:$0xff]  ;;  %v9753_v36 = vld [vmem:[#allocation62_spill] sm:$0xff] }
  0xd4   :  { %v664_v3 = vcombine.high %v7572_v1, %v7572_v1  ;;  %v2953_v33 = vsel %vm1712_vm7, %v7242_v53, %v2952_v35  ;;  %v2247_v17 = vsel %vm1712_vm7, %v9750_v29, %v2246_v24  ;;  %v1314_v6 = vmax.f32 %v596_v10, %v5524_v56  ;;  %v9755_v10 = vld [vmem:[#allocation61_spill] sm:$0xff] }
  0xd5   :  { %v2252_v11 = vsel %vm1708_vm5, %v9751_v61, %v2251_v45  ;;  %v2954_v38 = vsel %vm1714_vm8, %v9676_v32, %v2953_v33  ;;  %v2248_v9 = vsel %vm1714_vm8, %v9752_v14, %v2247_v17  ;;  %v5532_v1 = vrot.slane %v630_v4, 9 }
  0xd6   :  { %v2253_v19 = vsel %vm1710_vm6, %v9753_v36, %v2252_v11  ;;  %6004 = vmatmul.mubr.msk.f32.gmra.mrb[12].mxu0 %vm1772_vm9, %v2954_v38  ;;  %5908 = vmatmul.mubr.msk.f32.gmra.mrb[6].mxu1 %vm1772_vm9, %v2248_v9  ;;  %v7969_v35 = vrot.slane %v1314_v6, %v6471_v26  ;;  %v5540_v45 = vrot.slane %v664_v3, 9  ;;  %v1282_v56 = vmax.f32 %v7731_v7, %v5492_v37  ;;  %v9756_v11 = vld [vmem:[#allocation63_spill] sm:$0xff]  ;;  %v9757_v9 = vld [vmem:[#allocation53_spill] sm:$0xff] }
  0xd7   :  { %v2254_v61 = vsel %vm1712_vm7, %v9755_v10, %v2253_v19  ;;  %6006 = vmatprep.mubr.msk.f32.mxu0 %vm6377_vm1, %v9586_v8  ;;  %5910 = vmatprep.mubr.msk.f32.mxu1 %vm6377_vm1, %v9586_v8  ;;  %v1322_v33 = vmax.f32 %v630_v4, %v5532_v1  ;;  %v3172_v6 = vsel %vm1706_vm4, %v6590_v57, %v9757_v9  ;;  %v9759_v1 = vld [vmem:[#allocation73_spill] sm:$0xff]  ;;  %v9762_v9 = vld [vmem:[#allocation102_spill] sm:$0xff] }
  0xd8   :  { %9754 = vst [vmem:[#allocation72_spill] sm:$0xff] %v7969_v35  ;;  %v2255_v24 = vsel %vm1714_vm8, %v9756_v11, %v2254_v61  ;;  %v2956_v19 = vsel %vm1706_vm4, %v7969_v35, %v2955_v55  ;;  %v1330_v17 = vmax.f32 %v664_v3, %v5540_v45  ;;  %v2200_v7 = vrot.slane %v1282_v56, %v6471_v26  ;;  %v9760_v61 = vld [vmem:[#allocation28_spill] sm:$0xff] }
  0xd9   :  { %v3173_v37 = vsel %vm1708_vm5, %v9736_v52, %v3172_v6  ;;  %v7991_v38 = vsel %vm1702_vm2, %v7157_v51, %v7649_v13  ;;  %v2957_v4 = vsel %vm1708_vm5, %v7310_v47, %v2956_v19  ;;  %v7996_v36 = vrot.slane %v1322_v33, %v6471_v26 }
  0xda   :  { %v3174_v55 = vsel %vm1710_vm6, %v9738_v23, %v3173_v37  ;;  %v2958_v3 = vsel %vm1710_vm6, %v7328_v59, %v2957_v4  ;;  %5911 = vmatmul.mubr.msk.f32.gmra.mrb[8].mxu1 %vm1772_vm9, %v2255_v24  ;;  %v2256_v10 = vsel %vm1702_vm2, %v2200_v7, %v9759_v1  ;;  %v2263_v56 = vsel %vm1702_vm2, %v7139_v25, %v7124_v49  ;;  %v9763_v37 = vld [vmem:[#allocation29_spill] sm:$0xff] }
  0xdb   :  { %9758 = vst [vmem:[#allocation68_spill] sm:$0xff] %v7996_v36  ;;  %v3175_v45 = vsel %vm1712_vm7, %v9760_v61, %v3174_v55  ;;  %v2959_v11 = vsel %vm1712_vm7, %v9718_v44, %v2958_v3  ;;  %v8013_v33 = vrot.slane %v1330_v17, %v6471_v26  ;;  %v2961_v24 = vsel %vm1702_vm2, %v7996_v36, %v9762_v9 }
  0xdc   :  { %5913 = vmatprep.mubr.msk.f32.mxu1 %vm6377_vm1, %v9586_v8  ;;  %v2257_v6 = vsel %vm1704_vm3, %v9666_v54, %v2256_v10  ;;  %v2960_v19 = vsel %vm1714_vm8, %v9721_v39, %v2959_v11  ;;  %v2962_v7 = vsel %vm1704_vm3, %v7592_v30, %v2961_v24  ;;  %v3176_v4 = vsel %vm1714_vm8, %v9763_v37, %v3175_v45 }
  0xdd   :  { %9761 = vst [vmem:[#allocation94_spill] sm:$0xff] %v8013_v33  ;;  %v2258_v17 = vsel %vm1706_vm4, %v9669_v20, %v2257_v6  ;;  %6007 = vmatmul.mubr.msk.f32.gmra.mrb[14].mxu0 %vm1772_vm9, %v2960_v19  ;;  %v2963_v55 = vsel %vm1706_vm4, %v7603_v34, %v2962_v7  ;;  %v2264_v3 = vsel %vm1704_vm3, %v7127_v21, %v2263_v56  ;;  %v9764_v56 = vld [vmem:[#allocation18_spill] sm:$0xff] }
  0xde   :  { %v2259_v54 = vsel %vm1708_vm5, %v9672_v27, %v2258_v17  ;;  %v3177_v1 = vsel %vm1702_vm2, %v9670_v31, %v9668_v2  ;;  %6009 = vmatprep.mubr.msk.f32.mxu0 %vm6377_vm1, %v9586_v8  ;;  %v2964_v20 = vsel %vm1708_vm5, %v7606_v40, %v2963_v55  ;;  %v2265_v61 = vsel %vm1706_vm4, %v7142_v41, %v2264_v3  ;;  %v9765_v7 = vld [vmem:[#allocation14_spill] sm:$0xff] }
  0xdf   :  { %v2260_v10 = vsel %vm1710_vm6, %v7073_v63, %v2259_v54  ;;  %v3178_v45 = vsel %vm1704_vm3, %v9673_v46, %v3177_v1  ;;  %v2965_v11 = vsel %vm1710_vm6, %v9764_v56, %v2964_v20  ;;  %v2266_v6 = vsel %vm1708_vm5, %v9743_v42, %v2265_v61  ;;  %v9766_v3 = vld [vmem:[#allocation38_spill] sm:$0xff]  ;;  %v9767_v20 = vld [vmem:[#allocation83_spill] sm:$0xff]  ;;  %v9768_v61 = vld [vmem:[#allocation40_spill] sm:$0xff] }
  0xe0   :  { %v2261_v24 = vsel %vm1712_vm7, %v9737_v60, %v2260_v10  ;;  %v3179_v19 = vsel %vm1706_vm4, %v6734_v15, %v3178_v45  ;;  %v2966_v17 = vsel %vm1712_vm7, %v9765_v7, %v2965_v11  ;;  %v2267_v54 = vsel %vm1710_vm6, %v7877_v5, %v2266_v6  ;;  %v9769_v11 = vld [vmem:[#allocation88_spill] sm:$0xff]  ;;  %v9770_v7 = vld [vmem:[#allocation89_spill] sm:$0xff]  ;;  %v57_v6 = vld [vmem:[%s9322_s0 + $0xf0] sm:$0xff] }
  0xe1   :  { %v2262_v55 = vsel %vm1714_vm8, %v7850_v22, %v2261_v24  ;;  %v3180_v1 = vsel %vm1708_vm5, %v9766_v3, %v3179_v19  ;;  %v2967_v60 = vsel %vm1714_vm8, %v8013_v33, %v2966_v17  ;;  %v2268_v10 = vsel %vm1712_vm7, %v9767_v20, %v2267_v54  ;;  %v55_v24 = vld [vmem:[%s9322_s0 + $0xe0] sm:$0xff]  ;;  %v9771_v19 = vld [vmem:[#allocation84_spill] sm:$0xff] }
  0xe2   :  { %5914 = vmatmul.mubr.msk.f32.gmra.mrb[10].mxu1 %vm1772_vm9, %v2262_v55  ;;  %v3181_v45 = vsel %vm1710_vm6, %v9768_v61, %v3180_v1  ;;  %v2270_v22 = vsel %vm1702_vm2, %v9770_v7, %v9769_v11  ;;  %6010 = vmatmul.mubr.msk.f32.gmra.mrb[16].mxu0 %vm1772_vm9, %v2967_v60  ;;  %v2269_v17 = vsel %vm1714_vm8, %v9771_v19, %v2268_v10  ;;  %v9772_v5 = vld [vmem:[#allocation48_spill] sm:$0xff] }
  0xe3   :  { %5916 = vmatprep.mubr.msk.f32.mxu1 %vm6377_vm1, %v9586_v8  ;;  %v3182_v55 = vsel %vm1712_vm7, %v9713_v62, %v3181_v45  ;;  %v2271_v54 = vsel %vm1704_vm3, %v9742_v28, %v2270_v22  ;;  %6014 = vmatprep.mubr.msk.f32.mxu0 %vm6377_vm1, %v9586_v8  ;;  %v3184_v60 = vsel %vm1702_vm2, %v9720_v0, %v9717_v58  ;;  %v5625_v45 = vld [vmem:[%s9323_s1 + $0x1c] sm:$0xf] }
  0xe4   :  { %v3183_v3 = vsel %vm1714_vm8, %v9714_v43, %v3182_v55  ;;  %v2272_v1 = vsel %vm1706_vm4, %v7928_v18, %v2271_v54  ;;  %v2277_v10 = vsel %vm1702_vm2, %v7969_v35, %v9745_v16  ;;  %v3185_v55 = vsel %vm1704_vm3, %v9772_v5, %v3184_v60  ;;  %v9773_v35 = vld [vmem:[#allocation46_spill] sm:$0xff]  ;;  %v9775_v5 = vld [vmem:[#allocation92_spill] sm:$0xff] }
  0xe5   :  { %v2273_v22 = vsel %vm1708_vm5, %v7242_v53, %v2272_v1  ;;  %v2278_v54 = vsel %vm1704_vm3, %v7310_v47, %v2277_v10  ;;  %v105_v18 = vmax.f32 %v55_v24, %v57_v6  ;;  %v3186_v16 = vsel %vm1706_vm4, %v9773_v35, %v3185_v55  ;;  %v9774_v1 = vld [vmem:[#allocation56_spill] sm:$0xff]  ;;  %v9777_v10 = vld [vmem:[#allocation7_spill] sm:$0xff]  ;;  %v9778_v55 = vld [vmem:[#allocation5_spill] sm:$0xff] }
  0xe6   :  { %5917 = vmatmul.mubr.msk.f32.gmra.mrb[12].mxu1 %vm1772_vm9, %v2269_v17  ;;  %v2274_v28 = vsel %vm1710_vm6, %v9676_v32, %v2273_v22  ;;  %v2279_v33 = vsel %vm1706_vm4, %v7328_v59, %v2278_v54  ;;  %v3192_v58 = vsel %vm1704_vm3, %v9774_v1, %v7895_v50  ;;  %6015 = vmatmul.mubr.msk.f32.vlgmr.msra.gmra.mrb[0].mxu0 %vm1772_vm9, %v3176_v4  ;;  %v9776_v50 = vld [vmem:[#allocation96_spill] sm:$0xff] }
  0xe7   :  { %5919 = vmatprep.mubr.msk.f32.mxu1 %vm6377_vm1, %v9586_v8  ;;  %v2275_v24 = vsel %vm1712_vm7, %v9775_v5, %v2274_v28  ;;  %v3187_v6 = vsel %vm1708_vm5, %v9750_v29, %v3186_v16  ;;  %v2280_v17 = vsel %vm1708_vm5, %v9718_v44, %v2279_v33  ;;  %6042 = vmatpush3.msk.msra.mxu0 %vm1791_vm0, %v5625_v45  ;;  %v9783_v43 = vld [vmem:[#allocation80_spill] sm:$0xff] }
  0xe8   :  { %6017 = vmatprep.mubr.msk.f32.mxu0 %vm6377_vm1, %v9586_v8  ;;  %v2276_v4 = vsel %vm1714_vm8, %v9776_v50, %v2275_v24  ;;  %v3188_v60 = vsel %vm1710_vm6, %v9752_v14, %v3187_v6  ;;  %v2281_v28 = vsel %vm1710_vm6, %v9721_v39, %v2280_v17  ;;  %v393_v45 = vcombine.high %v105_v18, %v105_v18  ;;  %v56_v24 = vld [vmem:[%s9322_s0 + $0xe8] sm:$0xff]  ;;  %v58_v6 = vld [vmem:[%s9322_s0 + $0xf8] sm:$0xff] }
  0xe9   :  { %v3189_v16 = vsel %vm1712_vm7, %v9747_v12, %v3188_v60  ;;  %v2282_v33 = vsel %vm1712_vm7, %v9762_v9, %v2281_v28  ;;  %v400_v54 = vrot.slane %v105_v18, %v9778_v55  ;;  %6070 = vmatprep.subr.mxu0 %v9586_v8  ;;  %v9779_v28 = vld [vmem:[#allocation64_spill] sm:$0xff]  ;;  %v2521_v22 = vsel %vm1702_vm2, %v7073_v63, %v9672_v27 }
  0xea   :  { %5920 = vmatmul.mubr.msk.f32.gmra.mrb[14].mxu1 %vm1772_vm9, %v2276_v4  ;;  %v3190_v17 = vsel %vm1714_vm8, %v9748_v48, %v3189_v16  ;;  %v2283_v60 = vsel %vm1714_vm8, %v7996_v36, %v2282_v33  ;;  %v3193_v18 = vsel %vm1706_vm4, %v9779_v28, %v3192_v58  ;;  %6018 = vmatmul.mubr.msk.f32.gmra.mrb[2].mxu0 %vm1772_vm9, %v3183_v3  ;;  %v9780_v16 = vld [vmem:[#allocation65_spill] sm:$0xff]  ;;  %v9781_v58 = vld [vmem:[#allocation66_spill] sm:$0xff] }
  0xeb   :  { %5922 = vmatprep.mubr.msk.f32.mxu1 %vm6377_vm1, %v9586_v8  ;;  %v407_v4 = vrot.slane %v393_v45, %v9778_v55  ;;  %v408_v9 = vcombine.high %v400_v54, %v400_v54  ;;  %v5477_v42 = vrot.slane %v400_v54, 9  ;;  %v3194_v48 = vsel %vm1708_vm5, %v9780_v16, %v3193_v18  ;;  %6020 = vmatprep.mubr.msk.f32.mxu0 %vm6377_vm1, %v9586_v8  ;;  %v9782_v36 = vld [vmem:[#allocation69_spill] sm:$0xff] }
  0xec   :  { %v3195_v33 = vsel %vm1710_vm6, %v9781_v58, %v3194_v48  ;;  %v2522_v63 = vsel %vm1704_vm3, %v9782_v36, %v2521_v22  ;;  %v8175_v27 = vmax.f32 %v56_v24, %v58_v6  ;;  %v2529_v3 = vsel %vm1704_vm3, %v9767_v20, %v7991_v38 }
  0xed   :  { %v5478_v45 = vrot.slane %v408_v9, 9  ;;  %v1267_v12 = vmax.f32 %v400_v54, %v5477_v42  ;;  %v2523_v18 = vsel %vm1706_vm4, %v9783_v43, %v2522_v63  ;;  %v409_v16 = vcombine.high %v407_v4, %v407_v4 }
  0xee   :  { %5923 = vmatmul.mubr.msk.f32.gmra.mrb[16].mxu1 %vm1772_vm9, %v2283_v60  ;;  %v2524_v48 = vsel %vm1708_vm5, %v7124_v49, %v2523_v18  ;;  %v417_v22 = vrot.slane %v8175_v27, %v9778_v55  ;;  %v5479_v24 = vrot.slane %v407_v4, 9  ;;  %v2530_v6 = vsel %vm1706_vm4, %v9771_v19, %v2529_v3  ;;  %6021 = vmatmul.mubr.msk.f32.gmra.mrb[4].mxu0 %vm1772_vm9, %v3190_v17 }
  0xef   :  { %v1268_v38 = vmax.f32 %v408_v9, %v5478_v45  ;;  %v3125_v42 = vrot.slane %v1267_v12, %v6471_v26  ;;  %5942 = vmatprep.mubr.msk.f32.mxu1 %vm6377_vm1, %v9586_v8  ;;  %v2525_v54 = vsel %vm1710_vm6, %v7139_v25, %v2524_v48  ;;  %v5480_v60 = vrot.slane %v409_v16, 9  ;;  %6023 = vmatprep.mubr.msk.f32.mxu0 %vm6377_vm1, %v9586_v8 }
  0xf0   :  { %v2526_v63 = vsel %vm1712_vm7, %v7127_v21, %v2525_v54  ;;  %v425_v18 = vcombine.high %v417_v22, %v417_v22  ;;  %v5481_v3 = vrot.slane %v417_v22, 9  ;;  %v1269_v58 = vmax.f32 %v407_v4, %v5479_v24 }
  0xf1   :  { %v8200_v9 = vrot.slane %v1268_v38, %v6471_v26  ;;  %v3196_v12 = vsel %vm1712_vm7, %v3125_v42, %v3195_v33  ;;  %v2527_v17 = vsel %vm1714_vm8, %v7142_v41, %v2526_v63  ;;  %v1270_v45 = vmax.f32 %v409_v16, %v5480_v60  ;;  %v9785_v63 = vld [vmem:[#allocation91_spill] sm:$0xff] }
  0xf2   :  { %5943 = vmatmul.mubr.msk.f32.vlgmr.msra.gmra.mrb[10].mxu1 %vm1772_vm9, %v2527_v17  ;;  %v5482_v48 = vrot.slane %v425_v18, 9  ;;  %v1271_v2 = vmax.f32 %v417_v22, %v5481_v3  ;;  %v8207_v14 = vrot.slane %v1269_v58, %v6471_v26  ;;  %v2531_v54 = vsel %vm1708_vm5, %v9769_v11, %v2530_v6  ;;  %v9784_v6 = vld [vmem:[#allocation67_spill] sm:$0xff] }
  0xf3   :  { %v3197_v4 = vsel %vm1714_vm8, %v8200_v9, %v3196_v12  ;;  %v8214_v24 = vrot.slane %v1270_v45, %v6471_v26  ;;  %5945 = vmatprep.mubr.msk.f32.mxu1 %vm6377_vm1, %v9586_v8  ;;  %v2532_v16 = vsel %vm1710_vm6, %v9770_v7, %v2531_v54  ;;  %v3205_v58 = vsel %vm1702_vm2, %v7142_v41, %v7127_v21 }
  0xf4   :  { %6024 = vmatmul.mubr.msk.f32.gmra.mrb[6].mxu0 %vm1772_vm9, %v3197_v4  ;;  %v1272_v33 = vmax.f32 %v425_v18, %v5482_v48  ;;  %v8225_v22 = vrot.slane %v1271_v2, %v6471_v26  ;;  %v2533_v38 = vsel %vm1712_vm7, %v9784_v6, %v2532_v16  ;;  %v3206_v42 = vsel %vm1704_vm3, %v7649_v13, %v3205_v58 }
  0xf5   :  { %6026 = vmatprep.mubr.msk.f32.mxu0 %vm6377_vm1, %v9586_v8  ;;  %v3198_v60 = vsel %vm1702_vm2, %v8214_v24, %v8207_v14  ;;  %v2534_v3 = vsel %vm1714_vm8, %v9785_v63, %v2533_v38  ;;  %v3207_v2 = vsel %vm1706_vm4, %v7157_v51, %v3206_v42  ;;  %v2535_v18 = vsel %vm1702_vm2, %v9676_v32, %v7242_v53  ;;  %v9788_v38 = vld [vmem:[#allocation75_spill] sm:$0xff] }
  0xf6   :  { %v8244_v12 = vrot.slane %v1272_v33, %v6471_v26  ;;  %v3199_v13 = vsel %vm1704_vm3, %v8225_v22, %v3198_v60  ;;  %5946 = vmatmul.mubr.msk.f32.gmra.mrb[12].mxu1 %vm1772_vm9, %v2534_v3  ;;  %v3208_v17 = vsel %vm1708_vm5, %v9767_v20, %v3207_v2  ;;  %v2536_v45 = vsel %vm1704_vm3, %v9775_v5, %v2535_v18  ;;  %v9789_v2 = vld [vmem:[#allocation98_spill] sm:$0xff] }
  0xf7   :  { %v3209_v48 = vsel %vm1710_vm6, %v9771_v19, %v3208_v17  ;;  %5948 = vmatprep.mubr.msk.f32.mxu1 %vm6377_vm1, %v9586_v8  ;;  %v8259_v54 = vsel %vm1706_vm4, %v9776_v50, %v2536_v45  ;;  %v3212_v4 = vsel %vm1702_vm2, %v9785_v63, %v9784_v6  ;;  %v9787_v16 = vrot.slane %v9777_v10, 9 }
  0xf8   :  { %9786 = vst [vmem:[#allocation22_spill] sm:$0xff] %v8259_v54  ;;  %v3200_v33 = vsel %vm1706_vm4, %v8244_v12, %v3199_v13  ;;  %v2538_v42 = vsel %vm1708_vm5, %v9788_v38, %v8259_v54  ;;  %v3213_v60 = vsel %vm1704_vm3, %v7242_v53, %v3212_v4  ;;  %v3210_v6 = vsel %vm1712_vm7, %v9769_v11, %v3209_v48  ;;  %v87_v48 = vld [vmem:[%s9322_s0 + $0x1e0] sm:$0xff] }
  0xf9   :  { %v1323_v58 = vmax.f32 %v9777_v10, %v9787_v16  ;;  %v3201_v3 = vsel %vm1708_vm5, %v9782_v36, %v3200_v33  ;;  %v2539_v18 = vsel %vm1710_vm6, %v9789_v2, %v2538_v42  ;;  %v3214_v10 = vsel %vm1706_vm4, %v9676_v32, %v3213_v60  ;;  %v89_v60 = vld [vmem:[%s9322_s0 + $0x1f0] sm:$0xff] }
  0xfa   :  { %v3202_v13 = vsel %vm1710_vm6, %v9783_v43, %v3201_v3  ;;  %v2540_v17 = vsel %vm1712_vm7, %v7310_v47, %v2539_v18  ;;  %v3215_v45 = vsel %vm1708_vm5, %v9775_v5, %v3214_v10  ;;  %v8301_v42 = vsel %vm1702_vm2, %v9721_v39, %v9718_v44  ;;  %v90_v3 = vld [vmem:[%s9322_s0 + $0x1f8] sm:$0xff] }
  0xfb   :  { %v2465_v36 = vrot.slane %v1323_v58, %v6471_v26  ;;  %v3203_v4 = vsel %vm1712_vm7, %v7124_v49, %v3202_v13  ;;  %v2541_v16 = vsel %vm1714_vm8, %v7328_v59, %v2540_v17  ;;  %v3216_v33 = vsel %vm1710_vm6, %v9776_v50, %v3215_v45  ;;  %9790 = vst [vmem:[#allocation23_spill] sm:$0xff] %v8301_v42  ;;  %v88_v58 = vld [vmem:[%s9322_s0 + $0x1e8] sm:$0xff]  ;;  %s6378_s0 = smov [#allocation2]  }
  0xfc   :  { %v3204_v18 = vsel %vm1714_vm8, %v7139_v25, %v3203_v4  ;;  %5949 = vmatmul.mubr.msk.f32.gmra.mrb[14].mxu1 %vm1772_vm9, %v2541_v16  ;;  %v3217_v10 = vsel %vm1712_vm7, %v9788_v38, %v3216_v33  ;;  %v3219_v17 = vsel %vm1702_vm2, %v7328_v59, %v7310_v47  ;;  %v3211_v45 = vsel %vm1714_vm8, %v9770_v7, %v3210_v6  ;;  %v9791_v4 = vld [vmem:[#allocation21_spill] sm:$0xff]  ;;  %v9792_v47 = vld [vmem:[#allocation19_spill] sm:$0xff]  ;;  %v9793_v7 = vld [vmem:[#allocation20_spill] sm:$0xff]  ;;  %s5410_s9 = sshll.u32 %s6378_s0, 4  ;;  %s5411_s9 = int_to_ptr.vmem [resolvable:$true] %s5410_s9 }
  0xfd   :  { %v2543_v13 = vsel %vm1704_vm3, %v2465_v36, %v8301_v42  ;;  %6027 = vmatmul.mubr.msk.f32.gmra.mrb[8].mxu0 %vm1772_vm9, %v3204_v18  ;;  %5951 = vmatprep.mubr.msk.f32.mxu1 %vm6377_vm1, %v9586_v8  ;;  %v3220_v38 = vsel %vm1704_vm3, %v9718_v44, %v3219_v17  ;;  %v121_v54 = vmax.f32 %v87_v48, %v89_v60  ;;  %p6356_p1 = scmp.lt.s32.totalorder %s5411_s9, %s5411_s9 }
  0xfe   :  { %v2544_v16 = vsel %vm1706_vm4, %v9791_v4, %v2543_v13  ;;  %6029 = vmatprep.mubr.msk.f32.mxu0 %vm6377_vm1, %v9586_v8  ;;  %v3221_v18 = vsel %vm1706_vm4, %v9721_v39, %v3220_v38  ;;  %v8337_v6 = vmax.f32 %v88_v58, %v90_v3  ;;  %v3218_v42 = vsel %vm1714_vm8, %v9789_v2, %v3217_v10 }
  0xff   :  { %v2545_v33 = vsel %vm1708_vm5, %v7592_v30, %v2544_v16  ;;  %v3222_v17 = vsel %vm1708_vm5, %v2465_v36, %v3221_v18  ;;  %v3385_v21 = vsel %vm1702_vm2, %v9793_v7, %v9792_v47  ;;  %v665_v58 = vcombine.high %v121_v54, %v121_v54 }
 0x100   :  { %v2546_v13 = vsel %vm1710_vm6, %v7603_v34, %v2545_v33  ;;  %v3223_v48 = vsel %vm1710_vm6, %v9791_v4, %v3222_v17  ;;  %v672_v60 = vrot.slane %v121_v54, %v9778_v55  ;;  %v689_v36 = vrot.slane %v8337_v6, %v9778_v55 }
 0x101   :  { %v2547_v16 = vsel %vm1712_vm7, %v7606_v40, %v2546_v13  ;;  %6030 = vmatmul.mubr.msk.f32.gmra.mrb[10].mxu0 %vm1772_vm9, %v3211_v45  ;;  %v3226_v47 = vsel %vm1702_vm2, %v9764_v56, %v7606_v40  ;;  %v3386_v7 = vsel %vm1704_vm3, %v6590_v57, %v3385_v21  ;;  %v3224_v54 = vsel %vm1712_vm7, %v7592_v30, %v3223_v48 }
 0x102   :  { %v2548_v3 = vsel %vm1714_vm8, %v9764_v56, %v2547_v16  ;;  %6032 = vmatprep.mubr.msk.f32.mxu0 %vm6377_vm1, %v9586_v8  ;;  %v679_v10 = vrot.slane %v665_v58, %v9778_v55  ;;  %v680_v45 = vcombine.high %v672_v60, %v672_v60  ;;  %v5541_v38 = vrot.slane %v672_v60, 9 }
 0x103   :  { %5952 = vmatmul.mubr.msk.f32.gmra.mrb[16].mxu1 %vm1772_vm9, %v2548_v3  ;;  %v697_v33 = vcombine.high %v689_v36, %v689_v36  ;;  %v5545_v18 = vrot.slane %v689_v36, 9  ;;  %v3387_v13 = vsel %vm1706_vm4, %v9736_v52, %v3386_v7  ;;  %v3392_v57 = vsel %vm1702_vm2, %v9673_v46, %v9670_v31 }
 0x104   :  { %v681_v21 = vcombine.high %v679_v10, %v679_v10  ;;  %v5542_v17 = vrot.slane %v680_v45, 9  ;;  %v5543_v16 = vrot.slane %v679_v10, 9  ;;  %v1331_v3 = vmax.f32 %v672_v60, %v5541_v38  ;;  %v9794_v60 = vld [vmem:[#allocation35_spill] sm:$0xff] }
 0x105   :  { %6033 = vmatmul.mubr.msk.f32.gmra.mrb[12].mxu0 %vm1772_vm9, %v3218_v42  ;;  %v3225_v48 = vsel %vm1714_vm8, %v7603_v34, %v3224_v54  ;;  %v5546_v58 = vrot.slane %v697_v33, 9  ;;  %v1335_v40 = vmax.f32 %v689_v36, %v5545_v18  ;;  %v3393_v30 = vsel %vm1704_vm3, %v6734_v15, %v3392_v57 }
 0x106   :  { %6035 = vmatprep.mubr.msk.f32.mxu0 %vm6377_vm1, %v9586_v8  ;;  %v5544_v52 = vrot.slane %v681_v21, 9  ;;  %v1332_v7 = vmax.f32 %v680_v45, %v5542_v17  ;;  %v1333_v46 = vmax.f32 %v679_v10, %v5543_v16  ;;  %v3149_v31 = vrot.slane %v1331_v3, %v6471_v26  ;;  %v9795_v45 = vld [vmem:[#allocation44_spill] sm:$0xff] }
 0x107   :  { %v1336_v2 = vmax.f32 %v697_v33, %v5546_v58  ;;  %v3388_v42 = vsel %vm1708_vm5, %v9738_v23, %v3387_v13  ;;  %v3394_v54 = vsel %vm1706_vm4, %v9794_v60, %v3393_v30  ;;  %v8394_v10 = vrot.slane %v1335_v40, %v6471_v26  ;;  %v9797_v17 = vld [vmem:[#allocation52_spill] sm:$0xff] }
 0x108   :  { %v1334_v38 = vmax.f32 %v681_v21, %v5544_v52  ;;  %v8386_v36 = vrot.slane %v1332_v7, %v6471_v26  ;;  %v8389_v15 = vrot.slane %v1333_v46, %v6471_v26  ;;  %v3227_v18 = vsel %vm1704_vm3, %v3149_v31, %v3226_v47  ;;  %v9796_v47 = vld [vmem:[#allocation27_spill] sm:$0xff] }
 0x109   :  { %6036 = vmatmul.mubr.msk.f32.gmra.mrb[14].mxu0 %vm1772_vm9, %v3225_v48  ;;  %v3399_v23 = vsel %vm1702_vm2, %v9795_v45, %v9720_v0  ;;  %v8405_v33 = vrot.slane %v1336_v2, %v6471_v26  ;;  %v3389_v40 = vsel %vm1710_vm6, %v9796_v47, %v3388_v42  ;;  %v3395_v57 = vsel %vm1708_vm5, %v9768_v61, %v3394_v54  ;;  %v9798_v7 = vld [vmem:[#allocation47_spill] sm:$0xff] }
 0x10a   :  { %6038 = vmatprep.mubr.msk.f32.mxu0 %vm6377_vm1, %v9586_v8  ;;  %v8402_v30 = vrot.slane %v1334_v38, %v6471_v26  ;;  %v3228_v31 = vsel %vm1706_vm4, %v8386_v36, %v3227_v18  ;;  %v3400_v21 = vsel %vm1704_vm3, %v9773_v35, %v3399_v23  ;;  %v3406_v2 = vsel %vm1702_vm2, %v9774_v1, %v9797_v17  ;;  %v5636_v38 = vld [vmem:[%s9323_s1 + $0x20] sm:$0xf]  ;;  %v9801_v18 = vld [vmem:[#allocation43_spill] sm:$0xff] }
 0x10b   :  { %v3229_v13 = vsel %vm1708_vm5, %v8389_v15, %v3228_v31  ;;  %v3401_v3 = vsel %vm1706_vm4, %v9750_v29, %v3400_v21  ;;  %v3390_v58 = vsel %vm1712_vm7, %v9763_v37, %v3389_v40  ;;  %v3407_v61 = vsel %vm1704_vm3, %v9779_v28, %v3406_v2  ;;  %v9799_v37 = vld [vmem:[#allocation30_spill] sm:$0xff] }
 0x10c   :  { %v3230_v16 = vsel %vm1710_vm6, %v8402_v30, %v3229_v13  ;;  %v410_v35 = vcombine.high %v8175_v27, %v8175_v27  ;;  %v3396_v52 = vsel %vm1710_vm6, %v9713_v62, %v3395_v57  ;;  %v3402_v46 = vsel %vm1708_vm5, %v9798_v7, %v3401_v3  ;;  %v9800_v27 = vld [vmem:[#allocation65_spill] sm:$0xff]  ;;  %v9803_v21 = vld [vmem:[#allocation82_spill] sm:$0xff] }
 0x10d   :  { %v3231_v48 = vsel %vm1712_vm7, %v8394_v10, %v3230_v16  ;;  %v3391_v28 = vsel %vm1714_vm8, %v9799_v37, %v3390_v58  ;;  %v3408_v54 = vsel %vm1706_vm4, %v9800_v27, %v3407_v61  ;;  %v3397_v23 = vsel %vm1712_vm7, %v9801_v18, %v3396_v52  ;;  %v9802_v13 = vld [vmem:[#allocation49_spill] sm:$0xff]  ;;  %v9804_v2 = vld [vmem:[#allocation66_spill] sm:$0xff] }
 0x10e   :  { %v3232_v1 = vsel %vm1714_vm8, %v8405_v33, %v3231_v48  ;;  %v8440_v42 = vrot.slane %v410_v35, %v9778_v55  ;;  %v3413_v40 = vsel %vm1702_vm2, %v8225_v22, %v8214_v24  ;;  %v3403_v57 = vsel %vm1710_vm6, %v9802_v13, %v3402_v46  ;;  %v9805_v48 = vld [vmem:[#allocation41_spill] sm:$0xff]  ;;  %v9806_v35 = vld [vmem:[#allocation50_spill] sm:$0xff] }
 0x10f   :  { %6039 = vmatmul.mubr.msk.f32.gmra.mrb[16].mxu0 %vm1772_vm9, %v3232_v1  ;;  %v3420_v17 = vsel %vm1702_vm2, %v9803_v21, %v7142_v41  ;;  %v3409_v16 = vsel %vm1708_vm5, %v9804_v2, %v3408_v54  ;;  %v3398_v58 = vsel %vm1714_vm8, %v9805_v48, %v3397_v23  ;;  %v3414_v61 = vsel %vm1704_vm3, %v8244_v12, %v3413_v40  ;;  %v9808_v23 = vld [vmem:[#allocation58_spill] sm:$0xff] }
 0x110   :  { %6043 = vmatprep.mubr.msk.f32.mxu0 %vm6377_vm1, %v9586_v8  ;;  %v5483_v31 = vrot.slane %v8440_v42, 9  ;;  %v3404_v1 = vsel %vm1712_vm7, %v9806_v35, %v3403_v57  ;;  %v3421_v46 = vsel %vm1704_vm3, %v7157_v51, %v3420_v17  ;;  %v3427_v54 = vsel %vm1702_vm2, %v7242_v53, %v9785_v63 }
 0x111   :  { %v3422_v40 = vsel %vm1706_vm4, %v9767_v20, %v3421_v46  ;;  %v3428_v63 = vsel %vm1704_vm3, %v9676_v32, %v3427_v54  ;;  %v3434_v57 = vsel %vm1702_vm2, %v9718_v44, %v7328_v59  ;;  %v682_v2 = vcombine.high %v8337_v6, %v8337_v6  ;;  %v9811_v46 = vld [vmem:[#allocation79_spill] sm:$0xff] }
 0x112   :  { %v1273_v3 = vmax.f32 %v8440_v42, %v5483_v31  ;;  %v3405_v31 = vsel %vm1714_vm8, %v9808_v23, %v3404_v1  ;;  %v3429_v32 = vsel %vm1706_vm4, %v9775_v5, %v3428_v63  ;;  %v3435_v44 = vsel %vm1704_vm3, %v9721_v39, %v3434_v57  ;;  %v9810_v1 = vld [vmem:[#allocation14_spill] sm:$0xff] }
 0x113   :  { %6044 = vmatmul.mubr.msk.f32.vlgmr.msra.gmra.mrb[0].mxu0 %vm1772_vm9, %v3391_v28  ;;  %v9807_v28 = vld [vmem:[#allocation9_spill] sm:$0xff]  ;;  %v3441_v5 = vsel %vm1702_vm2, %v9810_v1, %v9764_v56  ;;  %v3430_v6 = vsel %vm1708_vm5, %v9776_v50, %v3429_v32  ;;  %v3621_v50 = vsel %vm1702_vm2, %v8244_v12, %v8225_v22  ;;  %v9815_v57 = vld [vmem:[#allocation94_spill] sm:$0xff] }
 0x114   :  { %6071 = vmatpush3.msk.msra.mxu0 %vm1791_vm0, %v5636_v38  ;;  %6046 = vmatprep.mubr.msk.f32.mxu0 %vm6377_vm1, %v9586_v8  ;;  %v8476_v52 = vrot.slane %v1273_v3, %v6471_v26  ;;  %v3410_v27 = vsel %vm1710_vm6, %v9807_v28, %v3409_v16  ;;  %v9809_v3 = vld [vmem:[#allocation71_spill] sm:$0xff]  ;;  %v3442_v63 = vsel %vm1704_vm3, %v8386_v36, %v3441_v5  ;;  %v9817_v22 = vld [vmem:[#allocation90_spill] sm:$0xff] }
 0x115   :  { %v3411_v53 = vsel %vm1712_vm7, %v8200_v9, %v3410_v27  ;;  %v9812_v27 = vld [vmem:[#allocation102_spill] sm:$0xff]  ;;  %v3443_v32 = vsel %vm1706_vm4, %v8389_v15, %v3442_v63  ;;  %v9820_v5 = vld [vmem:[#allocation99_spill] sm:$0xff] }
 0x116   :  { %v3415_v38 = vsel %vm1706_vm4, %v8476_v52, %v3414_v61  ;;  %v3412_v9 = vsel %vm1714_vm8, %v8207_v14, %v3411_v53  ;;  %v3436_v54 = vsel %vm1706_vm4, %v9812_v27, %v3435_v44  ;;  %v9814_v53 = vld [vmem:[#allocation89_spill] sm:$0xff]  ;;  %v9818_v44 = vld [vmem:[#allocation98_spill] sm:$0xff] }
 0x117   :  { %6047 = vmatmul.mubr.msk.f32.gmra.mrb[2].mxu0 %vm1772_vm9, %v3398_v58  ;;  %v3416_v51 = vsel %vm1708_vm5, %v9783_v43, %v3415_v38  ;;  %v3423_v43 = vsel %vm1708_vm5, %v9771_v19, %v3422_v40  ;;  %v3617_v58 = vsel %vm1708_vm5, %v9807_v28, %v9809_v3  ;;  %v9813_v38 = vld [vmem:[#allocation81_spill] sm:$0xff]  ;;  %v9819_v3 = vld [vmem:[#allocation10_spill] sm:$0xff] }
 0x118   :  { %6049 = vmatprep.mubr.msk.f32.mxu0 %vm6377_vm1, %v9586_v8  ;;  %v3417_v17 = vsel %vm1710_vm6, %v7124_v49, %v3416_v51  ;;  %v3424_v61 = vsel %vm1710_vm6, %v9769_v11, %v3423_v43  ;;  %v3618_v39 = vsel %vm1710_vm6, %v9811_v46, %v3617_v58  ;;  %v8542_v51 = vrot.slane %v682_v2, %v9778_v55  ;;  %v9816_v43 = vld [vmem:[#allocation97_spill] sm:$0xff] }
 0x119   :  { %v3418_v16 = vsel %vm1712_vm7, %v7139_v25, %v3417_v17  ;;  %v3619_v28 = vsel %vm1712_vm7, %v8207_v14, %v3618_v39  ;;  %v3425_v14 = vsel %vm1712_vm7, %v9814_v53, %v3424_v61  ;;  %v3645_v17 = vsel %vm1702_vm2, %v9815_v57, %v9810_v1  ;;  %v9823_v57 = vld [vmem:[#allocation32_spill] sm:$0xff] }
 0x11a   :  { %v8546_v40 = vsel %vm1714_vm8, %v8214_v24, %v3619_v28  ;;  %v3437_v24 = vsel %vm1708_vm5, %v9791_v4, %v3436_v54  ;;  %v3426_v12 = vsel %vm1714_vm8, %v9817_v22, %v3425_v14  ;;  %v5547_v36 = vrot.slane %v8542_v51, 9  ;;  %v9821_v54 = vld [vmem:[#allocation36_spill] sm:$0xff] }
 0x11b   :  { %6050 = vmatmul.mubr.msk.f32.gmra.mrb[4].mxu0 %vm1772_vm9, %v3405_v31  ;;  %v3419_v31 = vsel %vm1714_vm8, %v9813_v38, %v3418_v16  ;;  %v3646_v16 = vsel %vm1704_vm3, %v8389_v15, %v3645_v17  ;;  %v3438_v4 = vsel %vm1710_vm6, %v9819_v3, %v3437_v24  ;;  %v3444_v61 = vsel %vm1708_vm5, %v8402_v30, %v3443_v32  ;;  %v9824_v17 = vld [vmem:[#allocation54_spill] sm:$0xff] }
 0x11c   :  { %6052 = vmatprep.mubr.msk.f32.mxu0 %vm6377_vm1, %v9586_v8  ;;  %v3647_v58 = vsel %vm1706_vm4, %v8402_v30, %v3646_v16  ;;  %v1337_v46 = vmax.f32 %v8542_v51, %v5547_v36  ;;  %v426_v39 = vcombine.high %v8440_v42, %v8440_v42  ;;  %v3439_v30 = vsel %vm1712_vm7, %v7603_v34, %v3438_v4  ;;  %v9825_v24 = vld [vmem:[#allocation34_spill] sm:$0xff] }
 0x11d   :  { %v3648_v1 = vsel %vm1708_vm5, %v8394_v10, %v3647_v58  ;;  %v3604_v28 = vsel %vm1704_vm3, %v9794_v60, %v9821_v54  ;;  %v3445_v63 = vsel %vm1710_vm6, %v8394_v10, %v3444_v61  ;;  %v3600_v42 = vsel %vm1708_vm5, %v9796_v47, %v9823_v57  ;;  %v9826_v36 = vld [vmem:[#allocation70_spill] sm:$0xff]  ;;  %v9827_v58 = vld [vmem:[#allocation31_spill] sm:$0xff] }
 0x11e   :  { %v8613_v60 = vrot.slane %v1337_v46, %v6471_v26  ;;  %v3446_v10 = vsel %vm1712_vm7, %v8405_v33, %v3445_v63  ;;  %v3601_v32 = vsel %vm1710_vm6, %v9826_v36, %v3600_v42 }
 0x11f   :  { %6053 = vmatmul.mubr.msk.f32.gmra.mrb[6].mxu0 %vm1772_vm9, %v3412_v9  ;;  %v3431_v9 = vsel %vm1710_vm6, %v9816_v43, %v3430_v6  ;;  %v8592_v6 = vsel %vm1710_vm6, %v8405_v33, %v3648_v1 }
 0x120   :  { %6055 = vmatprep.mubr.msk.f32.mxu0 %vm6377_vm1, %v9586_v8  ;;  %v3432_v2 = vsel %vm1712_vm7, %v9818_v44, %v3431_v9  ;;  %v3440_v9 = vsel %vm1714_vm8, %v9824_v17, %v3439_v30  ;;  %v9830_v30 = vld [vmem:[#allocation23_spill] sm:$0xff] }
 0x121   :  { %v3433_v15 = vsel %vm1714_vm8, %v9820_v5, %v3432_v2  ;;  %v3447_v2 = vsel %vm1714_vm8, %v8613_v60, %v3446_v10  ;;  %v3639_v54 = vsel %vm1704_vm3, %v9812_v27, %v9830_v30  ;;  %v698_v27 = vcombine.high %v8542_v51, %v8542_v51 }
 0x123   :  { %6056 = vmatmul.mubr.msk.f32.gmra.mrb[8].mxu0 %vm1772_vm9, %v3419_v31  ;;  %v9822_v31 = vld [vmem:[#allocation77_spill] sm:$0xff]  ;;  %v5548_v57 = vrot.slane %v698_v27, 9 }
 0x124   :  { %6058 = vmatprep.mubr.msk.f32.mxu0 %vm6377_vm1, %v9586_v8  ;;  %v3610_v14 = vsel %vm1702_vm2, %v9822_v31, %v9795_v45  ;;  %v3605_v45 = vsel %vm1706_vm4, %v9825_v24, %v3604_v28  ;;  %v9832_v28 = vld [vmem:[#allocation68_spill] sm:$0xff]  ;;  %v3650_v24 = vsel %vm1712_vm7, %v8613_v60, %v8592_v6 }
 0x125   :  { %v3611_v47 = vsel %vm1704_vm3, %v9750_v29, %v3610_v14  ;;  %v3606_v44 = vsel %vm1708_vm5, %v9713_v62, %v3605_v45  ;;  %v3602_v29 = vsel %vm1712_vm7, %v9799_v37, %v3601_v32  ;;  %v3622_v37 = vsel %vm1704_vm3, %v8476_v52, %v3621_v50 }
 0x126   :  { %v3612_v33 = vsel %vm1706_vm4, %v9798_v7, %v3611_v47  ;;  %v3607_v4 = vsel %vm1710_vm6, %v9801_v18, %v3606_v44  ;;  %v3603_v61 = vsel %vm1714_vm8, %v9827_v58, %v3602_v29  ;;  %v9828_v18 = vld [vmem:[#allocation59_spill] sm:$0xff]  ;;  %v3640_v31 = vsel %vm1706_vm4, %v9832_v28, %v3639_v54  ;;  %v5655_v58 = vld [vmem:[%s9326_s4 + $0x8] sm:$0xff] }
 0x127   :  { %6059 = vmatmul.mubr.msk.f32.gmra.mrb[10].mxu0 %vm1772_vm9, %v3426_v12  ;;  %v5484_v12 = vrot.slane %v426_v39, 9  ;;  %v3613_v62 = vsel %vm1708_vm5, %v9802_v13, %v3612_v33  ;;  %v3608_v1 = vsel %vm1712_vm7, %v9805_v48, %v3607_v4  ;;  %v1338_v42 = vmax.f32 %v698_v27, %v5548_v57  ;;  %6099 = vmatprep.subr.mxu1 %v5655_v58 }
 0x128   :  { %6061 = vmatprep.mubr.msk.f32.mxu0 %vm6377_vm1, %v9586_v8  ;;  %v3614_v13 = vsel %vm1710_vm6, %v9806_v35, %v3613_v62  ;;  %v3609_v46 = vsel %vm1714_vm8, %v9720_v0, %v3608_v1  ;;  %v9829_v35 = vld [vmem:[#allocation93_spill] sm:$0xff]  ;;  %6100 = vmatpush3.msra.mxu1 %v5655_v58 }
 0x129   :  { %v1274_v16 = vmax.f32 %v426_v39, %v5484_v12  ;;  %v3615_v52 = vsel %vm1712_vm7, %v9808_v23, %v3614_v13 }
 0x12a   :  { %v3616_v39 = vsel %vm1714_vm8, %v9829_v35, %v3615_v52 }
 0x12b   :  { %6062 = vmatmul.mubr.msk.f32.gmra.mrb[12].mxu0 %vm1772_vm9, %v3433_v15  ;;  %v3595_v7 = vrot.slane %v1274_v16, %v6471_v26  ;;  %v3628_v15 = vsel %vm1702_vm2, %v9828_v18, %v9803_v21 }
 0x12c   :  { %6064 = vmatprep.mubr.msk.f32.mxu0 %vm6377_vm1, %v9586_v8  ;;  %v3629_v50 = vsel %vm1704_vm3, %v9767_v20, %v3628_v15 }
 0x12d   :  { %v3623_v48 = vsel %vm1706_vm4, %v3595_v7, %v3622_v37  ;;  %v3630_v0 = vsel %vm1706_vm4, %v9771_v19, %v3629_v50 }
 0x12e   :  { %v3624_v21 = vsel %vm1708_vm5, %v7124_v49, %v3623_v48  ;;  %v3631_v20 = vsel %vm1708_vm5, %v9769_v11, %v3630_v0 }
 0x12f   :  { %6065 = vmatmul.mubr.msk.f32.gmra.mrb[14].mxu0 %vm1772_vm9, %v3440_v9  ;;  %v3625_v23 = vsel %vm1710_vm6, %v7139_v25, %v3624_v21  ;;  %v3632_v19 = vsel %vm1710_vm6, %v9814_v53, %v3631_v20  ;;  %v9831_v25 = vld [vmem:[#allocation22_spill] sm:$0xff] }
 0x130   :  { %6067 = vmatprep.mubr.msk.f32.mxu0 %vm6377_vm1, %v9586_v8  ;;  %v3626_v49 = vsel %vm1712_vm7, %v9813_v38, %v3625_v23  ;;  %v3635_v11 = vsel %vm1708_vm5, %v9816_v43, %v9831_v25  ;;  %v3633_v53 = vsel %vm1712_vm7, %v9817_v22, %v3632_v19  ;;  %v3641_v43 = vsel %vm1708_vm5, %v9819_v3, %v3640_v31 }
 0x131   :  { %v3627_v38 = vsel %vm1714_vm8, %v7142_v41, %v3626_v49  ;;  %v9834_v41 = vld [vmem:[#allocation85_spill] sm:$0xff]  ;;  %v3642_v22 = vsel %vm1710_vm6, %v7603_v34, %v3641_v43 }
 0x132   :  { %v3634_v63 = vsel %vm1714_vm8, %v9834_v41, %v3633_v53  ;;  %v3643_v9 = vsel %vm1712_vm7, %v9824_v17, %v3642_v22 }
 0x133   :  { %6068 = vmatmul.mubr.msk.f32.gmra.mrb[16].mxu0 %vm1772_vm9, %v3447_v2  ;;  %v3644_v34 = vsel %vm1714_vm8, %v9764_v56, %v3643_v9 }
 0x134   :  { %6072 = vmatprep.mubr.msk.f32.mxu0 %vm6377_vm1, %v9586_v8 }
 0x137   :  { %6073 = vmatmul.mubr.msk.f32.vlgmr.msra.gmra.mrb[0].mxu0 %vm1772_vm9, %v3603_v61  ;;  %v8745_v61 = vld [vmem:[%s9326_s4] sm:$0xff] }
 0x138   :  { %6075 = vmatprep.mubr.msk.f32.mxu0 %vm6377_vm1, %v9586_v8  ;;  %6107 = vmatprep.subr.mxu1 %v8745_v61 }
 0x13b   :  { %6076 = vmatmul.mubr.msk.f32.gmra.mrb[2].mxu0 %vm1772_vm9, %v3609_v46 }
 0x13c   :  { %6078 = vmatprep.mubr.msk.f32.mxu0 %vm6377_vm1, %v9586_v8 }
 0x13f   :  { %6079 = vmatmul.mubr.msk.f32.gmra.mrb[4].mxu0 %vm1772_vm9, %v3616_v39 }
 0x140   :  { %6081 = vmatprep.mubr.msk.f32.mxu0 %vm6377_vm1, %v9586_v8 }
 0x143   :  { %6082 = vmatmul.mubr.msk.f32.gmra.mrb[6].mxu0 %vm1772_vm9, %v8546_v40  ;;  %v9833_v40 = vld [vmem:[#allocation72_spill] sm:$0xff] }
 0x144   :  { %6084 = vmatprep.mubr.msk.f32.mxu0 %vm6377_vm1, %v9586_v8  ;;  %v3636_v14 = vsel %vm1710_vm6, %v9833_v40, %v3635_v11 }
 0x145   :  { %v3637_v51 = vsel %vm1712_vm7, %v9820_v5, %v3636_v14  ;;  %v3599_v5 = vrot.slane %v1338_v42, %v6471_v26 }
 0x146   :  { %v3638_v3 = vsel %vm1714_vm8, %v7328_v59, %v3637_v51 }
 0x147   :  { %6085 = vmatmul.mubr.msk.f32.gmra.mrb[8].mxu0 %vm1772_vm9, %v3627_v38  ;;  %v3651_v59 = vsel %vm1714_vm8, %v3599_v5, %v3650_v24 }
 0x148   :  { %6087 = vmatprep.mubr.msk.f32.mxu0 %vm6377_vm1, %v9586_v8 }
 0x14b   :  { %6088 = vmatmul.mubr.msk.f32.gmra.mrb[10].mxu0 %vm1772_vm9, %v3634_v63 }
 0x14c   :  { %6090 = vmatprep.mubr.msk.f32.mxu0 %vm6377_vm1, %v9586_v8 }
 0x14f   :  { %6091 = vmatmul.mubr.msk.f32.gmra.mrb[12].mxu0 %vm1772_vm9, %v3638_v3 }
 0x150   :  { %6093 = vmatprep.mubr.msk.f32.mxu0 %vm6377_vm1, %v9586_v8 }
 0x153   :  { %6094 = vmatmul.mubr.msk.f32.gmra.mrb[14].mxu0 %vm1772_vm9, %v3644_v34 }
 0x154   :  { %6096 = vmatprep.mubr.msk.f32.mxu0 %vm6377_vm1, %v9586_v8 }
 0x157   :  { %6097 = vmatmul.mubr.msk.f32.gmra.mrb[16].mxu0 %vm1772_vm9, %v3651_v59 }
 0x19a   :  { %v2371_v17 = vpop.f32.mrb[0].mxu1 }
 0x19b   :  { %v5900_v45 = vpop.f32.mrb[1].mxu1 }
 0x19f   :  { %v2376_v12 = vpop.f32.mrb[2].mxu1 }
 0x1a0   :  { %v5903_v10 = vpop.f32.mrb[3].mxu1 }
 0x1a3   :  { %v2381_v56 = vpop.f32.mrb[4].mxu1 }
 0x1a4   :  { %v5906_v47 = vpop.f32.mrb[5].mxu1 }
 0x1a9   :  { %v2386_v36 = vpop.f32.mrb[6].mxu1 }
 0x1aa   :  { %v5909_v32 = vpop.f32.mrb[7].mxu1 }
 0x1ad   :  { %v2391_v44 = vpop.f32.mrb[8].mxu1 }
 0x1ae   :  { %v5912_v2 = vpop.f32.mrb[9].mxu1 }
 0x1c5   :  { %v2661_v6 = vpop.f32.mrb[10].mxu1 }
 0x1c6   :  { %v5944_v60 = vpop.f32.mrb[11].mxu1 }
 0x1c9   :  { %v2666_v33 = vpop.f32.mrb[12].mxu1 }
 0x1ca   :  { %v5947_v16 = vpop.f32.mrb[13].mxu1 }
 0x1cf   :  { %v8735_v29 = vpop.f32.mrb[14].mxu1 }
 0x1d0   :  { %v5950_v8 = vpop.f32.mrb[15].mxu1 }
 0x1d6   :  { %v8737_v4 = vpop.f32.mrb[16].mxu1 }
 0x1d7   :  { %v5953_v62 = vpop.f32.mrb[17].mxu1 }
 0x20a   :  { %v3739_v7 = vpop.f32.mrb[0].mxu0 }
 0x20b   :  { %v8748_v1 = vadd.f32 %v3739_v7, %v2371_v17  ;;  %v6074_v37 = vpop.f32.mrb[1].mxu0 }
 0x20d   :  { %v3817_v15 = vmul.f32 %v8748_v1, %v8748_v1  ;;  %v3793_v48 = vsel %vm3792_vm10, %v8748_v1, 0.0 }
 0x20e   :  { %v3744_v18 = vpop.f32.mrb[2].mxu0 }
 0x20f   :  { %v8752_v13 = vadd.f32 %v3744_v18, %v2376_v12  ;;  %v6077_v46 = vpop.f32.mrb[3].mxu0  ;;  %v3826_v39 = vsel %vm3792_vm10, %v3817_v15, 0.0 }
 0x211   :  { %v3794_v52 = vsel %vm3792_vm10, %v8752_v13, 0.0  ;;  %v3818_v50 = vmul.f32 %v8752_v13, %v8752_v13 }
 0x212   :  { %v3795_v21 = vadd.f32 %v3794_v52, %v3793_v48  ;;  %v3749_v35 = vpop.f32.mrb[4].mxu0 }
 0x213   :  { %v3827_v0 = vsel %vm3792_vm10, %v3818_v50, 0.0  ;;  %v8762_v23 = vadd.f32 %v3749_v35, %v2381_v56  ;;  %v6080_v20 = vpop.f32.mrb[5].mxu0 }
 0x214   :  { %v3828_v49 = vadd.f32 %v3827_v0, %v3826_v39 }
 0x215   :  { %v3796_v30 = vsel %vm3792_vm10, %v8762_v23, 0.0  ;;  %v3819_v54 = vmul.f32 %v8762_v23, %v8762_v23 }
 0x216   :  { %v3797_v19 = vadd.f32 %v3796_v30, %v3795_v21  ;;  %v3754_v25 = vpop.f32.mrb[6].mxu0 }
 0x217   :  { %v3829_v11 = vsel %vm3792_vm10, %v3819_v54, 0.0  ;;  %v8769_v38 = vadd.f32 %v3754_v25, %v2386_v36  ;;  %v6083_v28 = vpop.f32.mrb[7].mxu0 }
 0x218   :  { %v3830_v31 = vadd.f32 %v3829_v11, %v3828_v49 }
 0x219   :  { %v3798_v27 = vsel %vm3792_vm10, %v8769_v38, 0.0  ;;  %v3820_v53 = vmul.f32 %v8769_v38, %v8769_v38 }
 0x21a   :  { %v3799_v40 = vadd.f32 %v3798_v27, %v3797_v19  ;;  %v3759_v14 = vpop.f32.mrb[8].mxu0 }
 0x21b   :  { %v3831_v43 = vsel %vm3792_vm10, %v3820_v53, 0.0  ;;  %v8776_v41 = vadd.f32 %v3759_v14, %v2391_v44  ;;  %v6086_v63 = vpop.f32.mrb[9].mxu0 }
 0x21c   :  { %v3832_v57 = vadd.f32 %v3831_v43, %v3830_v31  ;;  %v3852_v63 = vld [vmem:[%s9324_s2] sm:$0x1] }
 0x21d   :  { %v3800_v51 = vsel %vm3792_vm10, %v8776_v41, 0.0  ;;  %v3821_v22 = vmul.f32 %v8776_v41, %v8776_v41 }
 0x21e   :  { %v3801_v3 = vadd.f32 %v3800_v51, %v3799_v40  ;;  %v3764_v42 = vpop.f32.mrb[10].mxu0 }
 0x21f   :  { %v3833_v9 = vsel %vm3792_vm10, %v3821_v22, 0.0  ;;  %v6178_v34 = vadd.f32 %v3764_v42, %v2661_v6  ;;  %v6089_v5 = vpop.f32.mrb[11].mxu0  ;;  %v3856_v22 = vld [vmem:[%s9325_s3] sm:$0x1] }
 0x220   :  { %v3834_v24 = vadd.f32 %v3833_v9, %v3832_v57 }
 0x221   :  { %v3802_v59 = vsel %vm3792_vm10, %v6178_v34, 0.0  ;;  %v3822_v17 = vmul.f32 %v6178_v34, %v6178_v34 }
 0x222   :  { %v3803_v45 = vadd.f32 %v3802_v59, %v3801_v3  ;;  %v3769_v12 = vpop.f32.mrb[12].mxu0 }
 0x223   :  { %v3835_v10 = vsel %vm3792_vm10, %v3822_v17, 0.0  ;;  %v6179_v56 = vadd.f32 %v3769_v12, %v2666_v33  ;;  %v6092_v47 = vpop.f32.mrb[13].mxu0 }
 0x224   :  { %v3836_v36 = vadd.f32 %v3835_v10, %v3834_v24 }
 0x225   :  { %v3804_v32 = vsel %vm3792_vm10, %v6179_v56, 0.0  ;;  %v3823_v44 = vmul.f32 %v6179_v56, %v6179_v56 }
 0x226   :  { %v3805_v2 = vadd.f32 %v3804_v32, %v3803_v45  ;;  %v3774_v60 = vpop.f32.mrb[14].mxu0 }
 0x227   :  { %v3837_v16 = vsel %vm3792_vm10, %v3823_v44, 0.0  ;;  %v6180_v6 = vadd.f32 %v3774_v60, %v8735_v29  ;;  %v6095_v8 = vpop.f32.mrb[15].mxu0 }
 0x228   :  { %v3838_v62 = vadd.f32 %v3837_v16, %v3836_v36 }
 0x229   :  { %v3806_v58 = vsel %vm3792_vm10, %v6180_v6, 0.0  ;;  %v3824_v7 = vmul.f32 %v6180_v6, %v6180_v6 }
 0x22a   :  { %v3807_v37 = vadd.f32 %v3806_v58, %v3805_v2  ;;  %v3779_v18 = vpop.f32.mrb[16].mxu0 }
 0x22b   :  { %v3839_v33 = vsel %vm3792_vm10, %v3824_v7, 0.0  ;;  %v6181_v15 = vadd.f32 %v3779_v18, %v8737_v4  ;;  %v6098_v46 = vpop.f32.mrb[17].mxu0 }
 0x22c   :  { %v3840_v48 = vadd.f32 %v3839_v33, %v3838_v62 }
 0x22d   :  { %v3808_v52 = vsel %vm3792_vm10, %v6181_v15, 0.0  ;;  %v3825_v50 = vmul.f32 %v6181_v15, %v6181_v15 }
 0x22e   :  { %v3809_v21 = vadd.f32 %v3808_v52, %v3807_v37 }
 0x22f   :  { %v3841_v35 = vsel %vm3792_vm10, %v3825_v50, 0.0 }
 0x230   :  { %v3810_v29 = vrot.slane %v3809_v21, 4  ;;  %v3842_v39 = vadd.f32 %v3841_v35, %v3840_v48 }
 0x232   :  { %v3811_v0 = vadd.f32 %v3810_v29, %v3809_v21  ;;  %v3843_v20 = vrot.slane %v3842_v39, 4 }
 0x234   :  { %v3812_v49 = vrot.slane %v3811_v0, 2  ;;  %v3844_v30 = vadd.f32 %v3843_v20, %v3842_v39 }
 0x236   :  { %v3813_v54 = vadd.f32 %v3812_v49, %v3811_v0  ;;  %v3845_v19 = vrot.slane %v3844_v30, 2 }
 0x238   :  { %v3814_v25 = vrot.slane %v3813_v54, 1  ;;  %v3846_v11 = vadd.f32 %v3845_v19, %v3844_v30 }
 0x23a   :  { %v3815_v28 = vadd.f32 %v3814_v25, %v3813_v54  ;;  %v3847_v4 = vrot.slane %v3846_v11, 1 }
 0x23c   :  { %v3816_v31 = vmul.f32 0.013888889, %v3815_v28  ;;  %v3848_v27 = vadd.f32 %v3847_v4, %v3846_v11 }
 0x23e   :  { %v3849_v53 = vmul.f32 0.013888889, %v3848_v27  ;;  %v3850_v40 = vmul.f32 %v3816_v31, %v3816_v31 }
 0x240   :  { %v3851_v14 = vsub.f32 %v3849_v53, %v3850_v40 }
 0x242   :  { %v3853_v43 = vadd.f32 1e-05, %v3851_v14 }
 0x244   :  { %6346 = vrsqrt.f32 %v3853_v43 }
 0x24e   :  { %v6347_v57 = vpop.eup %6346 }
 0x24f   :  { %v3855_v51 = vmul.f32 %v6347_v57, %v3852_v63 }
 0x251   :  { %v3857_v3 = vmul.f32 %v3855_v51, %v3816_v31  ;;  %v3863_v42 = vrot.slane %v3855_v51, %v6471_v26 }
 0x253   :  { %v3858_v9 = vsub.f32 %v3856_v22, %v3857_v3  ;;  %v3873_v5 = vmul.f32 %v6181_v15, %v3863_v42  ;;  %v3865_v24 = vmul.f32 %v8748_v1, %v3863_v42  ;;  %v3866_v59 = vmul.f32 %v8752_v13, %v3863_v42 }
 0x254   :  { %v3867_v17 = vmul.f32 %v8762_v23, %v3863_v42  ;;  %v3869_v45 = vmul.f32 %v8776_v41, %v3863_v42  ;;  %v3870_v12 = vmul.f32 %v6178_v34, %v3863_v42  ;;  %v3871_v10 = vmul.f32 %v6179_v56, %v3863_v42 }
 0x255   :  { %v8805_v47 = vrot.slane %v3858_v9, %v6471_v26  ;;  %v3872_v36 = vmul.f32 %v6180_v6, %v3863_v42  ;;  %v8808_v32 = vmul.f32 %v8769_v38, %v3863_v42 }
 0x257   :  { %v3888_v44 = vadd.f32 %v8805_v47, %v3873_v5  ;;  %v3880_v1 = vadd.f32 %v8805_v47, %v3865_v24  ;;  %v3881_v13 = vadd.f32 %v8805_v47, %v3866_v59  ;;  %v3882_v23 = vadd.f32 %v8805_v47, %v3867_v17 }
 0x258   :  { %v3884_v34 = vadd.f32 %v8805_v47, %v3869_v45  ;;  %v3885_v56 = vadd.f32 %v8805_v47, %v3870_v12  ;;  %v3886_v38 = vadd.f32 %v8805_v47, %v3871_v10  ;;  %v3887_v2 = vadd.f32 %v8805_v47, %v3872_v36 }
 0x259   :  { %v3897_v60 = vmax.f32 %v3888_v44, 0.0  ;;  %v3889_v16 = vmax.f32 %v3880_v1, 0.0  ;;  %v3890_v6 = vmax.f32 %v3881_v13, 0.0  ;;  %v3891_v8 = vmax.f32 %v3882_v23, 0.0 }
 0x25a   :  { %v3893_v62 = vmax.f32 %v3884_v34, 0.0  ;;  %v8823_v58 = vmax.f32 %v3885_v56, 0.0  ;;  %v8825_v7 = vmax.f32 %v3886_v38, 0.0  ;;  %v8827_v37 = vmax.f32 %v3887_v2, 0.0 }
 0x25b   :  { %v4043_v18 = vcombine.high %v3897_v60, %v3897_v60  ;;  %v8830_v33 = vrot.slane %v3897_v60, %v9778_v55  ;;  %v3907_v15 = vcombine.high %v3889_v16, %v3889_v16  ;;  %v8833_v46 = vrot.slane %v3889_v16, %v9778_v55 }
 0x25c   :  { %v3924_v48 = vcombine.high %v3890_v6, %v3890_v6  ;;  %v8839_v52 = vrot.slane %v3890_v6, %v9778_v55  ;;  %v3941_v50 = vcombine.high %v3891_v8, %v3891_v8  ;;  %v8842_v21 = vrot.slane %v3891_v8, %v9778_v55 }
 0x25d   :  { %v8845_v35 = vrot.slane %v4043_v18, %v9778_v55  ;;  %v4743_v29 = vrot.slane %v8830_v33, 7  ;;  %v8849_v39 = vrot.slane %v3907_v15, %v9778_v55  ;;  %v8853_v0 = vcombine.high %v8833_v46, %v8833_v46 }
 0x25e   :  { %v8856_v20 = vrot.slane %v3924_v48, %v9778_v55  ;;  %v8860_v49 = vcombine.high %v8839_v52, %v8839_v52  ;;  %v5647_v54 = vrot.slane %v8833_v46, 9  ;;  %v4074_v19 = vrot.slane %v8839_v52, 7 }
 0x25f   :  { %v8871_v25 = vcombine.high %v8849_v39, %v8849_v39  ;;  %v4067_v11 = vrot.slane %v8853_v0, 7  ;;  %v4070_v28 = vrot.slane %v8849_v39, 7  ;;  %v8876_v4 = vrot.slane %v3941_v50, %v9778_v55 }
 0x260   :  { %v4076_v31 = vrot.slane %v4074_v19, 2  ;;  %v4077_v27 = vrot.slane %v8860_v49, 7  ;;  %v8881_v53 = vcombine.high %v8856_v20, %v8856_v20  ;;  %v8885_v40 = vcombine.high %v8842_v21, %v8842_v21 }
 0x261   :  { %v4068_v14 = vsel %vm8863_vm14, %v5647_v54, %v4067_v11  ;;  %v4069_v43 = vrot.slane %v4067_v11, 2  ;;  %v5648_v63 = vrot.slane %v8871_v25, 9  ;;  %v8892_v57 = vcombine.high %v8876_v4, %v8876_v4 }
 0x262   :  { %v4078_v51 = vsel %vm8863_vm14, %v4076_v31, %v4077_v27  ;;  %v5649_v22 = vrot.slane %v8856_v20, 9  ;;  %v4081_v3 = vrot.slane %v8881_v53, 7  ;;  %v4084_v42 = vrot.slane %v8842_v21, 7 }
 0x263   :  { %v4071_v9 = vsel %vm8863_vm14, %v4069_v43, %v4070_v28  ;;  %v4075_v5 = vsel %vm8863_vm14, %v5648_v63, %v4074_v19  ;;  %v5650_v24 = vrot.slane %v8885_v40, 9  ;;  %v4088_v59 = vrot.slane %v8876_v4, 7 }
 0x264   :  { %v4123_v17 = vcombine.low %v4068_v14, %v4071_v9  ;;  %v4124_v45 = vcombine.low %v4075_v5, %v4078_v51  ;;  %v4082_v12 = vsel %vm8863_vm14, %v5649_v22, %v4081_v3  ;;  %v4083_v10 = vrot.slane %v4081_v3, 2 }
 0x265   :  { %v4089_v36 = vsel %vm8863_vm14, %v5650_v24, %v4088_v59  ;;  %v4090_v44 = vrot.slane %v4088_v59, 2  ;;  %v4091_v1 = vrot.slane %v8892_v57, 7  ;;  %v3975_v13 = vcombine.high %v3893_v62, %v3893_v62  ;;  %v8978_v24 = vld [vmem:[%s9326_s4 + $0x10] sm:$0xff] }
 0x266   :  { %v4131_v23 = vrot.slane %v4123_v17, %v9778_v55  ;;  %v8912_v41 = vrot.slane %v4124_v45, %v9778_v55  ;;  %v4085_v34 = vsel %vm8863_vm14, %v4083_v10, %v4084_v42  ;;  %v8917_v56 = vrot.slane %v3893_v62, %v9778_v55 }
 0x267   :  { %v4092_v38 = vsel %vm8863_vm14, %v4090_v44, %v4091_v1  ;;  %v4140_v2 = vcombine.low %v4082_v12, %v4085_v34  ;;  %v8922_v60 = vrot.slane %v3975_v13, %v9778_v55  ;;  %v3992_v16 = vcombine.high %v8823_v58, %v8823_v58 }
 0x268   :  { %v4139_v6 = vcombine.low %v4131_v23, %v8912_v41  ;;  %v4141_v8 = vcombine.low %v4089_v36, %v4092_v38  ;;  %v8929_v18 = vrot.slane %v8823_v58, %v9778_v55  ;;  %v4009_v62 = vcombine.high %v8825_v7, %v8825_v7 }
 0x269   :  { %v8934_v15 = vrot.slane %v4140_v2, %v9778_v55  ;;  %v8938_v48 = vcombine.high %v8922_v60, %v8922_v60  ;;  %v8941_v50 = vrot.slane %v3992_v16, %v9778_v55  ;;  %v5651_v54 = vrot.slane %v8922_v60, 9 }
 0x26a   :  { %6101 = vmatprep.mubr.msk.f32.mxu1 %vm3792_vm10, %v4139_v6  ;;  %v8946_v58 = vrot.slane %v4141_v8, %v9778_v55  ;;  %v4007_v19 = vcombine.high %v8929_v18, %v8929_v18  ;;  %v4098_v11 = vrot.slane %v8929_v18, 7  ;;  %v4016_v28 = vrot.slane %v8825_v7, %v9778_v55 }
 0x26b   :  { %v8955_v31 = vcombine.high %v8941_v50, %v8941_v50  ;;  %v4095_v27 = vrot.slane %v8938_v48, 7  ;;  %v4102_v14 = vrot.slane %v8941_v50, 7  ;;  %v8960_v43 = vrot.slane %v4009_v62, %v9778_v55 }
 0x26c   :  { %v8964_v63 = vcombine.low %v8934_v15, %v8946_v58  ;;  %v5652_v51 = vrot.slane %v4007_v19, 9  ;;  %v8966_v22 = vcombine.high %v4016_v28, %v4016_v28  ;;  %v8970_v7 = vrot.slane %v8827_v37, %v9778_v55 }
 0x26d   :  { %v4096_v3 = vsel %vm8863_vm14, %v5651_v54, %v4095_v27  ;;  %v4097_v42 = vrot.slane %v4095_v27, 2  ;;  %v4104_v9 = vrot.slane %v4102_v14, 2  ;;  %v4105_v5 = vrot.slane %v8955_v31, 7 }
 0x26e   :  { %6102 = vmatmul.mubr.msk.f32.vlgmr.msra.gmra.mrb[18].mxu1 %vm3792_vm10, %v8964_v63  ;;  %v4103_v59 = vsel %vm8863_vm14, %v5652_v51, %v4102_v14  ;;  %v4025_v17 = vcombine.high %v8960_v43, %v8960_v43  ;;  %v8988_v45 = vcombine.high %v8970_v7, %v8970_v7  ;;  %v5653_v12 = vrot.slane %v4016_v28, 9 }
 0x26f   :  { %6108 = vmatpush3.msra.mxu1 %v8745_v61  ;;  %v4099_v10 = vsel %vm8863_vm14, %v4097_v42, %v4098_v11  ;;  %v4106_v36 = vsel %vm8863_vm14, %v4104_v9, %v4105_v5  ;;  %v4109_v44 = vrot.slane %v8966_v22, 7  ;;  %v4112_v1 = vrot.slane %v8960_v43, 7 }
 0x270   :  { %v4157_v13 = vcombine.low %v4096_v3, %v4099_v10  ;;  %v4158_v23 = vcombine.low %v4103_v59, %v4106_v36  ;;  %v5654_v34 = vrot.slane %v4025_v17, 9  ;;  %v4116_v38 = vrot.slane %v8970_v7, 7  ;;  %6115 = vmatprep.subr.mxu1 %v8978_v24 }
 0x271   :  { %v4110_v61 = vsel %vm8863_vm14, %v5653_v12, %v4109_v44  ;;  %v4111_v2 = vrot.slane %v4109_v44, 2  ;;  %v4119_v16 = vrot.slane %v8988_v45, 7  ;;  %v4284_v6 = vcombine.low %v8833_v46, %v8853_v0 }
 0x272   :  { %v4165_v8 = vrot.slane %v4157_v13, %v9778_v55  ;;  %v9006_v62 = vrot.slane %v4158_v23, %v9778_v55  ;;  %v4117_v54 = vsel %vm8863_vm14, %v5654_v34, %v4116_v38  ;;  %v4118_v11 = vrot.slane %v4116_v38, 2 }
 0x273   :  { %v4113_v27 = vsel %vm8863_vm14, %v4111_v2, %v4112_v1  ;;  %v4285_v14 = vcombine.low %v8871_v25, %v8839_v52  ;;  %v4292_v51 = vrot.slane %v4284_v6, %v9778_v55  ;;  %v4301_v46 = vcombine.low %v8856_v20, %v8881_v53 }
 0x274   :  { %v4173_v3 = vcombine.low %v4165_v8, %v9006_v62  ;;  %v4120_v42 = vsel %vm8863_vm14, %v4118_v11, %v4119_v16  ;;  %v4174_v9 = vcombine.low %v4110_v61, %v4113_v27  ;;  %v4302_v5 = vcombine.low %v8885_v40, %v8876_v4  ;;  %v5669_v27 = vld [vmem:[%s9326_s4 + $0x18] sm:$0xff] }
 0x275   :  { %v4175_v59 = vcombine.low %v4117_v54, %v4120_v42  ;;  %v9023_v12 = vrot.slane %v4285_v14, %v9778_v55  ;;  %v9026_v25 = vrot.slane %v4301_v46, %v9778_v55  ;;  %v4318_v10 = vcombine.low %v8922_v60, %v8938_v48 }
 0x276   :  { %6104 = vmatprep.mubr.msk.f32.mxu1 %vm3792_vm10, %v4173_v3  ;;  %v9032_v20 = vrot.slane %v4174_v9, %v9778_v55  ;;  %v9035_v36 = vrot.slane %v4302_v5, %v9778_v55  ;;  %v4319_v40 = vcombine.low %v4007_v19, %v8941_v50  ;;  %v4335_v44 = vcombine.low %v4016_v28, %v8966_v22 }
 0x277   :  { %v9040_v1 = vrot.slane %v4175_v59, %v9778_v55  ;;  %v4300_v13 = vcombine.low %v4292_v51, %v9023_v12  ;;  %v4326_v23 = vrot.slane %v4318_v10, %v9778_v55  ;;  %v4336_v60 = vcombine.low %v4025_v17, %v8970_v7 }
 0x278   :  { %v9047_v34 = vcombine.low %v9026_v25, %v9035_v36  ;;  %v9050_v38 = vrot.slane %v4319_v40, %v9778_v55  ;;  %v9053_v19 = vrot.slane %v4335_v44, %v9778_v55  ;;  %v4447_v28 = vcombine.low %v8853_v0, %v8849_v39 }
 0x279   :  { %v9059_v61 = vcombine.low %v9032_v20, %v9040_v1  ;;  %v9062_v2 = vrot.slane %v4336_v60, %v9778_v55  ;;  %v4448_v17 = vcombine.low %v8839_v52, %v8860_v49  ;;  %v4464_v16 = vcombine.low %v8881_v53, %v8842_v21 }
 0x27a   :  { %v4334_v6 = vcombine.low %v4326_v23, %v9050_v38  ;;  %v4455_v8 = vrot.slane %v4447_v28, %v9778_v55  ;;  %v4465_v39 = vcombine.low %v8876_v4, %v8892_v57  ;;  %v4481_v0 = vcombine.low %v8938_v48, %v8929_v18 }
 0x27b   :  { %6105 = vmatmul.mubr.msk.f32.gmra.mrb[20].mxu1 %vm3792_vm10, %v9059_v61  ;;  %v9078_v54 = vcombine.low %v9053_v19, %v9062_v2  ;;  %v9081_v52 = vrot.slane %v4448_v17, %v9778_v55  ;;  %v9084_v21 = vrot.slane %v4464_v16, %v9778_v55  ;;  %v4482_v49 = vcombine.low %v8941_v50, %v8955_v31 }
 0x27c   :  { %6109 = vmatprep.mubr.msk.f32.mxu1 %vm3792_vm10, %v4300_v13  ;;  %v9090_v4 = vrot.slane %v4465_v39, %v9778_v55  ;;  %v4489_v53 = vrot.slane %v4481_v0, %v9778_v55  ;;  %v4498_v57 = vcombine.low %v8966_v22, %v8960_v43  ;;  %v4499_v18 = vcombine.low %v8970_v7, %v8988_v45 }
 0x27d   :  { %v4463_v48 = vcombine.low %v4455_v8, %v9081_v52  ;;  %v9099_v11 = vrot.slane %v4482_v49, %v9778_v55  ;;  %v4614_v50 = vcombine.low %v9023_v12, %v9026_v25  ;;  %v3883_v31 = vadd.f32 %v8805_v47, %v8808_v32  ;;  %v5681_v25 = vld [vmem:[%s9326_s4 + $0x28] sm:$0xff] }
 0x27e   :  { %v9110_v43 = vcombine.low %v9084_v21, %v9090_v4  ;;  %v9113_v22 = vrot.slane %v4498_v57, %v9778_v55  ;;  %v9116_v7 = vrot.slane %v4499_v18, %v9778_v55  ;;  %v4624_v45 = vcombine.low %v9050_v38, %v9053_v19  ;;  %v5676_v18 = vld [vmem:[%s9326_s4 + $0x20] sm:$0xff] }
 0x27f   :  { %6110 = vmatmul.mubr.msk.f32.vlgmr.msra.gmra.mrb[18].mxu1 %vm3792_vm10, %v9047_v34  ;;  %v4497_v47 = vcombine.low %v4489_v53, %v9099_v11  ;;  %v3892_v32 = vmax.f32 %v3883_v31, 0.0  ;;  %v4026_v14 = vcombine.high %v8827_v37, %v8827_v37  ;;  %v4747_v51 = vcombine.low %v8912_v41, %v8934_v15  ;;  %v5698_v41 = vld [vmem:[%s9326_s4 + $0x40] sm:$0xff] }
 0x280   :  { %6116 = vmatpush3.msra.mxu1 %v8978_v24  ;;  %6112 = vmatprep.mubr.msk.f32.mxu1 %vm3792_vm10, %v4334_v6  ;;  %v9131_v46 = vcombine.low %v9113_v22, %v9116_v7  ;;  %v4757_v3 = vcombine.low %v9006_v62, %v9032_v20  ;;  %v4866_v42 = vcombine.low %v9081_v52, %v9084_v21  ;;  %v5098_v9 = vrot.slane %v8917_v56, 7 }
 0x281   :  { %6123 = vmatprep.subr.mxu1 %v5669_v27  ;;  %v3958_v37 = vcombine.high %v3892_v32, %v3892_v32  ;;  %v3965_v5 = vrot.slane %v3892_v32, %v9778_v55  ;;  %v4040_v24 = vrot.slane %v4026_v14, %v9778_v55  ;;  %v4876_v59 = vcombine.low %v9099_v11, %v9113_v22 }
 0x282   :  { %v4058_v10 = vcombine.high %v8830_v33, %v8830_v33  ;;  %v9146_v40 = vcombine.high %v8917_v56, %v8917_v56  ;;  %v5100_v44 = vrot.slane %v5098_v9, 2  ;;  %v9152_v13 = vcombine.high %v8845_v35, %v8845_v35 }
 0x283   :  { %6113 = vmatmul.mubr.msk.f32.gmra.mrb[20].mxu1 %vm3792_vm10, %v9078_v54  ;;  %v3973_v23 = vcombine.high %v3965_v5, %v3965_v5  ;;  %v4042_v60 = vcombine.high %v4040_v24, %v4040_v24  ;;  %v3972_v28 = vrot.slane %v3958_v37, %v9778_v55  ;;  %v5674_v17 = vrot.slane %v3965_v5, 9 }
 0x284   :  { %6117 = vmatprep.mubr.msk.f32.mxu1 %vm3792_vm10, %v4463_v48  ;;  %v5675_v16 = vrot.slane %v4040_v24, 9  ;;  %v4994_v6 = vcombine.low %v4058_v10, %v8845_v35  ;;  %v5692_v8 = vrot.slane %v4058_v10, 9  ;;  %v5101_v39 = vrot.slane %v9146_v40, 7 }
 0x285   :  { %v4615_v0 = vcombine.low %v3965_v5, %v3973_v23  ;;  %v4625_v49 = vcombine.low %v4040_v24, %v4042_v60  ;;  %v4733_v53 = vrot.slane %v3973_v23, 7  ;;  %v4736_v57 = vrot.slane %v3972_v28, 7 }
 0x286   :  { %v4740_v31 = vrot.slane %v4042_v60, 7  ;;  %v4867_v32 = vcombine.low %v3973_v23, %v3972_v28  ;;  %v4877_v14 = vcombine.low %v4042_v60, %v8830_v33  ;;  %v3974_v37 = vcombine.high %v3972_v28, %v3972_v28 }
 0x287   :  { %6118 = vmatmul.mubr.msk.f32.vlgmr.msra.gmra.mrb[18].mxu1 %vm3792_vm10, %v9110_v43  ;;  %v9167_v48 = vrot.slane %v4615_v0, %v9778_v55  ;;  %v9170_v5 = vrot.slane %v4625_v49, %v9778_v55  ;;  %v4734_v24 = vsel %vm8863_vm14, %v5674_v17, %v4733_v53  ;;  %v4735_v10 = vrot.slane %v4733_v53, 2 }
 0x288   :  { %6124 = vmatpush3.msra.mxu1 %v5669_v27  ;;  %6120 = vmatprep.mubr.msk.f32.mxu1 %vm3792_vm10, %v4497_v47  ;;  %v4741_v23 = vsel %vm8863_vm14, %v5675_v16, %v4740_v31  ;;  %v4742_v60 = vrot.slane %v4740_v31, 2  ;;  %v9178_v28 = vrot.slane %v4867_v32, %v9778_v55  ;;  %v9181_v0 = vrot.slane %v4877_v14, %v9778_v55 }
 0x289   :  { %6131 = vmatprep.subr.mxu1 %v5676_v18  ;;  %v4623_v49 = vcombine.low %v9035_v36, %v9167_v48  ;;  %v4633_v17 = vcombine.low %v9062_v2, %v9170_v5  ;;  %v4737_v27 = vsel %vm8863_vm14, %v4735_v10, %v4736_v57  ;;  %v4985_v47 = vcombine.low %v3974_v37, %v8917_v56 }
 0x28a   :  { %v4748_v16 = vcombine.low %v4734_v24, %v4737_v27  ;;  %v4744_v53 = vsel %vm8863_vm14, %v4742_v60, %v4743_v29  ;;  %v4875_v31 = vcombine.low %v9090_v4, %v9178_v28  ;;  %v4885_v36 = vcombine.low %v9116_v7, %v9181_v0 }
 0x28b   :  { %6121 = vmatmul.mubr.msk.f32.gmra.mrb[20].mxu1 %vm3792_vm10, %v9131_v46  ;;  %v4758_v2 = vcombine.low %v4741_v23, %v4744_v53  ;;  %v4992_v57 = vrot.slane %v4985_v47, %v9778_v55  ;;  %v5691_v32 = vrot.slane %v3974_v37, 9  ;;  %v5001_v14 = vrot.slane %v4994_v6, %v9778_v55 }
 0x28c   :  { %6125 = vmatprep.mubr.msk.f32.mxu1 %vm3792_vm10, %v4614_v50  ;;  %v4755_v33 = vrot.slane %v4748_v16, %v9778_v55  ;;  %v5102_v29 = vsel %vm8863_vm14, %v5100_v44, %v5101_v39  ;;  %v5105_v4 = vrot.slane %v8845_v35, 7  ;;  %v5108_v7 = vrot.slane %v9152_v13, 7 }
 0x28d   :  { %v4765_v24 = vrot.slane %v4758_v2, %v9778_v55  ;;  %v4993_v37 = vcombine.low %v9167_v48, %v4992_v57  ;;  %v5002_v6 = vcombine.low %v9170_v5, %v5001_v14  ;;  %v5099_v12 = vsel %vm8863_vm14, %v5691_v32, %v5098_v9 }
 0x28e   :  { %v4756_v50 = vcombine.low %v8946_v58, %v4755_v33  ;;  %v5112_v44 = vcombine.low %v5099_v12, %v5102_v29  ;;  %v5106_v39 = vsel %vm8863_vm14, %v5692_v8, %v5105_v4  ;;  %v5107_v10 = vrot.slane %v5105_v4, 2 }
 0x28f   :  { %6126 = vmatmul.mubr.msk.f32.vlgmr.msra.gmra.mrb[18].mxu1 %vm3792_vm10, %v4623_v49  ;;  %v4766_v48 = vcombine.low %v9040_v1, %v4765_v24  ;;  %v5225_v5 = vcombine.low %v8917_v56, %v9146_v40  ;;  %v5234_v9 = vcombine.low %v8845_v35, %v9152_v13 }
 0x290   :  { %6132 = vmatpush3.msra.mxu1 %v5676_v18  ;;  %6128 = vmatprep.mubr.msk.f32.mxu1 %vm3792_vm10, %v4624_v45  ;;  %v5119_v58 = vrot.slane %v5112_v44, %v9778_v55  ;;  %v5109_v8 = vsel %vm8863_vm14, %v5107_v10, %v5108_v7  ;;  %v5686_v45 = vld [vmem:[%s9326_s4 + $0x30] sm:$0xff] }
 0x291   :  { %6139 = vmatprep.subr.mxu1 %v5681_v25  ;;  %v5121_v23 = vcombine.low %v5106_v39, %v5109_v8  ;;  %v5232_v1 = vrot.slane %v5225_v5, %v9778_v55  ;;  %v5241_v56 = vrot.slane %v5234_v9, %v9778_v55 }
 0x292   :  { %v5120_v40 = vcombine.low %v4755_v33, %v5119_v58 }
 0x293   :  { %6129 = vmatmul.mubr.msk.f32.gmra.mrb[20].mxu1 %vm3792_vm10, %v4633_v17  ;;  %v5128_v35 = vrot.slane %v5121_v23, %v9778_v55  ;;  %v5233_v38 = vcombine.low %v9178_v28, %v5232_v1  ;;  %v5242_v19 = vcombine.low %v9181_v0, %v5241_v56  ;;  %v5693_v55 = vld [vmem:[%s9326_s4 + $0x38] sm:$0xff] }
 0x294   :  { %6133 = vmatprep.mubr.msk.f32.mxu1 %vm3792_vm10, %v4747_v51 }
 0x295   :  { %v5129_v30 = vcombine.low %v4765_v24, %v5128_v35 }
 0x297   :  { %6134 = vmatmul.mubr.msk.f32.vlgmr.msra.gmra.mrb[18].mxu1 %vm3792_vm10, %v4756_v50 }
 0x298   :  { %6140 = vmatpush3.msra.mxu1 %v5681_v25  ;;  %6136 = vmatprep.mubr.msk.f32.mxu1 %vm3792_vm10, %v4757_v3  ;;  %v5374_v25 = vld [vmem:[%s9328_s6] sm:$0x1] }
 0x299   :  { %6147 = vmatprep.subr.mxu1 %v5686_v45 }
 0x29b   :  { %6137 = vmatmul.mubr.msk.f32.gmra.mrb[20].mxu1 %vm3792_vm10, %v4766_v48 }
 0x29c   :  { %6141 = vmatprep.mubr.msk.f32.mxu1 %vm3792_vm10, %v4866_v42 }
 0x29f   :  { %6142 = vmatmul.mubr.msk.f32.vlgmr.msra.gmra.mrb[18].mxu1 %vm3792_vm10, %v4875_v31 }
 0x2a0   :  { %6148 = vmatpush3.msra.mxu1 %v5686_v45  ;;  %6144 = vmatprep.mubr.msk.f32.mxu1 %vm3792_vm10, %v4876_v59 }
 0x2a1   :  { %6155 = vmatprep.subr.mxu1 %v5693_v55 }
 0x2a3   :  { %6145 = vmatmul.mubr.msk.f32.gmra.mrb[20].mxu1 %vm3792_vm10, %v4885_v36 }
 0x2a4   :  { %6149 = vmatprep.mubr.msk.f32.mxu1 %vm3792_vm10, %v9047_v34 }
 0x2a7   :  { %6150 = vmatmul.mubr.msk.f32.vlgmr.msra.gmra.mrb[18].mxu1 %vm3792_vm10, %v4993_v37  ;;  %v5370_v37 = vld [vmem:[%s9327_s5] sm:$0x1]  ;;  %s6351_s5 = scalar_lea.vmem %s5411_s9, 512 }
 0x2a8   :  { %6156 = vmatpush3.msra.mxu1 %v5693_v55  ;;  %6152 = vmatprep.mubr.msk.f32.mxu1 %vm3792_vm10, %v9078_v54  ;;  %p6352_p0 = scmp.ne.s32.totalorder %s5411_s9, %s6351_s5  ;;  %p6357_p2 = scmp.lt.s32.totalorder %s6351_s5, %s6351_s5 }
 0x2a9   :  { %6163 = vmatprep.subr.mxu1 %v5698_v41 }
 0x2aa   :  { %p6358_p3 = por %p6357_p2, %p6356_p1 }
 0x2ab   :  { %6153 = vmatmul.mubr.msk.f32.gmra.mrb[20].mxu1 %vm3792_vm10, %v5002_v6 }
 0x2ac   :  { %6157 = vmatprep.mubr.msk.f32.mxu1 %vm3792_vm10, %v8964_v63  ;;  %p6359_p4 = pnand %p6358_p3, %p6352_p0 }
 0x2af   :  { %6158 = vmatmul.mubr.msk.f32.vlgmr.msra.gmra.mrb[18].mxu1 %vm3792_vm10, %v5120_v40 }
 0x2b0   :  { %6164 = vmatpush3.msra.mxu1 %v5698_v41  ;;  %6160 = vmatprep.mubr.msk.f32.mxu1 %vm3792_vm10, %v9059_v61 }
 0x2b3   :  { %6161 = vmatmul.mubr.msk.f32.gmra.mrb[20].mxu1 %vm3792_vm10, %v5129_v30 }
 0x2b4   :  { %6165 = vmatprep.mubr.msk.f32.mxu1 %vm3792_vm10, %v9110_v43 }
 0x2b7   :  { %6166 = vmatmul.mubr.msk.f32.vlgmr.msra.gmra.mrb[18].mxu1 %vm3792_vm10, %v5233_v38 }
 0x2b8   :  { %6168 = vmatprep.mubr.msk.f32.mxu1 %vm3792_vm10, %v9131_v46 }
 0x2bb   :  { %6169 = vmatmul.mubr.msk.f32.gmra.mrb[20].mxu1 %vm3792_vm10, %v5242_v19 }
 0x38a   :  { %v6167_v15 = vpop.f32.mrb[18].mxu1 }
 0x38b   :  { %v5337_v63 = vsel %vm3792_vm10, %v6167_v15, 0.0  ;;  %v5351_v62 = vmul.f32 %v6167_v15, %v6167_v15  ;;  %v5313_v20 = vpop.f32.mrb[19].mxu1 }
 0x38c   :  { %v5336_v34 = vsel %vm3792_vm10, %v5313_v20, 0.0  ;;  %v5350_v61 = vmul.f32 %v5313_v20, %v5313_v20 }
 0x38d   :  { %v5355_v54 = vsel %vm3792_vm10, %v5351_v62, 0.0  ;;  %v5338_v52 = vadd.f32 %v5337_v63, %v5336_v34 }
 0x38e   :  { %v5354_v21 = vsel %vm3792_vm10, %v5350_v61, 0.0  ;;  %v6170_v11 = vpop.f32.mrb[20].mxu1 }
 0x38f   :  { %v5356_v43 = vadd.f32 %v5355_v54, %v5354_v21  ;;  %v5323_v22 = vpop.f32.mrb[21].mxu1  ;;  %v5353_v51 = vmul.f32 %v6170_v11, %v6170_v11  ;;  %v5341_v59 = vsel %vm3792_vm10, %v6170_v11, 0.0 }
 0x390   :  { %v5339_v46 = vsel %vm3792_vm10, %v5323_v22, 0.0  ;;  %v5352_v3 = vmul.f32 %v5323_v22, %v5323_v22 }
 0x391   :  { %v5340_v42 = vadd.f32 %v5339_v46, %v5338_v52  ;;  %v5359_v28 = vsel %vm3792_vm10, %v5353_v51, 0.0 }
 0x392   :  { %v5357_v13 = vsel %vm3792_vm10, %v5352_v3, 0.0 }
 0x393   :  { %v5342_v18 = vadd.f32 %v5341_v59, %v5340_v42  ;;  %v5358_v60 = vadd.f32 %v5357_v13, %v5356_v43 }
 0x395   :  { %v5343_v0 = vrot.slane %v5342_v18, 4  ;;  %v5360_v49 = vadd.f32 %v5359_v28, %v5358_v60 }
 0x397   :  { %v5344_v17 = vadd.f32 %v5343_v0, %v5342_v18  ;;  %v5361_v27 = vrot.slane %v5360_v49, 4 }
 0x399   :  { %v5345_v47 = vrot.slane %v5344_v17, 2  ;;  %v5362_v16 = vadd.f32 %v5361_v27, %v5360_v49 }
 0x39b   :  { %v5346_v53 = vadd.f32 %v5345_v47, %v5344_v17  ;;  %v5363_v31 = vrot.slane %v5362_v16, 2 }
 0x39d   :  { %v5347_v36 = vrot.slane %v5346_v53, 1  ;;  %v5364_v2 = vadd.f32 %v5363_v31, %v5362_v16 }
 0x39f   :  { %v5348_v57 = vadd.f32 %v5347_v36, %v5346_v53  ;;  %v5365_v32 = vrot.slane %v5364_v2, 1 }
 0x3a1   :  { %v5349_v14 = vmul.f32 0.03125, %v5348_v57  ;;  %v5366_v33 = vadd.f32 %v5365_v32, %v5364_v2 }
 0x3a3   :  { %v5367_v29 = vmul.f32 0.03125, %v5366_v33  ;;  %v5368_v4 = vmul.f32 %v5349_v14, %v5349_v14 }
 0x3a5   :  { %v5369_v7 = vsub.f32 %v5367_v29, %v5368_v4 }
 0x3a7   :  { %v5371_v24 = vadd.f32 1e-05, %v5369_v7 }
 0x3a9   :  { %6348 = vrsqrt.f32 %v5371_v24 }
 0x3b3   :  { %v6349_v6 = vpop.eup %6348 }
 0x3b4   :  { %v5373_v12 = vmul.f32 %v6349_v6, %v5370_v37 }
 0x3b6   :  { %v5375_v50 = vmul.f32 %v5373_v12, %v5349_v14  ;;  %v5381_v44 = vrot.slane %v5373_v12, %v6471_v26 }
 0x3b8   :  { %v5376_v39 = vsub.f32 %v5374_v25, %v5375_v50  ;;  %v5383_v10 = vmul.f32 %v5381_v44, %v5313_v20  ;;  %v5384_v48 = vmul.f32 %v6167_v15, %v5381_v44  ;;  %v5385_v5 = vmul.f32 %v5381_v44, %v5323_v22 }
 0x3b9   :  { %v5386_v9 = vmul.f32 %v6170_v11, %v5381_v44 }
 0x3ba   :  { %v5391_v58 = vrot.slane %v5376_v39, %v6471_v26 }
 0x3bc   :  { %v5395_v8 = vadd.f32 %v5391_v58, %v5385_v5  ;;  %v5393_v23 = vadd.f32 %v5391_v58, %v5383_v10  ;;  %v5394_v1 = vadd.f32 %v5391_v58, %v5384_v48  ;;  %v5396_v56 = vadd.f32 %v5391_v58, %v5386_v9 }
 0x3be   :  { %v5399_v40 = vmax.f32 %v5395_v8, 0.0  ;;  %v5397_v35 = vmax.f32 %v5393_v23, 0.0  ;;  %v5398_v38 = vmax.f32 %v5394_v1, 0.0  ;;  %v5400_v19 = vmax.f32 %v5396_v56, 0.0 }
 0x3c0   :  { %5403 = vst.msk [vmem:[#allocation2 + $0x10] sm:$0xff] %vm3792_vm10, %v5399_v40  ;;  %5401 = vst.msk [vmem:[#allocation2] sm:$0xff] %vm3792_vm10, %v5397_v35 }
 0x3c1   :  { %5402 = vst.msk [vmem:[#allocation2 + $0x8] sm:$0xff] %vm3792_vm10, %v5398_v38  ;;  %5404 = vst.msk [vmem:[#allocation2 + $0x18] sm:$0xff] %vm3792_vm10, %v5400_v19 }
 0x3c2   :  { %6362 = shalt.err (!%p6359_p4)
}
 0x3c3   :  { %s6363_s10 = scalar_lea.hbm %s9329_s7, 512 }
 0x3c4   :  { %p6364_p5 = scmp.ne.s32.totalorder %s9329_s7, %s6363_s10  ;;  %p6367_p6 = scmp.lt.u32.totalorder %s6363_s10, %s9329_s7 }
 0x3c6   :  { %p6369_p7 = pnand %p6367_p6, %p6364_p5 }
 0x3c8   :  { %6372 = shalt.err (!%p6369_p7)
}
 0x3c9   :  { %s6379_s15 = smov 128   ;;  %s6380_s16 = smov 8  }
 0x3ca   :  { %5416 = dma.vmem_to_hbm [thread:$0]  %s5411_s9, 512, %s9329_s7, [#allocation3], %s6379_s15, %s6379_s15, %s6380_s16  }
 0x3cb   :  { %6373 = dma.done.wait [#allocation3], 512  }
 0x3cc   :  { %6374 = vsyncadd [#allocation3], 4294966784 }
 0x3cd   :  { %5420 = vsyncpa [#allocation3], 1 }

</bundles_post_ra>
